<compile_context>
chip_gen: v5e
topology: v5e:2x2
jax: 0.10.0
libtpu: 0.0.40
codegen_flags: <defaults>
</compile_context>

<pallas_src>
import functools
import math

import jax
import jax.numpy as jnp
from jax.experimental import pallas as pl
from jax.experimental.pallas import tpu as pltpu


_VMEM_LIMIT_BYTES = 48 * 1024 * 1024   # ~25% headroom under v7x's 64 MiB physical


# ----------------------------- tiling helpers ------------------------------

def _pick_tile(dim, target, aligns):
    """Largest divisor of `dim` that is <= target and a multiple of one of the
    alignments (tried in order); returns the full dim if none is found or the
    dim already fits the target."""
    if dim <= target:
        return dim
    for align in aligns:
        t = (target // align) * align
        while t >= align:
            if dim % t == 0:
                return t
            t -= align
    return dim


# --------------------------- exact GELU helper ------------------------------

def _erf_poly(x):
    # Abramowitz & Stegun 7.1.26 rational approximation, |err| < 1.5e-7:
    # far below the bf16 output resolution of the FFN activation.
    # TODO(synk): switch to jax.lax.erf once its Mosaic lowering is confirmed.
    a = jnp.abs(x)
    t = 1.0 / (1.0 + 0.3275911 * a)
    poly = ((((1.061405429 * t - 1.453152027) * t + 1.421413741) * t
             - 0.284496736) * t + 0.254829592) * t
    y = 1.0 - poly * jnp.exp(-a * a)
    return jnp.where(x >= 0, y, -y)


def _gelu_exact(x):
    return 0.5 * x * (1.0 + _erf_poly(x * 0.7071067811865476))


# --------------------------- tiled matmul kernel ----------------------------

def _matmul_kernel(*refs, has_bias, has_residual, activation):
    x_ref, w_ref = refs[0], refs[1]
    idx = 2
    b_ref = r_ref = None
    if has_bias:
        b_ref = refs[idx]
        idx += 1
    if has_residual:
        r_ref = refs[idx]
        idx += 1
    o_ref = refs[idx]
    acc_ref = refs[idx + 1]

    @pl.when(pl.program_id(2) == 0)
    def _():
        acc_ref[...] = jnp.zeros_like(acc_ref)

    acc_ref[...] += jnp.dot(x_ref[...], w_ref[...],
                            preferred_element_type=jnp.float32)

    @pl.when(pl.program_id(2) == pl.num_programs(2) - 1)
    def _():
        y = acc_ref[...]
        if has_bias:
            y = y + b_ref[...].astype(jnp.float32)
        if activation == "gelu":
            y = _gelu_exact(y)                       # fused exact GELU epilogue
        if has_residual:
            y = y + r_ref[...].astype(jnp.float32)
        o_ref[...] = y.astype(o_ref.dtype)


def linear(x, w, b=None, residual=None, *, activation=None,
           out_dtype=jnp.bfloat16, tm=256, tn=512, tk=512):
    """Tiled matmul (M,K)@(K,N) [+bias] [+GELU] [+residual]; f32 accumulation.

    x / w / residual are bf16 (MXU inputs / mem-bound residual), bias f32.
    Bias / activation / residual adds are fused into the last-K epilogue.
    """
    M, K = x.shape
    N = w.shape[1]
    tm = _pick_tile(M, tm, (8,))
    tn = _pick_tile(N, tn, (256, 128))
    tk = _pick_tile(K, tk, (256, 128))
    grid = (M // tm, N // tn, K // tk)

    in_specs = [pl.BlockSpec((tm, tk), lambda i, j, k: (i, k)),
                pl.BlockSpec((tk, tn), lambda i, j, k: (k, j))]
    args = [x, w]
    if b is not None:
        in_specs.append(pl.BlockSpec((1, tn), lambda i, j, k: (0, j)))
        args.append(b.reshape(1, N))
    if residual is not None:
        in_specs.append(pl.BlockSpec((tm, tn), lambda i, j, k: (i, j)))
        args.append(residual)

    kernel = functools.partial(_matmul_kernel,
                               has_bias=b is not None,
                               has_residual=residual is not None,
                               activation=activation)
    return pl.pallas_call(
        kernel,
        out_shape=jax.ShapeDtypeStruct((M, N), out_dtype),
        grid=grid,
        in_specs=in_specs,
        out_specs=pl.BlockSpec((tm, tn), lambda i, j, k: (i, j)),
        scratch_shapes=[pltpu.VMEM((tm, tn), jnp.float32)],
        compiler_params=pltpu.CompilerParams(
            dimension_semantics=("parallel", "parallel", "arbitrary"),
            vmem_limit_bytes=_VMEM_LIMIT_BYTES),
    )(*args)


# ------------------------------- layernorm ----------------------------------

def _layernorm_kernel(x_ref, g_ref, b_ref, o_ref):
    x = x_ref[...].astype(jnp.float32)
    mu = jnp.mean(x, axis=-1, keepdims=True)
    var = jnp.mean(jnp.square(x - mu), axis=-1, keepdims=True)
    y = (x - mu) * jax.lax.rsqrt(var + 1e-5)
    o_ref[...] = (y * g_ref[...] + b_ref[...]).astype(o_ref.dtype)


def layernorm(x, g, b, *, out_dtype=jnp.bfloat16, tm=1024):
    """Row-tiled LayerNorm (eps=1e-5), f32 statistics. g/b: (1, D) f32."""
    M, D = x.shape
    tm = _pick_tile(M, tm, (8,))
    return pl.pallas_call(
        _layernorm_kernel,
        out_shape=jax.ShapeDtypeStruct((M, D), out_dtype),
        grid=(M // tm,),
        in_specs=[pl.BlockSpec((tm, D), lambda i: (i, 0)),
                  pl.BlockSpec((1, D), lambda i: (0, 0)),
                  pl.BlockSpec((1, D), lambda i: (0, 0))],
        out_specs=pl.BlockSpec((tm, D), lambda i: (i, 0)),
        compiler_params=pltpu.CompilerParams(
            dimension_semantics=("parallel",)),
    )(x, g, b)


# --------------------------- flash attention kernel -------------------------

def _flash_attn_kernel(*refs, n_heads, dh, causal, tq, tkv):
    """Online-softmax attention over one (q-block, kv-block) tile.

    causal=True : refs = (qkv_q_src, qkv_kv_src, pad_ref, o_ref, m, l, acc)
                  q = cols [0,D), k = cols [D,2D), v = cols [2D,3D) of qkv.
    causal=False: refs = (q_src, kv_src, o_ref, m, l, acc)
                  k = cols [0,D), v = cols [D,2D) of the fused encoder KV.
    m / l / acc scratch are (tq, D) f32 with per-head values replicated across
    that head's dh lanes, so the finalize is a single lane-dense store.
    """
    D = n_heads * dh
    if causal:
        q_src, kv_src, pad_ref, o_ref, m_sc, l_sc, acc_sc = refs
        q_off, k_off, v_off = 0, D, 2 * D
    else:
        q_src, kv_src, o_ref, m_sc, l_sc, acc_sc = refs
        pad_ref = None
        q_off, k_off, v_off = 0, 0, D

    qi = pl.program_id(1)
    ki = pl.program_id(2)

    @pl.when(ki == 0)
    def _():
        m_sc[...] = jnp.full_like(m_sc, -jnp.inf)
        l_sc[...] = jnp.zeros_like(l_sc)
        acc_sc[...] = jnp.zeros_like(acc_sc)

    # head-chunk width: full 128-lane chunks when possible so stores into the
    # accumulator are unmasked; whole D for small (toy) models.
    if dh % 128 == 0:
        hc = 1
    elif D % 128 == 0 and 128 % dh == 0:
        hc = 128 // dh
    else:
        hc = n_heads

    def compute():
        if causal:
            row = qi * tq + jax.lax.broadcasted_iota(jnp.int32, (tq, tkv), 0)
            col = ki * tkv + jax.lax.broadcasted_iota(jnp.int32, (tq, tkv), 1)
            mask = jnp.where(row >= col, 0.0, -1e9) + pad_ref[...]
        else:
            mask = None

        for c in range(0, n_heads, hc):
            csl = slice(c * dh, (c + hc) * dh)
            m_prev_c = m_sc[:, csl]
            l_prev_c = l_sc[:, csl]
            m_parts, a_parts, d_parts, pv_parts = [], [], [], []
            for j in range(hc):
                h = c + j
                s = jax.lax.dot_general(
                    q_src[:, q_off + h * dh:q_off + (h + 1) * dh],
                    kv_src[:, k_off + h * dh:k_off + (h + 1) * dh],
                    (((1,), (1,)), ((), ())),
                    preferred_element_type=jnp.float32)
                if mask is not None:
                    s = s + mask
                m_prev = m_prev_c[:, j * dh:j * dh + 1]
                m_new = jnp.maximum(m_prev, jnp.max(s, axis=-1, keepdims=True))
                alpha = jnp.exp(m_prev - m_new)
                p = jnp.exp(s - m_new)
                pv = jnp.dot(p.astype(jnp.bfloat16),
                             kv_src[:, v_off + h * dh:v_off + (h + 1) * dh],
                             preferred_element_type=jnp.float32)
                m_parts.append(jnp.broadcast_to(m_new, (tq, dh)))
                a_parts.append(jnp.broadcast_to(alpha, (tq, dh)))
                d_parts.append(jnp.broadcast_to(
                    jnp.sum(p, axis=-1, keepdims=True), (tq, dh)))
                pv_parts.append(pv)

            def cat(parts):
                return parts[0] if len(parts) == 1 else jnp.concatenate(parts, -1)

            alpha_c = cat(a_parts)
            m_sc[:, csl] = cat(m_parts)
            l_sc[:, csl] = alpha_c * l_prev_c + cat(d_parts)
            acc_sc[:, csl] = alpha_c * acc_sc[:, csl] + cat(pv_parts)

    if causal:
        # skip KV tiles that lie entirely above the diagonal
        pl.when(ki * tkv <= qi * tq + (tq - 1))(compute)
    else:
        compute()

    @pl.when(ki == pl.num_programs(2) - 1)
    def _():
        o_ref[...] = (acc_sc[...] / l_sc[...]).astype(o_ref.dtype)


def self_attention(qkv, pad_add, *, n_heads, dh, tq_target=256, tkv_target=512):
    """qkv: (B, S, 3D) bf16 fused Q|K|V; pad_add: (B, 1, S) f32 additive."""
    B, S, threeD = qkv.shape
    D = n_heads * dh
    tq = _pick_tile(S, tq_target, (8,))
    tkv = _pick_tile(S, tkv_target, (128,))   # pad-mask block puts tkv on lanes
    grid = (B, S // tq, S // tkv)
    kernel = functools.partial(_flash_attn_kernel, n_heads=n_heads, dh=dh,
                               causal=True, tq=tq, tkv=tkv)
    return pl.pallas_call(
        kernel,
        out_shape=jax.ShapeDtypeStruct((B, S, D), jnp.bfloat16),
        grid=grid,
        in_specs=[pl.BlockSpec((None, tq, threeD), lambda b, i, j: (b, i, 0)),
                  pl.BlockSpec((None, tkv, threeD), lambda b, i, j: (b, j, 0)),
                  pl.BlockSpec((None, 1, tkv), lambda b, i, j: (b, 0, j))],
        out_specs=pl.BlockSpec((None, tq, D), lambda b, i, j: (b, i, 0)),
        scratch_shapes=[pltpu.VMEM((tq, D), jnp.float32)] * 3,
        compiler_params=pltpu.CompilerParams(
            dimension_semantics=("parallel", "parallel", "arbitrary"),
            vmem_limit_bytes=_VMEM_LIMIT_BYTES),
    )(qkv, qkv, pad_add)


def cross_attention(q, kv, *, n_heads, dh, tq_target=256, tkv_target=512):
    """q: (B, S, D) bf16; kv: (B, S_enc, 2D) bf16 fused K|V; no mask (HF: None)."""
    B, S, D = q.shape
    S_enc = kv.shape[1]
    tq = _pick_tile(S, tq_target, (8,))
    tkv = _pick_tile(S_enc, tkv_target, (128, 8))
    grid = (B, S // tq, S_enc // tkv)
    kernel = functools.partial(_flash_attn_kernel, n_heads=n_heads, dh=dh,
                               causal=False, tq=tq, tkv=tkv)
    return pl.pallas_call(
        kernel,
        out_shape=jax.ShapeDtypeStruct((B, S, D), jnp.bfloat16),
        grid=grid,
        in_specs=[pl.BlockSpec((None, tq, D), lambda b, i, j: (b, i, 0)),
                  pl.BlockSpec((None, tkv, 2 * D), lambda b, i, j: (b, j, 0))],
        out_specs=pl.BlockSpec((None, tq, D), lambda b, i, j: (b, i, 0)),
        scratch_shapes=[pltpu.VMEM((tq, D), jnp.float32)] * 3,
        compiler_params=pltpu.CompilerParams(
            dimension_semantics=("parallel", "parallel", "arbitrary"),
            vmem_limit_bytes=_VMEM_LIMIT_BYTES),
    )(q, kv)


# ------------------------------ model glue ----------------------------------

def bart_decoder_forward(params, input_ids, attention_mask, encoder_hidden_states,
                         *, n_heads, vocab_size):
    B, S = input_ids.shape
    D = params["embed_tokens"].shape[1]
    dh = D // n_heads
    S_enc = encoder_hidden_states.shape[1]
    embed_scale = math.sqrt(D)  # scale_embedding=True

    # token + learned positional embeddings (MBart positional offset = 2)
    # TODO(synk): embedding gather stays an XLA gather (data-dependent row
    # gather has no rectangular BlockSpec; a DMA-gather kernel is overkill here).
    x = jnp.take(params["embed_tokens"], input_ids, axis=0) * embed_scale
    positions = jnp.arange(S) + 2
    x = x + jnp.take(params["embed_positions"], positions, axis=0)[None, :, :]
    # residual stream carried in bf16 (halves HBM bytes on mem-bound passes)
    h = layernorm(x.reshape(B * S, D), params["ln_emb_g"], params["ln_emb_b"])

    # only the key-padding additive vector is materialized; the causal part is
    # built in-kernel per tile and cross-attention has no mask at all.
    pad_add = jnp.where(attention_mask > 0, 0.0, -1e9).astype(jnp.float32)
    pad_add = pad_add.reshape(B, 1, S)

    enc_bf = encoder_hidden_states.reshape(B * S_enc, D).astype(jnp.bfloat16)

    for lyr in params["layers"]:
        # --- self attention (pre-norm, causal + padding mask) ---
        hn = layernorm(h, lyr["sa_ln_g"], lyr["sa_ln_b"])
        qkv = linear(hn, lyr["sa_qkv_w"], lyr["sa_qkv_b"])            # (B*S, 3D)
        ctx = self_attention(qkv.reshape(B, S, 3 * D), pad_add,
                             n_heads=n_heads, dh=dh)
        h = linear(ctx.reshape(B * S, D), lyr["sa_o_w"], lyr["sa_o_b"],
                   residual=h)                                         # fused +res

        # --- cross attention (no encoder mask in this forward path) ---
        hn = layernorm(h, lyr["ca_ln_g"], lyr["ca_ln_b"])
        q = linear(hn, lyr["ca_q_w"], lyr["ca_q_b"])                   # (B*S, D)
        kv = linear(enc_bf, lyr["ca_kv_w"], lyr["ca_kv_b"])            # (B*S_enc, 2D)
        ctx = cross_attention(q.reshape(B, S, D), kv.reshape(B, S_enc, 2 * D),
                              n_heads=n_heads, dh=dh)
        h = linear(ctx.reshape(B * S, D), lyr["ca_o_w"], lyr["ca_o_b"],
                   residual=h)

        # --- feed forward: exact GELU fused into the fc1 epilogue ---
        hn = layernorm(h, lyr["fn_ln_g"], lyr["fn_ln_b"])
        hn = linear(hn, lyr["fc1_w"], lyr["fc1_b"], activation="gelu")
        h = linear(hn, lyr["fc2_w"], lyr["fc2_b"], residual=h)

    # final layer norm (add_final_layer_norm=True); emits bf16 for lm_head
    h = layernorm(h, params["final_ln_g"], params["final_ln_b"])

    # lm_head: Linear(d_model, vocab, bias=False); vocab padded to 512-multiple,
    # big lane-dense N tiles, single K tile.
    logits = linear(h, params["lm_head_w"], out_dtype=jnp.float32,
                    tm=256, tn=2048, tk=1024)
    logits = logits[:, :vocab_size]
    # TODO(synk): labels / CrossEntropyLoss branch, KV-cache generation path,
    # tokenizer handling and pretrained-weight resizing are host-side logic.
    return logits.reshape(B, S, vocab_size), h.reshape(B, S, D)


# --------------------------- parameter init --------------------------------

def init_params(key, *, vocab_size, d_model, ffn_dim, n_layers, n_heads, max_pos):
    """Kernel-ready params: matmul weights bf16, q-scaling folded into q_w/q_b,
    Q|K|V (self) and K|V (cross) column-fused, vocab padded to a 512 multiple;
    biases / LN params / embedding tables in f32."""
    dh = d_model // n_heads
    scaling = dh ** -0.5
    vocab_pad = ((vocab_size + 511) // 512) * 512
    keys = iter(jax.random.split(key, 512))

    def nrm(shape):
        return 0.02 * jax.random.normal(next(keys), shape, dtype=jnp.float32)

    def ones(shape):
        return jnp.ones(shape, jnp.float32)

    def zeros(shape):
        return jnp.zeros(shape, jnp.float32)

    def proj(n_in, n_out):
        return nrm((n_in, n_out)), nrm((n_out,))

    def layer():
        q_w, q_b = proj(d_model, d_model)
        k_w, k_b = proj(d_model, d_model)
        v_w, v_b = proj(d_model, d_model)
        o_w, o_b = proj(d_model, d_model)
        cq_w, cq_b = proj(d_model, d_model)
        ck_w, ck_b = proj(d_model, d_model)
        cv_w, cv_b = proj(d_model, d_model)
        co_w, co_b = proj(d_model, d_model)
        fc1_w, fc1_b = proj(d_model, ffn_dim)
        fc2_w, fc2_b = proj(ffn_dim, d_model)
        return {
            "sa_qkv_w": jnp.concatenate([q_w * scaling, k_w, v_w],
                                        axis=1).astype(jnp.bfloat16),
            "sa_qkv_b": jnp.concatenate([q_b * scaling, k_b, v_b], axis=0),
            "sa_o_w": o_w.astype(jnp.bfloat16), "sa_o_b": o_b,
            "ca_q_w": (cq_w * scaling).astype(jnp.bfloat16),
            "ca_q_b": cq_b * scaling,
            "ca_kv_w": jnp.concatenate([ck_w, cv_w], axis=1).astype(jnp.bfloat16),
            "ca_kv_b": jnp.concatenate([ck_b, cv_b], axis=0),
            "ca_o_w": co_w.astype(jnp.bfloat16), "ca_o_b": co_b,
            "sa_ln_g": ones((1, d_model)), "sa_ln_b": zeros((1, d_model)),
            "ca_ln_g": ones((1, d_model)), "ca_ln_b": zeros((1, d_model)),
            "fn_ln_g": ones((1, d_model)), "fn_ln_b": zeros((1, d_model)),
            "fc1_w": fc1_w.astype(jnp.bfloat16), "fc1_b": fc1_b,
            "fc2_w": fc2_w.astype(jnp.bfloat16), "fc2_b": fc2_b,
        }

    lm_head = nrm((d_model, vocab_size))
    lm_head = jnp.pad(lm_head, ((0, 0), (0, vocab_pad - vocab_size)))

    return {
        "embed_tokens": nrm((vocab_size, d_model)),
        "embed_positions": nrm((max_pos + 2, d_model)),   # +2 = MBart pos offset
        "ln_emb_g": ones((1, d_model)), "ln_emb_b": zeros((1, d_model)),
        "final_ln_g": ones((1, d_model)), "final_ln_b": zeros((1, d_model)),
        "lm_head_w": lm_head.astype(jnp.bfloat16),
        "layers": [layer() for _ in range(n_layers)],
    }


# --------------------------------- main -------------------------------------

if __name__ == "__main__":
    # small, shape-consistent config: decoder_layer=2, max_position_embeddings=16
    B, S, S_ENC = 2, 8, 16
    D_MODEL, N_HEADS, FFN, VOCAB, N_LAYERS, MAX_POS = 32, 4, 64, 96, 2, 16
    PAD_ID = 1

    key = jax.random.PRNGKey(0)
    kp, kid, ke = jax.random.split(key, 3)

    params = init_params(kp, vocab_size=VOCAB, d_model=D_MODEL, ffn_dim=FFN,
                         n_layers=N_LAYERS, n_heads=N_HEADS, max_pos=MAX_POS)

    input_ids = jax.random.randint(kid, (B, S), 0, VOCAB, dtype=jnp.int32)
    # mirrors prepare_inputs_for_inference: mask = input_ids.ne(pad_token_id)
    attention_mask = (input_ids != PAD_ID).astype(jnp.int32)
    encoder_hidden_states = jax.random.normal(ke, (B, S_ENC, D_MODEL), jnp.float32)

    fwd = jax.jit(functools.partial(bart_decoder_forward,
                                    n_heads=N_HEADS, vocab_size=VOCAB))
    logits, hidden = fwd(params, input_ids, attention_mask, encoder_hidden_states)
    jax.block_until_ready((logits, hidden))

    assert logits.shape == (B, S, VOCAB), logits.shape
    assert hidden.shape == (B, S, D_MODEL), hidden.shape
    assert bool(jnp.all(jnp.isfinite(logits)))
    print("KERNEL_OK")
</pallas_src>

<mosaic_0001>
module attributes {stable_mosaic.version = 11 : i64} {
  func.func @_layernorm_kernel(%arg0: i32, %arg1: memref<16x32xbf16, #tpu.memory_space<vmem>>, %arg2: memref<1x32xf32, #tpu.memory_space<vmem>>, %arg3: memref<1x32xf32, #tpu.memory_space<vmem>>, %arg4: memref<16x32xbf16, #tpu.memory_space<vmem>>) attributes {dimension_semantics = [#tpu.dimension_semantics<parallel>], iteration_bounds = array<i64: 1>, scalar_prefetch = 0 : i64, scratch_operands = 0 : i64, tpu.core_type = #tpu.core_type<tc>, window_params = [{transform_indices = @transform_0, window_bounds = array<i64: 16, 32>}, {pipeline_mode = #tpu.pipeline_mode<synchronous>, transform_indices = @transform_1, window_bounds = array<i64: 1, 32>}, {pipeline_mode = #tpu.pipeline_mode<synchronous>, transform_indices = @transform_2, window_bounds = array<i64: 1, 32>}, {transform_indices = @transform_3, window_bounds = array<i64: 16, 32>}]} {
    %c0 = arith.constant 0 : index
    %c0_0 = arith.constant 0 : index
    %0 = vector.load %arg1[%c0, %c0_0] : memref<16x32xbf16, #tpu.memory_space<vmem>>, vector<16x32xbf16>
    %1 = arith.extf %0 : vector<16x32xbf16> to vector<16x32xf32>
    %cst = arith.constant dense<0.000000e+00> : vector<16xf32>
    %2 = vector.multi_reduction <add>, %1, %cst [1] : vector<16x32xf32> to vector<16xf32>
    %3 = vector.shape_cast %2 : vector<16xf32> to vector<16x1xf32>
    %cst_1 = arith.constant 3.200000e+01 : f32
    %4 = vector.broadcast %cst_1 : f32 to vector<16x1xf32>
    %5 = arith.divf %3, %4 : vector<16x1xf32>
    %6 = vector.broadcast %5 : vector<16x1xf32> to vector<16x32xf32>
    %7 = arith.subf %1, %6 : vector<16x32xf32>
    %8 = arith.mulf %7, %7 : vector<16x32xf32>
    %cst_2 = arith.constant dense<0.000000e+00> : vector<16xf32>
    %9 = vector.multi_reduction <add>, %8, %cst_2 [1] : vector<16x32xf32> to vector<16xf32>
    %10 = vector.shape_cast %9 : vector<16xf32> to vector<16x1xf32>
    %cst_3 = arith.constant 3.200000e+01 : f32
    %11 = vector.broadcast %cst_3 : f32 to vector<16x1xf32>
    %12 = arith.divf %10, %11 : vector<16x1xf32>
    %13 = vector.broadcast %5 : vector<16x1xf32> to vector<16x32xf32>
    %14 = arith.subf %1, %13 : vector<16x32xf32>
    %cst_4 = arith.constant 9.99999974E-6 : f32
    %15 = vector.broadcast %cst_4 : f32 to vector<16x1xf32>
    %16 = arith.addf %12, %15 : vector<16x1xf32>
    %17 = math.rsqrt %16 : vector<16x1xf32>
    %18 = vector.broadcast %17 : vector<16x1xf32> to vector<16x32xf32>
    %19 = arith.mulf %14, %18 : vector<16x32xf32>
    %c0_5 = arith.constant 0 : index
    %c0_6 = arith.constant 0 : index
    %20 = vector.load %arg2[%c0_5, %c0_6] : memref<1x32xf32, #tpu.memory_space<vmem>>, vector<1x32xf32>
    %21 = vector.broadcast %20 : vector<1x32xf32> to vector<16x32xf32>
    %22 = arith.mulf %19, %21 : vector<16x32xf32>
    %c0_7 = arith.constant 0 : index
    %c0_8 = arith.constant 0 : index
    %23 = vector.load %arg3[%c0_7, %c0_8] : memref<1x32xf32, #tpu.memory_space<vmem>>, vector<1x32xf32>
    %24 = vector.broadcast %23 : vector<1x32xf32> to vector<16x32xf32>
    %25 = arith.addf %22, %24 : vector<16x32xf32>
    %26 = arith.truncf %25 : vector<16x32xf32> to vector<16x32xbf16>
    %c0_9 = arith.constant 0 : index
    %c0_10 = arith.constant 0 : index
    %27 = vector.load %arg4[%c0_9, %c0_10] : memref<16x32xbf16, #tpu.memory_space<vmem>>, vector<16x32xbf16>
    tpu.vector_store %arg4[%c0_9, %c0_10], %26 {strides = array<i32>} : memref<16x32xbf16, #tpu.memory_space<vmem>>, vector<16x32xbf16>,
    return
  }
  func.func @transform_0(%arg0: i32) -> (i32, i32) {
    %c0_i32 = arith.constant 0 : i32
    %c0_i32_0 = arith.constant 0 : i32
    return %arg0, %c0_i32 : i32, i32
  }
  func.func @transform_1(%arg0: i32) -> (i32, i32) {
    %c0_i32 = arith.constant 0 : i32
    %c0_i32_0 = arith.constant 0 : i32
    %c0_i32_1 = arith.constant 0 : i32
    return %c0_i32, %c0_i32_0 : i32, i32
  }
  func.func @transform_2(%arg0: i32) -> (i32, i32) {
    %c0_i32 = arith.constant 0 : i32
    %c0_i32_0 = arith.constant 0 : i32
    %c0_i32_1 = arith.constant 0 : i32
    return %c0_i32, %c0_i32_0 : i32, i32
  }
  func.func @transform_3(%arg0: i32) -> (i32, i32) {
    %c0_i32 = arith.constant 0 : i32
    %c0_i32_0 = arith.constant 0 : i32
    return %arg0, %c0_i32 : i32, i32
  }
}

module attributes {stable_mosaic.version = 11 : i64} {
  func.func @_layernorm_kernel(%arg0: i32, %arg1: memref<16x32xf32, #tpu.memory_space<vmem>>, %arg2: memref<1x32xf32, #tpu.memory_space<vmem>>, %arg3: memref<1x32xf32, #tpu.memory_space<vmem>>, %arg4: memref<16x32xbf16, #tpu.memory_space<vmem>>) attributes {dimension_semantics = [#tpu.dimension_semantics<parallel>], iteration_bounds = array<i64: 1>, scalar_prefetch = 0 : i64, scratch_operands = 0 : i64, tpu.core_type = #tpu.core_type<tc>, window_params = [{transform_indices = @transform_0, window_bounds = array<i64: 16, 32>}, {pipeline_mode = #tpu.pipeline_mode<synchronous>, transform_indices = @transform_1, window_bounds = array<i64: 1, 32>}, {pipeline_mode = #tpu.pipeline_mode<synchronous>, transform_indices = @transform_2, window_bounds = array<i64: 1, 32>}, {transform_indices = @transform_3, window_bounds = array<i64: 16, 32>}]} {
    %c0 = arith.constant 0 : index
    %c0_0 = arith.constant 0 : index
    %0 = vector.load %arg1[%c0, %c0_0] : memref<16x32xf32, #tpu.memory_space<vmem>>, vector<16x32xf32>
    %cst = arith.constant dense<0.000000e+00> : vector<16xf32>
    %1 = vector.multi_reduction <add>, %0, %cst [1] : vector<16x32xf32> to vector<16xf32>
    %2 = vector.shape_cast %1 : vector<16xf32> to vector<16x1xf32>
    %cst_1 = arith.constant 3.200000e+01 : f32
    %3 = vector.broadcast %cst_1 : f32 to vector<16x1xf32>
    %4 = arith.divf %2, %3 : vector<16x1xf32>
    %5 = vector.broadcast %4 : vector<16x1xf32> to vector<16x32xf32>
    %6 = arith.subf %0, %5 : vector<16x32xf32>
    %7 = arith.mulf %6, %6 : vector<16x32xf32>
    %cst_2 = arith.constant dense<0.000000e+00> : vector<16xf32>
    %8 = vector.multi_reduction <add>, %7, %cst_2 [1] : vector<16x32xf32> to vector<16xf32>
    %9 = vector.shape_cast %8 : vector<16xf32> to vector<16x1xf32>
    %cst_3 = arith.constant 3.200000e+01 : f32
    %10 = vector.broadcast %cst_3 : f32 to vector<16x1xf32>
    %11 = arith.divf %9, %10 : vector<16x1xf32>
    %12 = vector.broadcast %4 : vector<16x1xf32> to vector<16x32xf32>
    %13 = arith.subf %0, %12 : vector<16x32xf32>
    %cst_4 = arith.constant 9.99999974E-6 : f32
    %14 = vector.broadcast %cst_4 : f32 to vector<16x1xf32>
    %15 = arith.addf %11, %14 : vector<16x1xf32>
    %16 = math.rsqrt %15 : vector<16x1xf32>
    %17 = vector.broadcast %16 : vector<16x1xf32> to vector<16x32xf32>
    %18 = arith.mulf %13, %17 : vector<16x32xf32>
    %c0_5 = arith.constant 0 : index
    %c0_6 = arith.constant 0 : index
    %19 = vector.load %arg2[%c0_5, %c0_6] : memref<1x32xf32, #tpu.memory_space<vmem>>, vector<1x32xf32>
    %20 = vector.broadcast %19 : vector<1x32xf32> to vector<16x32xf32>
    %21 = arith.mulf %18, %20 : vector<16x32xf32>
    %c0_7 = arith.constant 0 : index
    %c0_8 = arith.constant 0 : index
    %22 = vector.load %arg3[%c0_7, %c0_8] : memref<1x32xf32, #tpu.memory_space<vmem>>, vector<1x32xf32>
    %23 = vector.broadcast %22 : vector<1x32xf32> to vector<16x32xf32>
    %24 = arith.addf %21, %23 : vector<16x32xf32>
    %25 = arith.truncf %24 : vector<16x32xf32> to vector<16x32xbf16>
    %c0_9 = arith.constant 0 : index
    %c0_10 = arith.constant 0 : index
    %26 = vector.load %arg4[%c0_9, %c0_10] : memref<16x32xbf16, #tpu.memory_space<vmem>>, vector<16x32xbf16>
    tpu.vector_store %arg4[%c0_9, %c0_10], %25 {strides = array<i32>} : memref<16x32xbf16, #tpu.memory_space<vmem>>, vector<16x32xbf16>,
    return
  }
  func.func @transform_0(%arg0: i32) -> (i32, i32) {
    %c0_i32 = arith.constant 0 : i32
    %c0_i32_0 = arith.constant 0 : i32
    return %arg0, %c0_i32 : i32, i32
  }
  func.func @transform_1(%arg0: i32) -> (i32, i32) {
    %c0_i32 = arith.constant 0 : i32
    %c0_i32_0 = arith.constant 0 : i32
    %c0_i32_1 = arith.constant 0 : i32
    return %c0_i32, %c0_i32_0 : i32, i32
  }
  func.func @transform_2(%arg0: i32) -> (i32, i32) {
    %c0_i32 = arith.constant 0 : i32
    %c0_i32_0 = arith.constant 0 : i32
    %c0_i32_1 = arith.constant 0 : i32
    return %c0_i32, %c0_i32_0 : i32, i32
  }
  func.func @transform_3(%arg0: i32) -> (i32, i32) {
    %c0_i32 = arith.constant 0 : i32
    %c0_i32_0 = arith.constant 0 : i32
    return %arg0, %c0_i32 : i32, i32
  }
}

module attributes {stable_mosaic.version = 11 : i64} {
  func.func @_matmul_kernel(%arg0: i32, %arg1: i32, %arg2: i32, %arg3: memref<16x32xbf16, #tpu.memory_space<vmem>>, %arg4: memref<32x96xbf16, #tpu.memory_space<vmem>>, %arg5: memref<1x96xf32, #tpu.memory_space<vmem>>, %arg6: memref<16x96xbf16, #tpu.memory_space<vmem>>, %arg7: memref<16x96xf32, #tpu.memory_space<vmem>>) attributes {dimension_semantics = [#tpu.dimension_semantics<parallel>, #tpu.dimension_semantics<parallel>, #tpu.dimension_semantics<arbitrary>], iteration_bounds = array<i64: 1, 1, 1>, scalar_prefetch = 0 : i64, scratch_operands = 1 : i64, tpu.core_type = #tpu.core_type<tc>, window_params = [{transform_indices = @transform_0, window_bounds = array<i64: 16, 32>}, {transform_indices = @transform_1, window_bounds = array<i64: 32, 96>}, {transform_indices = @transform_2, window_bounds = array<i64: 1, 96>}, {transform_indices = @transform_3, window_bounds = array<i64: 16, 96>}]} {
    %c0_i32 = arith.constant 0 : i32
    %0 = arith.cmpi eq, %arg2, %c0_i32 : i32
    %1 = arith.extui %0 : i1 to i32
    %c0_i32_0 = arith.constant 0 : i32
    %2 = arith.cmpi ne, %1, %c0_i32_0 : i32
    scf.if %2 {
      %cst_10 = arith.constant 0.000000e+00 : f32
      %12 = vector.broadcast %cst_10 : f32 to vector<16x96xf32>
      %c0_11 = arith.constant 0 : index
      %c0_12 = arith.constant 0 : index
      %13 = vector.load %arg7[%c0_11, %c0_12] : memref<16x96xf32, #tpu.memory_space<vmem>>, vector<16x96xf32>
      tpu.vector_store %arg7[%c0_11, %c0_12], %12 {strides = array<i32>} : memref<16x96xf32, #tpu.memory_space<vmem>>, vector<16x96xf32>,
    } else {
    }
    %c0 = arith.constant 0 : index
    %c0_1 = arith.constant 0 : index
    %3 = vector.load %arg7[%c0, %c0_1] : memref<16x96xf32, #tpu.memory_space<vmem>>, vector<16x96xf32>
    %c0_2 = arith.constant 0 : index
    %c0_3 = arith.constant 0 : index
    %4 = vector.load %arg3[%c0_2, %c0_3] : memref<16x32xbf16, #tpu.memory_space<vmem>>, vector<16x32xbf16>
    %c0_4 = arith.constant 0 : index
    %c0_5 = arith.constant 0 : index
    %5 = vector.load %arg4[%c0_4, %c0_5] : memref<32x96xbf16, #tpu.memory_space<vmem>>, vector<32x96xbf16>
    %cst = arith.constant dense<0.000000e+00> : vector<16x96xf32>
    %6 = tpu.matmul %4, %5, %cst {dimension_numbers = #tpu.dot_dimension_numbers<[1], [0], [0], [1], [0, 0, 1, 1], [], []>} : vector<16x32xbf16>, vector<32x96xbf16>, vector<16x96xf32> -> vector<16x96xf32>
    %7 = arith.addf %3, %6 : vector<16x96xf32>
    %c0_6 = arith.constant 0 : index
    %c0_7 = arith.constant 0 : index
    %8 = vector.load %arg7[%c0_6, %c0_7] : memref<16x96xf32, #tpu.memory_space<vmem>>, vector<16x96xf32>
    tpu.vector_store %arg7[%c0_6, %c0_7], %7 {strides = array<i32>} : memref<16x96xf32, #tpu.memory_space<vmem>>, vector<16x96xf32>,
    %c0_i32_8 = arith.constant 0 : i32
    %9 = arith.cmpi eq, %arg2, %c0_i32_8 : i32
    %10 = arith.extui %9 : i1 to i32
    %c0_i32_9 = arith.constant 0 : i32
    %11 = arith.cmpi ne, %10, %c0_i32_9 : i32
    scf.if %11 {
      %c0_10 = arith.constant 0 : index
      %c0_11 = arith.constant 0 : index
      %12 = vector.load %arg7[%c0_10, %c0_11] : memref<16x96xf32, #tpu.memory_space<vmem>>, vector<16x96xf32>
      %c0_12 = arith.constant 0 : index
      %c0_13 = arith.constant 0 : index
      %13 = vector.load %arg5[%c0_12, %c0_13] : memref<1x96xf32, #tpu.memory_space<vmem>>, vector<1x96xf32>
      %14 = vector.broadcast %13 : vector<1x96xf32> to vector<16x96xf32>
      %15 = arith.addf %12, %14 : vector<16x96xf32>
      %16 = arith.truncf %15 : vector<16x96xf32> to vector<16x96xbf16>
      %c0_14 = arith.constant 0 : index
      %c0_15 = arith.constant 0 : index
      %17 = vector.load %arg6[%c0_14, %c0_15] : memref<16x96xbf16, #tpu.memory_space<vmem>>, vector<16x96xbf16>
      tpu.vector_store %arg6[%c0_14, %c0_15], %16 {strides = array<i32>} : memref<16x96xbf16, #tpu.memory_space<vmem>>, vector<16x96xbf16>,
    } else {
    }
    return
  }
  func.func @transform_0(%arg0: i32, %arg1: i32, %arg2: i32) -> (i32, i32) {
    %c0_i32 = arith.constant 0 : i32
    return %arg0, %arg2 : i32, i32
  }
  func.func @transform_1(%arg0: i32, %arg1: i32, %arg2: i32) -> (i32, i32) {
    %c0_i32 = arith.constant 0 : i32
    return %arg2, %arg1 : i32, i32
  }
  func.func @transform_2(%arg0: i32, %arg1: i32, %arg2: i32) -> (i32, i32) {
    %c0_i32 = arith.constant 0 : i32
    %c0_i32_0 = arith.constant 0 : i32
    return %c0_i32, %arg1 : i32, i32
  }
  func.func @transform_3(%arg0: i32, %arg1: i32, %arg2: i32) -> (i32, i32) {
    %c0_i32 = arith.constant 0 : i32
    return %arg0, %arg1 : i32, i32
  }
}

module attributes {stable_mosaic.version = 11 : i64} {
  func.func @_flash_attn_kernel(%arg0: i32, %arg1: i32, %arg2: i32, %arg3: memref<1x8x96xbf16, #tpu.memory_space<vmem>>, %arg4: memref<1x8x96xbf16, #tpu.memory_space<vmem>>, %arg5: memref<1x1x8xf32, #tpu.memory_space<vmem>>, %arg6: memref<1x8x32xbf16, #tpu.memory_space<vmem>>, %arg7: memref<8x32xf32, #tpu.memory_space<vmem>>, %arg8: memref<8x32xf32, #tpu.memory_space<vmem>>, %arg9: memref<8x32xf32, #tpu.memory_space<vmem>>) attributes {dimension_semantics = [#tpu.dimension_semantics<parallel>, #tpu.dimension_semantics<parallel>, #tpu.dimension_semantics<arbitrary>], iteration_bounds = array<i64: 2, 1, 1>, scalar_prefetch = 0 : i64, scratch_operands = 3 : i64, tpu.core_type = #tpu.core_type<tc>, window_params = [{transform_indices = @transform_0, window_bounds = array<i64: 1, 8, 96>}, {transform_indices = @transform_1, window_bounds = array<i64: 1, 8, 96>}, {transform_indices = @transform_2, window_bounds = array<i64: 1, 1, 8>}, {transform_indices = @transform_3, window_bounds = array<i64: 1, 8, 32>}]} {
    %c0_i32 = arith.constant 0 : i32
    %0 = arith.cmpi eq, %arg2, %c0_i32 : i32
    %1 = arith.extui %0 : i1 to i32
    %c0_i32_0 = arith.constant 0 : i32
    %2 = arith.cmpi ne, %1, %c0_i32_0 : i32
    scf.if %2 {
      %cst = arith.constant 0xFF800000 : f32
      %12 = vector.broadcast %cst : f32 to vector<8x32xf32>
      %c0 = arith.constant 0 : index
      %c0_5 = arith.constant 0 : index
      %13 = vector.load %arg7[%c0, %c0_5] : memref<8x32xf32, #tpu.memory_space<vmem>>, vector<8x32xf32>
      tpu.vector_store %arg7[%c0, %c0_5], %12 {strides = array<i32>} : memref<8x32xf32, #tpu.memory_space<vmem>>, vector<8x32xf32>,
      %cst_6 = arith.constant 0.000000e+00 : f32
      %14 = vector.broadcast %cst_6 : f32 to vector<8x32xf32>
      %c0_7 = arith.constant 0 : index
      %c0_8 = arith.constant 0 : index
      %15 = vector.load %arg8[%c0_7, %c0_8] : memref<8x32xf32, #tpu.memory_space<vmem>>, vector<8x32xf32>
      tpu.vector_store %arg8[%c0_7, %c0_8], %14 {strides = array<i32>} : memref<8x32xf32, #tpu.memory_space<vmem>>, vector<8x32xf32>,
      %cst_9 = arith.constant 0.000000e+00 : f32
      %16 = vector.broadcast %cst_9 : f32 to vector<8x32xf32>
      %c0_10 = arith.constant 0 : index
      %c0_11 = arith.constant 0 : index
      %17 = vector.load %arg9[%c0_10, %c0_11] : memref<8x32xf32, #tpu.memory_space<vmem>>, vector<8x32xf32>
      tpu.vector_store %arg9[%c0_10, %c0_11], %16 {strides = array<i32>} : memref<8x32xf32, #tpu.memory_space<vmem>>, vector<8x32xf32>,
    } else {
    }
    %c8_i32 = arith.constant 8 : i32
    %3 = arith.muli %arg2, %c8_i32 : i32
    %c8_i32_1 = arith.constant 8 : i32
    %4 = arith.muli %arg1, %c8_i32_1 : i32
    %c7_i32 = arith.constant 7 : i32
    %5 = arith.addi %4, %c7_i32 : i32
    %6 = arith.cmpi sle, %3, %5 : i32
    %7 = arith.extui %6 : i1 to i32
    %c0_i32_2 = arith.constant 0 : i32
    %8 = arith.cmpi ne, %7, %c0_i32_2 : i32
    scf.if %8 {
      %c8_i32_5 = arith.constant 8 : i32
      %12 = arith.muli %arg1, %c8_i32_5 : i32
      %13 = tpu.iota {dimensions = array<i32: 0>} : vector<8x8xi32>
      %14 = vector.broadcast %12 : i32 to vector<8x8xi32>
      %15 = arith.addi %14, %13 : vector<8x8xi32>
      %c8_i32_6 = arith.constant 8 : i32
      %16 = arith.muli %arg2, %c8_i32_6 : i32
      %17 = tpu.iota {dimensions = array<i32: 1>} : vector<8x8xi32>
      %18 = vector.broadcast %16 : i32 to vector<8x8xi32>
      %19 = arith.addi %18, %17 : vector<8x8xi32>
      %20 = arith.cmpi sge, %15, %19 : vector<8x8xi32>
      %cst = arith.constant 0.000000e+00 : f32
      %cst_7 = arith.constant -1.000000e+09 : f32
      %21 = vector.broadcast %cst : f32 to vector<8x8xf32>
      %22 = vector.broadcast %cst_7 : f32 to vector<8x8xf32>
      %23 = arith.select %20, %21, %22 : vector<8x8xi1>, vector<8x8xf32>
      %c0 = arith.constant 0 : index
      %c0_8 = arith.constant 0 : index
      %c0_9 = arith.constant 0 : index
      %24 = vector.load %arg5[%c0, %c0_8, %c0_9] : memref<1x1x8xf32, #tpu.memory_space<vmem>>, vector<1x1x8xf32>
      %25 = vector.shape_cast %24 : vector<1x1x8xf32> to vector<1x8xf32>
      %26 = vector.broadcast %25 : vector<1x8xf32> to vector<8x8xf32>
      %27 = arith.addf %23, %26 : vector<8x8xf32>
      %c0_10 = arith.constant 0 : index
      %c0_11 = arith.constant 0 : index
      %28 = vector.load %arg7[%c0_10, %c0_11] : memref<8x32xf32, #tpu.memory_space<vmem>>, vector<8x32xf32>
      %c0_12 = arith.constant 0 : index
      %c0_13 = arith.constant 0 : index
      %29 = vector.load %arg8[%c0_12, %c0_13] : memref<8x32xf32, #tpu.memory_space<vmem>>, vector<8x32xf32>
      %c0_14 = arith.constant 0 : index
      %c0_15 = arith.constant 0 : index
      %c0_16 = arith.constant 0 : index
      %30 = vector.load %arg3[%c0_14, %c0_15, %c0_16] : memref<1x8x96xbf16, #tpu.memory_space<vmem>>, vector<1x8x8xbf16>
      %31 = vector.shape_cast %30 : vector<1x8x8xbf16> to vector<8x8xbf16>
      %c0_17 = arith.constant 0 : index
      %c0_18 = arith.constant 0 : index
      %c32 = arith.constant 32 : index
      %32 = vector.load %arg4[%c0_17, %c0_18, %c32] : memref<1x8x96xbf16, #tpu.memory_space<vmem>>, vector<1x8x8xbf16>
      %33 = vector.shape_cast %32 : vector<1x8x8xbf16> to vector<8x8xbf16>
      %cst_19 = arith.constant dense<0.000000e+00> : vector<8x8xf32>
      %34 = tpu.matmul %31, %33, %cst_19 {dimension_numbers = #tpu.dot_dimension_numbers<[1], [1], [0], [0], [0, 0, 1, 0], [], []>} : vector<8x8xbf16>, vector<8x8xbf16>, vector<8x8xf32> -> vector<8x8xf32>
      %35 = arith.addf %34, %27 : vector<8x8xf32>
      %36 = vector.extract_strided_slice %28 {offsets = [0, 0], sizes = [8, 1], strides = [1, 1]} : vector<8x32xf32> to vector<8x1xf32>
      %cst_20 = arith.constant dense<0xFF800000> : vector<8xf32>
      %37 = vector.multi_reduction <maximumf>, %35, %cst_20 [1] : vector<8x8xf32> to vector<8xf32>
      %38 = vector.shape_cast %37 : vector<8xf32> to vector<8x1xf32>
      %39 = arith.maximumf %36, %38 : vector<8x1xf32>
      %40 = arith.subf %36, %39 : vector<8x1xf32>
      %41 = math.exp %40 : vector<8x1xf32>
      %42 = vector.broadcast %39 : vector<8x1xf32> to vector<8x8xf32>
      %43 = arith.subf %35, %42 : vector<8x8xf32>
      %44 = math.exp %43 : vector<8x8xf32>
      %45 = arith.truncf %44 : vector<8x8xf32> to vector<8x8xbf16>
      %c0_21 = arith.constant 0 : index
      %c0_22 = arith.constant 0 : index
      %c64 = arith.constant 64 : index
      %46 = vector.load %arg4[%c0_21, %c0_22, %c64] : memref<1x8x96xbf16, #tpu.memory_space<vmem>>, vector<1x8x8xbf16>
      %47 = vector.shape_cast %46 : vector<1x8x8xbf16> to vector<8x8xbf16>
      %cst_23 = arith.constant dense<0.000000e+00> : vector<8x8xf32>
      %48 = tpu.matmul %45, %47, %cst_23 {dimension_numbers = #tpu.dot_dimension_numbers<[1], [0], [0], [1], [0, 0, 1, 1], [], []>} : vector<8x8xbf16>, vector<8x8xbf16>, vector<8x8xf32> -> vector<8x8xf32>
      %49 = vector.shape_cast %39 : vector<8x1xf32> to vector<8x1xf32>
      %50 = vector.broadcast %49 : vector<8x1xf32> to vector<8x8xf32>
      %51 = vector.shape_cast %41 : vector<8x1xf32> to vector<8x1xf32>
      %52 = vector.broadcast %51 : vector<8x1xf32> to vector<8x8xf32>
      %cst_24 = arith.constant dense<0.000000e+00> : vector<8xf32>
      %53 = vector.multi_reduction <add>, %44, %cst_24 [1] : vector<8x8xf32> to vector<8xf32>
      %54 = vector.shape_cast %53 : vector<8xf32> to vector<8x1xf32>
      %55 = vector.shape_cast %54 : vector<8x1xf32> to vector<8x1xf32>
      %56 = vector.broadcast %55 : vector<8x1xf32> to vector<8x8xf32>
      %c0_25 = arith.constant 0 : index
      %c0_26 = arith.constant 0 : index
      %c8 = arith.constant 8 : index
      %57 = vector.load %arg3[%c0_25, %c0_26, %c8] : memref<1x8x96xbf16, #tpu.memory_space<vmem>>, vector<1x8x8xbf16>
      %58 = vector.shape_cast %57 : vector<1x8x8xbf16> to vector<8x8xbf16>
      %c0_27 = arith.constant 0 : index
      %c0_28 = arith.constant 0 : index
      %c40 = arith.constant 40 : index
      %59 = vector.load %arg4[%c0_27, %c0_28, %c40] : memref<1x8x96xbf16, #tpu.memory_space<vmem>>, vector<1x8x8xbf16>
      %60 = vector.shape_cast %59 : vector<1x8x8xbf16> to vector<8x8xbf16>
      %cst_29 = arith.constant dense<0.000000e+00> : vector<8x8xf32>
      %61 = tpu.matmul %58, %60, %cst_29 {dimension_numbers = #tpu.dot_dimension_numbers<[1], [1], [0], [0], [0, 0, 1, 0], [], []>} : vector<8x8xbf16>, vector<8x8xbf16>, vector<8x8xf32> -> vector<8x8xf32>
      %62 = arith.addf %61, %27 : vector<8x8xf32>
      %63 = vector.extract_strided_slice %28 {offsets = [0, 8], sizes = [8, 1], strides = [1, 1]} : vector<8x32xf32> to vector<8x1xf32>
      %cst_30 = arith.constant dense<0xFF800000> : vector<8xf32>
      %64 = vector.multi_reduction <maximumf>, %62, %cst_30 [1] : vector<8x8xf32> to vector<8xf32>
      %65 = vector.shape_cast %64 : vector<8xf32> to vector<8x1xf32>
      %66 = arith.maximumf %63, %65 : vector<8x1xf32>
      %67 = arith.subf %63, %66 : vector<8x1xf32>
      %68 = math.exp %67 : vector<8x1xf32>
      %69 = vector.broadcast %66 : vector<8x1xf32> to vector<8x8xf32>
      %70 = arith.subf %62, %69 : vector<8x8xf32>
      %71 = math.exp %70 : vector<8x8xf32>
      %72 = arith.truncf %71 : vector<8x8xf32> to vector<8x8xbf16>
      %c0_31 = arith.constant 0 : index
      %c0_32 = arith.constant 0 : index
      %c72 = arith.constant 72 : index
      %73 = vector.load %arg4[%c0_31, %c0_32, %c72] : memref<1x8x96xbf16, #tpu.memory_space<vmem>>, vector<1x8x8xbf16>
      %74 = vector.shape_cast %73 : vector<1x8x8xbf16> to vector<8x8xbf16>
      %cst_33 = arith.constant dense<0.000000e+00> : vector<8x8xf32>
      %75 = tpu.matmul %72, %74, %cst_33 {dimension_numbers = #tpu.dot_dimension_numbers<[1], [0], [0], [1], [0, 0, 1, 1], [], []>} : vector<8x8xbf16>, vector<8x8xbf16>, vector<8x8xf32> -> vector<8x8xf32>
      %76 = vector.shape_cast %66 : vector<8x1xf32> to vector<8x1xf32>
      %77 = vector.broadcast %76 : vector<8x1xf32> to vector<8x8xf32>
      %78 = vector.shape_cast %68 : vector<8x1xf32> to vector<8x1xf32>
      %79 = vector.broadcast %78 : vector<8x1xf32> to vector<8x8xf32>
      %cst_34 = arith.constant dense<0.000000e+00> : vector<8xf32>
      %80 = vector.multi_reduction <add>, %71, %cst_34 [1] : vector<8x8xf32> to vector<8xf32>
      %81 = vector.shape_cast %80 : vector<8xf32> to vector<8x1xf32>
      %82 = vector.shape_cast %81 : vector<8x1xf32> to vector<8x1xf32>
      %83 = vector.broadcast %82 : vector<8x1xf32> to vector<8x8xf32>
      %c0_35 = arith.constant 0 : index
      %c0_36 = arith.constant 0 : index
      %c16 = arith.constant 16 : index
      %84 = vector.load %arg3[%c0_35, %c0_36, %c16] : memref<1x8x96xbf16, #tpu.memory_space<vmem>>, vector<1x8x8xbf16>
      %85 = vector.shape_cast %84 : vector<1x8x8xbf16> to vector<8x8xbf16>
      %c0_37 = arith.constant 0 : index
      %c0_38 = arith.constant 0 : index
      %c48 = arith.constant 48 : index
      %86 = vector.load %arg4[%c0_37, %c0_38, %c48] : memref<1x8x96xbf16, #tpu.memory_space<vmem>>, vector<1x8x8xbf16>
      %87 = vector.shape_cast %86 : vector<1x8x8xbf16> to vector<8x8xbf16>
      %cst_39 = arith.constant dense<0.000000e+00> : vector<8x8xf32>
      %88 = tpu.matmul %85, %87, %cst_39 {dimension_numbers = #tpu.dot_dimension_numbers<[1], [1], [0], [0], [0, 0, 1, 0], [], []>} : vector<8x8xbf16>, vector<8x8xbf16>, vector<8x8xf32> -> vector<8x8xf32>
      %89 = arith.addf %88, %27 : vector<8x8xf32>
      %90 = vector.extract_strided_slice %28 {offsets = [0, 16], sizes = [8, 1], strides = [1, 1]} : vector<8x32xf32> to vector<8x1xf32>
      %cst_40 = arith.constant dense<0xFF800000> : vector<8xf32>
      %91 = vector.multi_reduction <maximumf>, %89, %cst_40 [1] : vector<8x8xf32> to vector<8xf32>
      %92 = vector.shape_cast %91 : vector<8xf32> to vector<8x1xf32>
      %93 = arith.maximumf %90, %92 : vector<8x1xf32>
      %94 = arith.subf %90, %93 : vector<8x1xf32>
      %95 = math.exp %94 : vector<8x1xf32>
      %96 = vector.broadcast %93 : vector<8x1xf32> to vector<8x8xf32>
      %97 = arith.subf %89, %96 : vector<8x8xf32>
      %98 = math.exp %97 : vector<8x8xf32>
      %99 = arith.truncf %98 : vector<8x8xf32> to vector<8x8xbf16>
      %c0_41 = arith.constant 0 : index
      %c0_42 = arith.constant 0 : index
      %c80 = arith.constant 80 : index
      %100 = vector.load %arg4[%c0_41, %c0_42, %c80] : memref<1x8x96xbf16, #tpu.memory_space<vmem>>, vector<1x8x8xbf16>
      %101 = vector.shape_cast %100 : vector<1x8x8xbf16> to vector<8x8xbf16>
      %cst_43 = arith.constant dense<0.000000e+00> : vector<8x8xf32>
      %102 = tpu.matmul %99, %101, %cst_43 {dimension_numbers = #tpu.dot_dimension_numbers<[1], [0], [0], [1], [0, 0, 1, 1], [], []>} : vector<8x8xbf16>, vector<8x8xbf16>, vector<8x8xf32> -> vector<8x8xf32>
      %103 = vector.shape_cast %93 : vector<8x1xf32> to vector<8x1xf32>
      %104 = vector.broadcast %103 : vector<8x1xf32> to vector<8x8xf32>
      %105 = vector.shape_cast %95 : vector<8x1xf32> to vector<8x1xf32>
      %106 = vector.broadcast %105 : vector<8x1xf32> to vector<8x8xf32>
      %cst_44 = arith.constant dense<0.000000e+00> : vector<8xf32>
      %107 = vector.multi_reduction <add>, %98, %cst_44 [1] : vector<8x8xf32> to vector<8xf32>
      %108 = vector.shape_cast %107 : vector<8xf32> to vector<8x1xf32>
      %109 = vector.shape_cast %108 : vector<8x1xf32> to vector<8x1xf32>
      %110 = vector.broadcast %109 : vector<8x1xf32> to vector<8x8xf32>
      %c0_45 = arith.constant 0 : index
      %c0_46 = arith.constant 0 : index
      %c24 = arith.constant 24 : index
      %111 = vector.load %arg3[%c0_45, %c0_46, %c24] : memref<1x8x96xbf16, #tpu.memory_space<vmem>>, vector<1x8x8xbf16>
      %112 = vector.shape_cast %111 : vector<1x8x8xbf16> to vector<8x8xbf16>
      %c0_47 = arith.constant 0 : index
      %c0_48 = arith.constant 0 : index
      %c56 = arith.constant 56 : index
      %113 = vector.load %arg4[%c0_47, %c0_48, %c56] : memref<1x8x96xbf16, #tpu.memory_space<vmem>>, vector<1x8x8xbf16>
      %114 = vector.shape_cast %113 : vector<1x8x8xbf16> to vector<8x8xbf16>
      %cst_49 = arith.constant dense<0.000000e+00> : vector<8x8xf32>
      %115 = tpu.matmul %112, %114, %cst_49 {dimension_numbers = #tpu.dot_dimension_numbers<[1], [1], [0], [0], [0, 0, 1, 0], [], []>} : vector<8x8xbf16>, vector<8x8xbf16>, vector<8x8xf32> -> vector<8x8xf32>
      %116 = arith.addf %115, %27 : vector<8x8xf32>
      %117 = vector.extract_strided_slice %28 {offsets = [0, 24], sizes = [8, 1], strides = [1, 1]} : vector<8x32xf32> to vector<8x1xf32>
      %cst_50 = arith.constant dense<0xFF800000> : vector<8xf32>
      %118 = vector.multi_reduction <maximumf>, %116, %cst_50 [1] : vector<8x8xf32> to vector<8xf32>
      %119 = vector.shape_cast %118 : vector<8xf32> to vector<8x1xf32>
      %120 = arith.maximumf %117, %119 : vector<8x1xf32>
      %121 = arith.subf %117, %120 : vector<8x1xf32>
      %122 = math.exp %121 : vector<8x1xf32>
      %123 = vector.broadcast %120 : vector<8x1xf32> to vector<8x8xf32>
      %124 = arith.subf %116, %123 : vector<8x8xf32>
      %125 = math.exp %124 : vector<8x8xf32>
      %126 = arith.truncf %125 : vector<8x8xf32> to vector<8x8xbf16>
      %c0_51 = arith.constant 0 : index
      %c0_52 = arith.constant 0 : index
      %c88 = arith.constant 88 : index
      %127 = vector.load %arg4[%c0_51, %c0_52, %c88] : memref<1x8x96xbf16, #tpu.memory_space<vmem>>, vector<1x8x8xbf16>
      %128 = vector.shape_cast %127 : vector<1x8x8xbf16> to vector<8x8xbf16>
      %cst_53 = arith.constant dense<0.000000e+00> : vector<8x8xf32>
      %129 = tpu.matmul %126, %128, %cst_53 {dimension_numbers = #tpu.dot_dimension_numbers<[1], [0], [0], [1], [0, 0, 1, 1], [], []>} : vector<8x8xbf16>, vector<8x8xbf16>, vector<8x8xf32> -> vector<8x8xf32>
      %130 = vector.shape_cast %120 : vector<8x1xf32> to vector<8x1xf32>
      %131 = vector.broadcast %130 : vector<8x1xf32> to vector<8x8xf32>
      %132 = vector.shape_cast %122 : vector<8x1xf32> to vector<8x1xf32>
      %133 = vector.broadcast %132 : vector<8x1xf32> to vector<8x8xf32>
      %cst_54 = arith.constant dense<0.000000e+00> : vector<8xf32>
      %134 = vector.multi_reduction <add>, %125, %cst_54 [1] : vector<8x8xf32> to vector<8xf32>
      %135 = vector.shape_cast %134 : vector<8xf32> to vector<8x1xf32>
      %136 = vector.shape_cast %135 : vector<8x1xf32> to vector<8x1xf32>
      %137 = vector.broadcast %136 : vector<8x1xf32> to vector<8x8xf32>
      %138 = tpu.concatenate %52, %79, %106, %133 in 1 : vector<8x8xf32>, vector<8x8xf32>, vector<8x8xf32>, vector<8x8xf32> -> vector<8x32xf32>
      %139 = tpu.concatenate %50, %77, %104, %131 in 1 : vector<8x8xf32>, vector<8x8xf32>, vector<8x8xf32>, vector<8x8xf32> -> vector<8x32xf32>
      %c0_55 = arith.constant 0 : index
      %c0_56 = arith.constant 0 : index
      %140 = vector.load %arg7[%c0_55, %c0_56] : memref<8x32xf32, #tpu.memory_space<vmem>>, vector<8x32xf32>
      tpu.vector_store %arg7[%c0_55, %c0_56], %139 {strides = array<i32>} : memref<8x32xf32, #tpu.memory_space<vmem>>, vector<8x32xf32>,
      %141 = arith.mulf %138, %29 : vector<8x32xf32>
      %142 = tpu.concatenate %56, %83, %110, %137 in 1 : vector<8x8xf32>, vector<8x8xf32>, vector<8x8xf32>, vector<8x8xf32> -> vector<8x32xf32>
      %143 = arith.addf %141, %142 : vector<8x32xf32>
      %c0_57 = arith.constant 0 : index
      %c0_58 = arith.constant 0 : index
      %144 = vector.load %arg8[%c0_57, %c0_58] : memref<8x32xf32, #tpu.memory_space<vmem>>, vector<8x32xf32>
      tpu.vector_store %arg8[%c0_57, %c0_58], %143 {strides = array<i32>} : memref<8x32xf32, #tpu.memory_space<vmem>>, vector<8x32xf32>,
      %c0_59 = arith.constant 0 : index
      %c0_60 = arith.constant 0 : index
      %145 = vector.load %arg9[%c0_59, %c0_60] : memref<8x32xf32, #tpu.memory_space<vmem>>, vector<8x32xf32>
      %146 = arith.mulf %138, %145 : vector<8x32xf32>
      %147 = tpu.concatenate %48, %75, %102, %129 in 1 : vector<8x8xf32>, vector<8x8xf32>, vector<8x8xf32>, vector<8x8xf32> -> vector<8x32xf32>
      %148 = arith.addf %146, %147 : vector<8x32xf32>
      %c0_61 = arith.constant 0 : index
      %c0_62 = arith.constant 0 : index
      %149 = vector.load %arg9[%c0_61, %c0_62] : memref<8x32xf32, #tpu.memory_space<vmem>>, vector<8x32xf32>
      tpu.vector_store %arg9[%c0_61, %c0_62], %148 {strides = array<i32>} : memref<8x32xf32, #tpu.memory_space<vmem>>, vector<8x32xf32>,
    } else {
    }
    %c0_i32_3 = arith.constant 0 : i32
    %9 = arith.cmpi eq, %arg2, %c0_i32_3 : i32
    %10 = arith.extui %9 : i1 to i32
    %c0_i32_4 = arith.constant 0 : i32
    %11 = arith.cmpi ne, %10, %c0_i32_4 : i32
    scf.if %11 {
      %c0 = arith.constant 0 : index
      %c0_5 = arith.constant 0 : index
      %12 = vector.load %arg9[%c0, %c0_5] : memref<8x32xf32, #tpu.memory_space<vmem>>, vector<8x32xf32>
      %c0_6 = arith.constant 0 : index
      %c0_7 = arith.constant 0 : index
      %13 = vector.load %arg8[%c0_6, %c0_7] : memref<8x32xf32, #tpu.memory_space<vmem>>, vector<8x32xf32>
      %14 = arith.divf %12, %13 : vector<8x32xf32>
      %15 = arith.truncf %14 : vector<8x32xf32> to vector<8x32xbf16>
      %c0_8 = arith.constant 0 : index
      %c0_9 = arith.constant 0 : index
      %c0_10 = arith.constant 0 : index
      %16 = vector.load %arg6[%c0_8, %c0_9, %c0_10] : memref<1x8x32xbf16, #tpu.memory_space<vmem>>, vector<1x8x32xbf16>
      %17 = vector.shape_cast %16 : vector<1x8x32xbf16> to vector<8x32xbf16>
      %18 = vector.shape_cast %15 : vector<8x32xbf16> to vector<1x8x32xbf16>
      tpu.vector_store %arg6[%c0_8, %c0_9, %c0_10], %18 {strides = array<i32>} : memref<1x8x32xbf16, #tpu.memory_space<vmem>>, vector<1x8x32xbf16>,
    } else {
    }
    return
  }
  func.func @transform_0(%arg0: i32, %arg1: i32, %arg2: i32) -> (i32, i32, i32) {
    %c0_i32 = arith.constant 0 : i32
    %c0_i32_0 = arith.constant 0 : i32
    return %arg0, %arg1, %c0_i32 : i32, i32, i32
  }
  func.func @transform_1(%arg0: i32, %arg1: i32, %arg2: i32) -> (i32, i32, i32) {
    %c0_i32 = arith.constant 0 : i32
    %c0_i32_0 = arith.constant 0 : i32
    return %arg0, %arg2, %c0_i32 : i32, i32, i32
  }
  func.func @transform_2(%arg0: i32, %arg1: i32, %arg2: i32) -> (i32, i32, i32) {
    %c0_i32 = arith.constant 0 : i32
    %c0_i32_0 = arith.constant 0 : i32
    return %arg0, %c0_i32, %arg2 : i32, i32, i32
  }
  func.func @transform_3(%arg0: i32, %arg1: i32, %arg2: i32) -> (i32, i32, i32) {
    %c0_i32 = arith.constant 0 : i32
    %c0_i32_0 = arith.constant 0 : i32
    return %arg0, %arg1, %c0_i32 : i32, i32, i32
  }
}

module attributes {stable_mosaic.version = 11 : i64} {
  func.func @_matmul_kernel(%arg0: i32, %arg1: i32, %arg2: i32, %arg3: memref<16x32xbf16, #tpu.memory_space<vmem>>, %arg4: memref<32x32xbf16, #tpu.memory_space<vmem>>, %arg5: memref<1x32xf32, #tpu.memory_space<vmem>>, %arg6: memref<16x32xbf16, #tpu.memory_space<vmem>>, %arg7: memref<16x32xf32, #tpu.memory_space<vmem>>) attributes {dimension_semantics = [#tpu.dimension_semantics<parallel>, #tpu.dimension_semantics<parallel>, #tpu.dimension_semantics<arbitrary>], iteration_bounds = array<i64: 1, 1, 1>, scalar_prefetch = 0 : i64, scratch_operands = 1 : i64, tpu.core_type = #tpu.core_type<tc>, window_params = [{transform_indices = @transform_0, window_bounds = array<i64: 16, 32>}, {transform_indices = @transform_1, window_bounds = array<i64: 32, 32>}, {transform_indices = @transform_2, window_bounds = array<i64: 1, 32>}, {transform_indices = @transform_3, window_bounds = array<i64: 16, 32>}]} {
    %c0_i32 = arith.constant 0 : i32
    %0 = arith.cmpi eq, %arg2, %c0_i32 : i32
    %1 = arith.extui %0 : i1 to i32
    %c0_i32_0 = arith.constant 0 : i32
    %2 = arith.cmpi ne, %1, %c0_i32_0 : i32
    scf.if %2 {
      %cst_10 = arith.constant 0.000000e+00 : f32
      %12 = vector.broadcast %cst_10 : f32 to vector<16x32xf32>
      %c0_11 = arith.constant 0 : index
      %c0_12 = arith.constant 0 : index
      %13 = vector.load %arg7[%c0_11, %c0_12] : memref<16x32xf32, #tpu.memory_space<vmem>>, vector<16x32xf32>
      tpu.vector_store %arg7[%c0_11, %c0_12], %12 {strides = array<i32>} : memref<16x32xf32, #tpu.memory_space<vmem>>, vector<16x32xf32>,
    } else {
    }
    %c0 = arith.constant 0 : index
    %c0_1 = arith.constant 0 : index
    %3 = vector.load %arg7[%c0, %c0_1] : memref<16x32xf32, #tpu.memory_space<vmem>>, vector<16x32xf32>
    %c0_2 = arith.constant 0 : index
    %c0_3 = arith.constant 0 : index
    %4 = vector.load %arg3[%c0_2, %c0_3] : memref<16x32xbf16, #tpu.memory_space<vmem>>, vector<16x32xbf16>
    %c0_4 = arith.constant 0 : index
    %c0_5 = arith.constant 0 : index
    %5 = vector.load %arg4[%c0_4, %c0_5] : memref<32x32xbf16, #tpu.memory_space<vmem>>, vector<32x32xbf16>
    %cst = arith.constant dense<0.000000e+00> : vector<16x32xf32>
    %6 = tpu.matmul %4, %5, %cst {dimension_numbers = #tpu.dot_dimension_numbers<[1], [0], [0], [1], [0, 0, 1, 1], [], []>} : vector<16x32xbf16>, vector<32x32xbf16>, vector<16x32xf32> -> vector<16x32xf32>
    %7 = arith.addf %3, %6 : vector<16x32xf32>
    %c0_6 = arith.constant 0 : index
    %c0_7 = arith.constant 0 : index
    %8 = vector.load %arg7[%c0_6, %c0_7] : memref<16x32xf32, #tpu.memory_space<vmem>>, vector<16x32xf32>
    tpu.vector_store %arg7[%c0_6, %c0_7], %7 {strides = array<i32>} : memref<16x32xf32, #tpu.memory_space<vmem>>, vector<16x32xf32>,
    %c0_i32_8 = arith.constant 0 : i32
    %9 = arith.cmpi eq, %arg2, %c0_i32_8 : i32
    %10 = arith.extui %9 : i1 to i32
    %c0_i32_9 = arith.constant 0 : i32
    %11 = arith.cmpi ne, %10, %c0_i32_9 : i32
    scf.if %11 {
      %c0_10 = arith.constant 0 : index
      %c0_11 = arith.constant 0 : index
      %12 = vector.load %arg7[%c0_10, %c0_11] : memref<16x32xf32, #tpu.memory_space<vmem>>, vector<16x32xf32>
      %c0_12 = arith.constant 0 : index
      %c0_13 = arith.constant 0 : index
      %13 = vector.load %arg5[%c0_12, %c0_13] : memref<1x32xf32, #tpu.memory_space<vmem>>, vector<1x32xf32>
      %14 = vector.broadcast %13 : vector<1x32xf32> to vector<16x32xf32>
      %15 = arith.addf %12, %14 : vector<16x32xf32>
      %16 = arith.truncf %15 : vector<16x32xf32> to vector<16x32xbf16>
      %c0_14 = arith.constant 0 : index
      %c0_15 = arith.constant 0 : index
      %17 = vector.load %arg6[%c0_14, %c0_15] : memref<16x32xbf16, #tpu.memory_space<vmem>>, vector<16x32xbf16>
      tpu.vector_store %arg6[%c0_14, %c0_15], %16 {strides = array<i32>} : memref<16x32xbf16, #tpu.memory_space<vmem>>, vector<16x32xbf16>,
    } else {
    }
    return
  }
  func.func @transform_0(%arg0: i32, %arg1: i32, %arg2: i32) -> (i32, i32) {
    %c0_i32 = arith.constant 0 : i32
    return %arg0, %arg2 : i32, i32
  }
  func.func @transform_1(%arg0: i32, %arg1: i32, %arg2: i32) -> (i32, i32) {
    %c0_i32 = arith.constant 0 : i32
    return %arg2, %arg1 : i32, i32
  }
  func.func @transform_2(%arg0: i32, %arg1: i32, %arg2: i32) -> (i32, i32) {
    %c0_i32 = arith.constant 0 : i32
    %c0_i32_0 = arith.constant 0 : i32
    return %c0_i32, %arg1 : i32, i32
  }
  func.func @transform_3(%arg0: i32, %arg1: i32, %arg2: i32) -> (i32, i32) {
    %c0_i32 = arith.constant 0 : i32
    return %arg0, %arg1 : i32, i32
  }
}

module attributes {stable_mosaic.version = 11 : i64} {
  func.func @_matmul_kernel(%arg0: i32, %arg1: i32, %arg2: i32, %arg3: memref<32x32xbf16, #tpu.memory_space<vmem>>, %arg4: memref<32x64xbf16, #tpu.memory_space<vmem>>, %arg5: memref<1x64xf32, #tpu.memory_space<vmem>>, %arg6: memref<32x64xbf16, #tpu.memory_space<vmem>>, %arg7: memref<32x64xf32, #tpu.memory_space<vmem>>) attributes {dimension_semantics = [#tpu.dimension_semantics<parallel>, #tpu.dimension_semantics<parallel>, #tpu.dimension_semantics<arbitrary>], iteration_bounds = array<i64: 1, 1, 1>, scalar_prefetch = 0 : i64, scratch_operands = 1 : i64, tpu.core_type = #tpu.core_type<tc>, window_params = [{transform_indices = @transform_0, window_bounds = array<i64: 32, 32>}, {transform_indices = @transform_1, window_bounds = array<i64: 32, 64>}, {transform_indices = @transform_2, window_bounds = array<i64: 1, 64>}, {transform_indices = @transform_3, window_bounds = array<i64: 32, 64>}]} {
    %c0_i32 = arith.constant 0 : i32
    %0 = arith.cmpi eq, %arg2, %c0_i32 : i32
    %1 = arith.extui %0 : i1 to i32
    %c0_i32_0 = arith.constant 0 : i32
    %2 = arith.cmpi ne, %1, %c0_i32_0 : i32
    scf.if %2 {
      %cst_10 = arith.constant 0.000000e+00 : f32
      %12 = vector.broadcast %cst_10 : f32 to vector<32x64xf32>
      %c0_11 = arith.constant 0 : index
      %c0_12 = arith.constant 0 : index
      %13 = vector.load %arg7[%c0_11, %c0_12] : memref<32x64xf32, #tpu.memory_space<vmem>>, vector<32x64xf32>
      tpu.vector_store %arg7[%c0_11, %c0_12], %12 {strides = array<i32>} : memref<32x64xf32, #tpu.memory_space<vmem>>, vector<32x64xf32>,
    } else {
    }
    %c0 = arith.constant 0 : index
    %c0_1 = arith.constant 0 : index
    %3 = vector.load %arg7[%c0, %c0_1] : memref<32x64xf32, #tpu.memory_space<vmem>>, vector<32x64xf32>
    %c0_2 = arith.constant 0 : index
    %c0_3 = arith.constant 0 : index
    %4 = vector.load %arg3[%c0_2, %c0_3] : memref<32x32xbf16, #tpu.memory_space<vmem>>, vector<32x32xbf16>
    %c0_4 = arith.constant 0 : index
    %c0_5 = arith.constant 0 : index
    %5 = vector.load %arg4[%c0_4, %c0_5] : memref<32x64xbf16, #tpu.memory_space<vmem>>, vector<32x64xbf16>
    %cst = arith.constant dense<0.000000e+00> : vector<32x64xf32>
    %6 = tpu.matmul %4, %5, %cst {dimension_numbers = #tpu.dot_dimension_numbers<[1], [0], [0], [1], [0, 0, 1, 1], [], []>} : vector<32x32xbf16>, vector<32x64xbf16>, vector<32x64xf32> -> vector<32x64xf32>
    %7 = arith.addf %3, %6 : vector<32x64xf32>
    %c0_6 = arith.constant 0 : index
    %c0_7 = arith.constant 0 : index
    %8 = vector.load %arg7[%c0_6, %c0_7] : memref<32x64xf32, #tpu.memory_space<vmem>>, vector<32x64xf32>
    tpu.vector_store %arg7[%c0_6, %c0_7], %7 {strides = array<i32>} : memref<32x64xf32, #tpu.memory_space<vmem>>, vector<32x64xf32>,
    %c0_i32_8 = arith.constant 0 : i32
    %9 = arith.cmpi eq, %arg2, %c0_i32_8 : i32
    %10 = arith.extui %9 : i1 to i32
    %c0_i32_9 = arith.constant 0 : i32
    %11 = arith.cmpi ne, %10, %c0_i32_9 : i32
    scf.if %11 {
      %c0_10 = arith.constant 0 : index
      %c0_11 = arith.constant 0 : index
      %12 = vector.load %arg7[%c0_10, %c0_11] : memref<32x64xf32, #tpu.memory_space<vmem>>, vector<32x64xf32>
      %c0_12 = arith.constant 0 : index
      %c0_13 = arith.constant 0 : index
      %13 = vector.load %arg5[%c0_12, %c0_13] : memref<1x64xf32, #tpu.memory_space<vmem>>, vector<1x64xf32>
      %14 = vector.broadcast %13 : vector<1x64xf32> to vector<32x64xf32>
      %15 = arith.addf %12, %14 : vector<32x64xf32>
      %16 = arith.truncf %15 : vector<32x64xf32> to vector<32x64xbf16>
      %c0_14 = arith.constant 0 : index
      %c0_15 = arith.constant 0 : index
      %17 = vector.load %arg6[%c0_14, %c0_15] : memref<32x64xbf16, #tpu.memory_space<vmem>>, vector<32x64xbf16>
      tpu.vector_store %arg6[%c0_14, %c0_15], %16 {strides = array<i32>} : memref<32x64xbf16, #tpu.memory_space<vmem>>, vector<32x64xbf16>,
    } else {
    }
    return
  }
  func.func @transform_0(%arg0: i32, %arg1: i32, %arg2: i32) -> (i32, i32) {
    %c0_i32 = arith.constant 0 : i32
    return %arg0, %arg2 : i32, i32
  }
  func.func @transform_1(%arg0: i32, %arg1: i32, %arg2: i32) -> (i32, i32) {
    %c0_i32 = arith.constant 0 : i32
    return %arg2, %arg1 : i32, i32
  }
  func.func @transform_2(%arg0: i32, %arg1: i32, %arg2: i32) -> (i32, i32) {
    %c0_i32 = arith.constant 0 : i32
    %c0_i32_0 = arith.constant 0 : i32
    return %c0_i32, %arg1 : i32, i32
  }
  func.func @transform_3(%arg0: i32, %arg1: i32, %arg2: i32) -> (i32, i32) {
    %c0_i32 = arith.constant 0 : i32
    return %arg0, %arg1 : i32, i32
  }
}

module attributes {stable_mosaic.version = 11 : i64} {
  func.func @_matmul_kernel(%arg0: i32, %arg1: i32, %arg2: i32, %arg3: memref<16x32xbf16, #tpu.memory_space<vmem>>, %arg4: memref<32x32xbf16, #tpu.memory_space<vmem>>, %arg5: memref<1x32xf32, #tpu.memory_space<vmem>>, %arg6: memref<16x32xbf16, #tpu.memory_space<vmem>>, %arg7: memref<16x32xbf16, #tpu.memory_space<vmem>>, %arg8: memref<16x32xf32, #tpu.memory_space<vmem>>) attributes {dimension_semantics = [#tpu.dimension_semantics<parallel>, #tpu.dimension_semantics<parallel>, #tpu.dimension_semantics<arbitrary>], iteration_bounds = array<i64: 1, 1, 1>, scalar_prefetch = 0 : i64, scratch_operands = 1 : i64, tpu.core_type = #tpu.core_type<tc>, window_params = [{transform_indices = @transform_0, window_bounds = array<i64: 16, 32>}, {transform_indices = @transform_1, window_bounds = array<i64: 32, 32>}, {transform_indices = @transform_2, window_bounds = array<i64: 1, 32>}, {transform_indices = @transform_3, window_bounds = array<i64: 16, 32>}, {transform_indices = @transform_4, window_bounds = array<i64: 16, 32>}]} {
    %c0_i32 = arith.constant 0 : i32
    %0 = arith.cmpi eq, %arg2, %c0_i32 : i32
    %1 = arith.extui %0 : i1 to i32
    %c0_i32_0 = arith.constant 0 : i32
    %2 = arith.cmpi ne, %1, %c0_i32_0 : i32
    scf.if %2 {
      %cst_10 = arith.constant 0.000000e+00 : f32
      %12 = vector.broadcast %cst_10 : f32 to vector<16x32xf32>
      %c0_11 = arith.constant 0 : index
      %c0_12 = arith.constant 0 : index
      %13 = vector.load %arg8[%c0_11, %c0_12] : memref<16x32xf32, #tpu.memory_space<vmem>>, vector<16x32xf32>
      tpu.vector_store %arg8[%c0_11, %c0_12], %12 {strides = array<i32>} : memref<16x32xf32, #tpu.memory_space<vmem>>, vector<16x32xf32>,
    } else {
    }
    %c0 = arith.constant 0 : index
    %c0_1 = arith.constant 0 : index
    %3 = vector.load %arg8[%c0, %c0_1] : memref<16x32xf32, #tpu.memory_space<vmem>>, vector<16x32xf32>
    %c0_2 = arith.constant 0 : index
    %c0_3 = arith.constant 0 : index
    %4 = vector.load %arg3[%c0_2, %c0_3] : memref<16x32xbf16, #tpu.memory_space<vmem>>, vector<16x32xbf16>
    %c0_4 = arith.constant 0 : index
    %c0_5 = arith.constant 0 : index
    %5 = vector.load %arg4[%c0_4, %c0_5] : memref<32x32xbf16, #tpu.memory_space<vmem>>, vector<32x32xbf16>
    %cst = arith.constant dense<0.000000e+00> : vector<16x32xf32>
    %6 = tpu.matmul %4, %5, %cst {dimension_numbers = #tpu.dot_dimension_numbers<[1], [0], [0], [1], [0, 0, 1, 1], [], []>} : vector<16x32xbf16>, vector<32x32xbf16>, vector<16x32xf32> -> vector<16x32xf32>
    %7 = arith.addf %3, %6 : vector<16x32xf32>
    %c0_6 = arith.constant 0 : index
    %c0_7 = arith.constant 0 : index
    %8 = vector.load %arg8[%c0_6, %c0_7] : memref<16x32xf32, #tpu.memory_space<vmem>>, vector<16x32xf32>
    tpu.vector_store %arg8[%c0_6, %c0_7], %7 {strides = array<i32>} : memref<16x32xf32, #tpu.memory_space<vmem>>, vector<16x32xf32>,
    %c0_i32_8 = arith.constant 0 : i32
    %9 = arith.cmpi eq, %arg2, %c0_i32_8 : i32
    %10 = arith.extui %9 : i1 to i32
    %c0_i32_9 = arith.constant 0 : i32
    %11 = arith.cmpi ne, %10, %c0_i32_9 : i32
    scf.if %11 {
      %c0_10 = arith.constant 0 : index
      %c0_11 = arith.constant 0 : index
      %12 = vector.load %arg8[%c0_10, %c0_11] : memref<16x32xf32, #tpu.memory_space<vmem>>, vector<16x32xf32>
      %c0_12 = arith.constant 0 : index
      %c0_13 = arith.constant 0 : index
      %13 = vector.load %arg5[%c0_12, %c0_13] : memref<1x32xf32, #tpu.memory_space<vmem>>, vector<1x32xf32>
      %14 = vector.broadcast %13 : vector<1x32xf32> to vector<16x32xf32>
      %15 = arith.addf %12, %14 : vector<16x32xf32>
      %c0_14 = arith.constant 0 : index
      %c0_15 = arith.constant 0 : index
      %16 = vector.load %arg6[%c0_14, %c0_15] : memref<16x32xbf16, #tpu.memory_space<vmem>>, vector<16x32xbf16>
      %17 = arith.extf %16 : vector<16x32xbf16> to vector<16x32xf32>
      %18 = arith.addf %15, %17 : vector<16x32xf32>
      %19 = arith.truncf %18 : vector<16x32xf32> to vector<16x32xbf16>
      %c0_16 = arith.constant 0 : index
      %c0_17 = arith.constant 0 : index
      %20 = vector.load %arg7[%c0_16, %c0_17] : memref<16x32xbf16, #tpu.memory_space<vmem>>, vector<16x32xbf16>
      tpu.vector_store %arg7[%c0_16, %c0_17], %19 {strides = array<i32>} : memref<16x32xbf16, #tpu.memory_space<vmem>>, vector<16x32xbf16>,
    } else {
    }
    return
  }
  func.func @transform_0(%arg0: i32, %arg1: i32, %arg2: i32) -> (i32, i32) {
    %c0_i32 = arith.constant 0 : i32
    return %arg0, %arg2 : i32, i32
  }
  func.func @transform_1(%arg0: i32, %arg1: i32, %arg2: i32) -> (i32, i32) {
    %c0_i32 = arith.constant 0 : i32
    return %arg2, %arg1 : i32, i32
  }
  func.func @transform_2(%arg0: i32, %arg1: i32, %arg2: i32) -> (i32, i32) {
    %c0_i32 = arith.constant 0 : i32
    %c0_i32_0 = arith.constant 0 : i32
    return %c0_i32, %arg1 : i32, i32
  }
  func.func @transform_3(%arg0: i32, %arg1: i32, %arg2: i32) -> (i32, i32) {
    %c0_i32 = arith.constant 0 : i32
    return %arg0, %arg1 : i32, i32
  }
  func.func @transform_4(%arg0: i32, %arg1: i32, %arg2: i32) -> (i32, i32) {
    %c0_i32 = arith.constant 0 : i32
    return %arg0, %arg1 : i32, i32
  }
}

module attributes {stable_mosaic.version = 11 : i64} {
  func.func @_flash_attn_kernel(%arg0: i32, %arg1: i32, %arg2: i32, %arg3: memref<1x8x32xbf16, #tpu.memory_space<vmem>>, %arg4: memref<1x16x64xbf16, #tpu.memory_space<vmem>>, %arg5: memref<1x8x32xbf16, #tpu.memory_space<vmem>>, %arg6: memref<8x32xf32, #tpu.memory_space<vmem>>, %arg7: memref<8x32xf32, #tpu.memory_space<vmem>>, %arg8: memref<8x32xf32, #tpu.memory_space<vmem>>) attributes {dimension_semantics = [#tpu.dimension_semantics<parallel>, #tpu.dimension_semantics<parallel>, #tpu.dimension_semantics<arbitrary>], iteration_bounds = array<i64: 2, 1, 1>, scalar_prefetch = 0 : i64, scratch_operands = 3 : i64, tpu.core_type = #tpu.core_type<tc>, window_params = [{transform_indices = @transform_0, window_bounds = array<i64: 1, 8, 32>}, {transform_indices = @transform_1, window_bounds = array<i64: 1, 16, 64>}, {transform_indices = @transform_2, window_bounds = array<i64: 1, 8, 32>}]} {
    %c0_i32 = arith.constant 0 : i32
    %0 = arith.cmpi eq, %arg2, %c0_i32 : i32
    %1 = arith.extui %0 : i1 to i32
    %c0_i32_0 = arith.constant 0 : i32
    %2 = arith.cmpi ne, %1, %c0_i32_0 : i32
    scf.if %2 {
      %cst_58 = arith.constant 0xFF800000 : f32
      %124 = vector.broadcast %cst_58 : f32 to vector<8x32xf32>
      %c0_59 = arith.constant 0 : index
      %c0_60 = arith.constant 0 : index
      %125 = vector.load %arg6[%c0_59, %c0_60] : memref<8x32xf32, #tpu.memory_space<vmem>>, vector<8x32xf32>
      tpu.vector_store %arg6[%c0_59, %c0_60], %124 {strides = array<i32>} : memref<8x32xf32, #tpu.memory_space<vmem>>, vector<8x32xf32>,
      %cst_61 = arith.constant 0.000000e+00 : f32
      %126 = vector.broadcast %cst_61 : f32 to vector<8x32xf32>
      %c0_62 = arith.constant 0 : index
      %c0_63 = arith.constant 0 : index
      %127 = vector.load %arg7[%c0_62, %c0_63] : memref<8x32xf32, #tpu.memory_space<vmem>>, vector<8x32xf32>
      tpu.vector_store %arg7[%c0_62, %c0_63], %126 {strides = array<i32>} : memref<8x32xf32, #tpu.memory_space<vmem>>, vector<8x32xf32>,
      %cst_64 = arith.constant 0.000000e+00 : f32
      %128 = vector.broadcast %cst_64 : f32 to vector<8x32xf32>
      %c0_65 = arith.constant 0 : index
      %c0_66 = arith.constant 0 : index
      %129 = vector.load %arg8[%c0_65, %c0_66] : memref<8x32xf32, #tpu.memory_space<vmem>>, vector<8x32xf32>
      tpu.vector_store %arg8[%c0_65, %c0_66], %128 {strides = array<i32>} : memref<8x32xf32, #tpu.memory_space<vmem>>, vector<8x32xf32>,
    } else {
    }
    %c0 = arith.constant 0 : index
    %c0_1 = arith.constant 0 : index
    %3 = vector.load %arg6[%c0, %c0_1] : memref<8x32xf32, #tpu.memory_space<vmem>>, vector<8x32xf32>
    %c0_2 = arith.constant 0 : index
    %c0_3 = arith.constant 0 : index
    %4 = vector.load %arg7[%c0_2, %c0_3] : memref<8x32xf32, #tpu.memory_space<vmem>>, vector<8x32xf32>
    %c0_4 = arith.constant 0 : index
    %c0_5 = arith.constant 0 : index
    %c0_6 = arith.constant 0 : index
    %5 = vector.load %arg3[%c0_4, %c0_5, %c0_6] : memref<1x8x32xbf16, #tpu.memory_space<vmem>>, vector<1x8x8xbf16>
    %6 = vector.shape_cast %5 : vector<1x8x8xbf16> to vector<8x8xbf16>
    %c0_7 = arith.constant 0 : index
    %c0_8 = arith.constant 0 : index
    %c0_9 = arith.constant 0 : index
    %7 = vector.load %arg4[%c0_7, %c0_8, %c0_9] : memref<1x16x64xbf16, #tpu.memory_space<vmem>>, vector<1x16x8xbf16>
    %8 = vector.shape_cast %7 : vector<1x16x8xbf16> to vector<16x8xbf16>
    %cst = arith.constant dense<0.000000e+00> : vector<8x16xf32>
    %9 = tpu.matmul %6, %8, %cst {dimension_numbers = #tpu.dot_dimension_numbers<[1], [1], [0], [0], [0, 0, 1, 0], [], []>} : vector<8x8xbf16>, vector<16x8xbf16>, vector<8x16xf32> -> vector<8x16xf32>
    %10 = vector.extract_strided_slice %3 {offsets = [0, 0], sizes = [8, 1], strides = [1, 1]} : vector<8x32xf32> to vector<8x1xf32>
    %cst_10 = arith.constant dense<0xFF800000> : vector<8xf32>
    %11 = vector.multi_reduction <maximumf>, %9, %cst_10 [1] : vector<8x16xf32> to vector<8xf32>
    %12 = vector.shape_cast %11 : vector<8xf32> to vector<8x1xf32>
    %13 = arith.maximumf %10, %12 : vector<8x1xf32>
    %14 = arith.subf %10, %13 : vector<8x1xf32>
    %15 = math.exp %14 : vector<8x1xf32>
    %16 = vector.broadcast %13 : vector<8x1xf32> to vector<8x16xf32>
    %17 = arith.subf %9, %16 : vector<8x16xf32>
    %18 = math.exp %17 : vector<8x16xf32>
    %19 = arith.truncf %18 : vector<8x16xf32> to vector<8x16xbf16>
    %c0_11 = arith.constant 0 : index
    %c0_12 = arith.constant 0 : index
    %c32 = arith.constant 32 : index
    %20 = vector.load %arg4[%c0_11, %c0_12, %c32] : memref<1x16x64xbf16, #tpu.memory_space<vmem>>, vector<1x16x8xbf16>
    %21 = vector.shape_cast %20 : vector<1x16x8xbf16> to vector<16x8xbf16>
    %cst_13 = arith.constant dense<0.000000e+00> : vector<8x8xf32>
    %22 = tpu.matmul %19, %21, %cst_13 {dimension_numbers = #tpu.dot_dimension_numbers<[1], [0], [0], [1], [0, 0, 1, 1], [], []>} : vector<8x16xbf16>, vector<16x8xbf16>, vector<8x8xf32> -> vector<8x8xf32>
    %23 = vector.shape_cast %13 : vector<8x1xf32> to vector<8x1xf32>
    %24 = vector.broadcast %23 : vector<8x1xf32> to vector<8x8xf32>
    %25 = vector.shape_cast %15 : vector<8x1xf32> to vector<8x1xf32>
    %26 = vector.broadcast %25 : vector<8x1xf32> to vector<8x8xf32>
    %cst_14 = arith.constant dense<0.000000e+00> : vector<8xf32>
    %27 = vector.multi_reduction <add>, %18, %cst_14 [1] : vector<8x16xf32> to vector<8xf32>
    %28 = vector.shape_cast %27 : vector<8xf32> to vector<8x1xf32>
    %29 = vector.shape_cast %28 : vector<8x1xf32> to vector<8x1xf32>
    %30 = vector.broadcast %29 : vector<8x1xf32> to vector<8x8xf32>
    %c0_15 = arith.constant 0 : index
    %c0_16 = arith.constant 0 : index
    %c8 = arith.constant 8 : index
    %31 = vector.load %arg3[%c0_15, %c0_16, %c8] : memref<1x8x32xbf16, #tpu.memory_space<vmem>>, vector<1x8x8xbf16>
    %32 = vector.shape_cast %31 : vector<1x8x8xbf16> to vector<8x8xbf16>
    %c0_17 = arith.constant 0 : index
    %c0_18 = arith.constant 0 : index
    %c8_19 = arith.constant 8 : index
    %33 = vector.load %arg4[%c0_17, %c0_18, %c8_19] : memref<1x16x64xbf16, #tpu.memory_space<vmem>>, vector<1x16x8xbf16>
    %34 = vector.shape_cast %33 : vector<1x16x8xbf16> to vector<16x8xbf16>
    %cst_20 = arith.constant dense<0.000000e+00> : vector<8x16xf32>
    %35 = tpu.matmul %32, %34, %cst_20 {dimension_numbers = #tpu.dot_dimension_numbers<[1], [1], [0], [0], [0, 0, 1, 0], [], []>} : vector<8x8xbf16>, vector<16x8xbf16>, vector<8x16xf32> -> vector<8x16xf32>
    %36 = vector.extract_strided_slice %3 {offsets = [0, 8], sizes = [8, 1], strides = [1, 1]} : vector<8x32xf32> to vector<8x1xf32>
    %cst_21 = arith.constant dense<0xFF800000> : vector<8xf32>
    %37 = vector.multi_reduction <maximumf>, %35, %cst_21 [1] : vector<8x16xf32> to vector<8xf32>
    %38 = vector.shape_cast %37 : vector<8xf32> to vector<8x1xf32>
    %39 = arith.maximumf %36, %38 : vector<8x1xf32>
    %40 = arith.subf %36, %39 : vector<8x1xf32>
    %41 = math.exp %40 : vector<8x1xf32>
    %42 = vector.broadcast %39 : vector<8x1xf32> to vector<8x16xf32>
    %43 = arith.subf %35, %42 : vector<8x16xf32>
    %44 = math.exp %43 : vector<8x16xf32>
    %45 = arith.truncf %44 : vector<8x16xf32> to vector<8x16xbf16>
    %c0_22 = arith.constant 0 : index
    %c0_23 = arith.constant 0 : index
    %c40 = arith.constant 40 : index
    %46 = vector.load %arg4[%c0_22, %c0_23, %c40] : memref<1x16x64xbf16, #tpu.memory_space<vmem>>, vector<1x16x8xbf16>
    %47 = vector.shape_cast %46 : vector<1x16x8xbf16> to vector<16x8xbf16>
    %cst_24 = arith.constant dense<0.000000e+00> : vector<8x8xf32>
    %48 = tpu.matmul %45, %47, %cst_24 {dimension_numbers = #tpu.dot_dimension_numbers<[1], [0], [0], [1], [0, 0, 1, 1], [], []>} : vector<8x16xbf16>, vector<16x8xbf16>, vector<8x8xf32> -> vector<8x8xf32>
    %49 = vector.shape_cast %39 : vector<8x1xf32> to vector<8x1xf32>
    %50 = vector.broadcast %49 : vector<8x1xf32> to vector<8x8xf32>
    %51 = vector.shape_cast %41 : vector<8x1xf32> to vector<8x1xf32>
    %52 = vector.broadcast %51 : vector<8x1xf32> to vector<8x8xf32>
    %cst_25 = arith.constant dense<0.000000e+00> : vector<8xf32>
    %53 = vector.multi_reduction <add>, %44, %cst_25 [1] : vector<8x16xf32> to vector<8xf32>
    %54 = vector.shape_cast %53 : vector<8xf32> to vector<8x1xf32>
    %55 = vector.shape_cast %54 : vector<8x1xf32> to vector<8x1xf32>
    %56 = vector.broadcast %55 : vector<8x1xf32> to vector<8x8xf32>
    %c0_26 = arith.constant 0 : index
    %c0_27 = arith.constant 0 : index
    %c16 = arith.constant 16 : index
    %57 = vector.load %arg3[%c0_26, %c0_27, %c16] : memref<1x8x32xbf16, #tpu.memory_space<vmem>>, vector<1x8x8xbf16>
    %58 = vector.shape_cast %57 : vector<1x8x8xbf16> to vector<8x8xbf16>
    %c0_28 = arith.constant 0 : index
    %c0_29 = arith.constant 0 : index
    %c16_30 = arith.constant 16 : index
    %59 = vector.load %arg4[%c0_28, %c0_29, %c16_30] : memref<1x16x64xbf16, #tpu.memory_space<vmem>>, vector<1x16x8xbf16>
    %60 = vector.shape_cast %59 : vector<1x16x8xbf16> to vector<16x8xbf16>
    %cst_31 = arith.constant dense<0.000000e+00> : vector<8x16xf32>
    %61 = tpu.matmul %58, %60, %cst_31 {dimension_numbers = #tpu.dot_dimension_numbers<[1], [1], [0], [0], [0, 0, 1, 0], [], []>} : vector<8x8xbf16>, vector<16x8xbf16>, vector<8x16xf32> -> vector<8x16xf32>
    %62 = vector.extract_strided_slice %3 {offsets = [0, 16], sizes = [8, 1], strides = [1, 1]} : vector<8x32xf32> to vector<8x1xf32>
    %cst_32 = arith.constant dense<0xFF800000> : vector<8xf32>
    %63 = vector.multi_reduction <maximumf>, %61, %cst_32 [1] : vector<8x16xf32> to vector<8xf32>
    %64 = vector.shape_cast %63 : vector<8xf32> to vector<8x1xf32>
    %65 = arith.maximumf %62, %64 : vector<8x1xf32>
    %66 = arith.subf %62, %65 : vector<8x1xf32>
    %67 = math.exp %66 : vector<8x1xf32>
    %68 = vector.broadcast %65 : vector<8x1xf32> to vector<8x16xf32>
    %69 = arith.subf %61, %68 : vector<8x16xf32>
    %70 = math.exp %69 : vector<8x16xf32>
    %71 = arith.truncf %70 : vector<8x16xf32> to vector<8x16xbf16>
    %c0_33 = arith.constant 0 : index
    %c0_34 = arith.constant 0 : index
    %c48 = arith.constant 48 : index
    %72 = vector.load %arg4[%c0_33, %c0_34, %c48] : memref<1x16x64xbf16, #tpu.memory_space<vmem>>, vector<1x16x8xbf16>
    %73 = vector.shape_cast %72 : vector<1x16x8xbf16> to vector<16x8xbf16>
    %cst_35 = arith.constant dense<0.000000e+00> : vector<8x8xf32>
    %74 = tpu.matmul %71, %73, %cst_35 {dimension_numbers = #tpu.dot_dimension_numbers<[1], [0], [0], [1], [0, 0, 1, 1], [], []>} : vector<8x16xbf16>, vector<16x8xbf16>, vector<8x8xf32> -> vector<8x8xf32>
    %75 = vector.shape_cast %65 : vector<8x1xf32> to vector<8x1xf32>
    %76 = vector.broadcast %75 : vector<8x1xf32> to vector<8x8xf32>
    %77 = vector.shape_cast %67 : vector<8x1xf32> to vector<8x1xf32>
    %78 = vector.broadcast %77 : vector<8x1xf32> to vector<8x8xf32>
    %cst_36 = arith.constant dense<0.000000e+00> : vector<8xf32>
    %79 = vector.multi_reduction <add>, %70, %cst_36 [1] : vector<8x16xf32> to vector<8xf32>
    %80 = vector.shape_cast %79 : vector<8xf32> to vector<8x1xf32>
    %81 = vector.shape_cast %80 : vector<8x1xf32> to vector<8x1xf32>
    %82 = vector.broadcast %81 : vector<8x1xf32> to vector<8x8xf32>
    %c0_37 = arith.constant 0 : index
    %c0_38 = arith.constant 0 : index
    %c24 = arith.constant 24 : index
    %83 = vector.load %arg3[%c0_37, %c0_38, %c24] : memref<1x8x32xbf16, #tpu.memory_space<vmem>>, vector<1x8x8xbf16>
    %84 = vector.shape_cast %83 : vector<1x8x8xbf16> to vector<8x8xbf16>
    %c0_39 = arith.constant 0 : index
    %c0_40 = arith.constant 0 : index
    %c24_41 = arith.constant 24 : index
    %85 = vector.load %arg4[%c0_39, %c0_40, %c24_41] : memref<1x16x64xbf16, #tpu.memory_space<vmem>>, vector<1x16x8xbf16>
    %86 = vector.shape_cast %85 : vector<1x16x8xbf16> to vector<16x8xbf16>
    %cst_42 = arith.constant dense<0.000000e+00> : vector<8x16xf32>
    %87 = tpu.matmul %84, %86, %cst_42 {dimension_numbers = #tpu.dot_dimension_numbers<[1], [1], [0], [0], [0, 0, 1, 0], [], []>} : vector<8x8xbf16>, vector<16x8xbf16>, vector<8x16xf32> -> vector<8x16xf32>
    %88 = vector.extract_strided_slice %3 {offsets = [0, 24], sizes = [8, 1], strides = [1, 1]} : vector<8x32xf32> to vector<8x1xf32>
    %cst_43 = arith.constant dense<0xFF800000> : vector<8xf32>
    %89 = vector.multi_reduction <maximumf>, %87, %cst_43 [1] : vector<8x16xf32> to vector<8xf32>
    %90 = vector.shape_cast %89 : vector<8xf32> to vector<8x1xf32>
    %91 = arith.maximumf %88, %90 : vector<8x1xf32>
    %92 = arith.subf %88, %91 : vector<8x1xf32>
    %93 = math.exp %92 : vector<8x1xf32>
    %94 = vector.broadcast %91 : vector<8x1xf32> to vector<8x16xf32>
    %95 = arith.subf %87, %94 : vector<8x16xf32>
    %96 = math.exp %95 : vector<8x16xf32>
    %97 = arith.truncf %96 : vector<8x16xf32> to vector<8x16xbf16>
    %c0_44 = arith.constant 0 : index
    %c0_45 = arith.constant 0 : index
    %c56 = arith.constant 56 : index
    %98 = vector.load %arg4[%c0_44, %c0_45, %c56] : memref<1x16x64xbf16, #tpu.memory_space<vmem>>, vector<1x16x8xbf16>
    %99 = vector.shape_cast %98 : vector<1x16x8xbf16> to vector<16x8xbf16>
    %cst_46 = arith.constant dense<0.000000e+00> : vector<8x8xf32>
    %100 = tpu.matmul %97, %99, %cst_46 {dimension_numbers = #tpu.dot_dimension_numbers<[1], [0], [0], [1], [0, 0, 1, 1], [], []>} : vector<8x16xbf16>, vector<16x8xbf16>, vector<8x8xf32> -> vector<8x8xf32>
    %101 = vector.shape_cast %91 : vector<8x1xf32> to vector<8x1xf32>
    %102 = vector.broadcast %101 : vector<8x1xf32> to vector<8x8xf32>
    %103 = vector.shape_cast %93 : vector<8x1xf32> to vector<8x1xf32>
    %104 = vector.broadcast %103 : vector<8x1xf32> to vector<8x8xf32>
    %cst_47 = arith.constant dense<0.000000e+00> : vector<8xf32>
    %105 = vector.multi_reduction <add>, %96, %cst_47 [1] : vector<8x16xf32> to vector<8xf32>
    %106 = vector.shape_cast %105 : vector<8xf32> to vector<8x1xf32>
    %107 = vector.shape_cast %106 : vector<8x1xf32> to vector<8x1xf32>
    %108 = vector.broadcast %107 : vector<8x1xf32> to vector<8x8xf32>
    %109 = tpu.concatenate %26, %52, %78, %104 in 1 : vector<8x8xf32>, vector<8x8xf32>, vector<8x8xf32>, vector<8x8xf32> -> vector<8x32xf32>
    %110 = tpu.concatenate %24, %50, %76, %102 in 1 : vector<8x8xf32>, vector<8x8xf32>, vector<8x8xf32>, vector<8x8xf32> -> vector<8x32xf32>
    %c0_48 = arith.constant 0 : index
    %c0_49 = arith.constant 0 : index
    %111 = vector.load %arg6[%c0_48, %c0_49] : memref<8x32xf32, #tpu.memory_space<vmem>>, vector<8x32xf32>
    tpu.vector_store %arg6[%c0_48, %c0_49], %110 {strides = array<i32>} : memref<8x32xf32, #tpu.memory_space<vmem>>, vector<8x32xf32>,
    %112 = arith.mulf %109, %4 : vector<8x32xf32>
    %113 = tpu.concatenate %30, %56, %82, %108 in 1 : vector<8x8xf32>, vector<8x8xf32>, vector<8x8xf32>, vector<8x8xf32> -> vector<8x32xf32>
    %114 = arith.addf %112, %113 : vector<8x32xf32>
    %c0_50 = arith.constant 0 : index
    %c0_51 = arith.constant 0 : index
    %115 = vector.load %arg7[%c0_50, %c0_51] : memref<8x32xf32, #tpu.memory_space<vmem>>, vector<8x32xf32>
    tpu.vector_store %arg7[%c0_50, %c0_51], %114 {strides = array<i32>} : memref<8x32xf32, #tpu.memory_space<vmem>>, vector<8x32xf32>,
    %c0_52 = arith.constant 0 : index
    %c0_53 = arith.constant 0 : index
    %116 = vector.load %arg8[%c0_52, %c0_53] : memref<8x32xf32, #tpu.memory_space<vmem>>, vector<8x32xf32>
    %117 = arith.mulf %109, %116 : vector<8x32xf32>
    %118 = tpu.concatenate %22, %48, %74, %100 in 1 : vector<8x8xf32>, vector<8x8xf32>, vector<8x8xf32>, vector<8x8xf32> -> vector<8x32xf32>
    %119 = arith.addf %117, %118 : vector<8x32xf32>
    %c0_54 = arith.constant 0 : index
    %c0_55 = arith.constant 0 : index
    %120 = vector.load %arg8[%c0_54, %c0_55] : memref<8x32xf32, #tpu.memory_space<vmem>>, vector<8x32xf32>
    tpu.vector_store %arg8[%c0_54, %c0_55], %119 {strides = array<i32>} : memref<8x32xf32, #tpu.memory_space<vmem>>, vector<8x32xf32>,
    %c0_i32_56 = arith.constant 0 : i32
    %121 = arith.cmpi eq, %arg2, %c0_i32_56 : i32
    %122 = arith.extui %121 : i1 to i32
    %c0_i32_57 = arith.constant 0 : i32
    %123 = arith.cmpi ne, %122, %c0_i32_57 : i32
    scf.if %123 {
      %c0_58 = arith.constant 0 : index
      %c0_59 = arith.constant 0 : index
      %124 = vector.load %arg8[%c0_58, %c0_59] : memref<8x32xf32, #tpu.memory_space<vmem>>, vector<8x32xf32>
      %c0_60 = arith.constant 0 : index
      %c0_61 = arith.constant 0 : index
      %125 = vector.load %arg7[%c0_60, %c0_61] : memref<8x32xf32, #tpu.memory_space<vmem>>, vector<8x32xf32>
      %126 = arith.divf %124, %125 : vector<8x32xf32>
      %127 = arith.truncf %126 : vector<8x32xf32> to vector<8x32xbf16>
      %c0_62 = arith.constant 0 : index
      %c0_63 = arith.constant 0 : index
      %c0_64 = arith.constant 0 : index
      %128 = vector.load %arg5[%c0_62, %c0_63, %c0_64] : memref<1x8x32xbf16, #tpu.memory_space<vmem>>, vector<1x8x32xbf16>
      %129 = vector.shape_cast %128 : vector<1x8x32xbf16> to vector<8x32xbf16>
      %130 = vector.shape_cast %127 : vector<8x32xbf16> to vector<1x8x32xbf16>
      tpu.vector_store %arg5[%c0_62, %c0_63, %c0_64], %130 {strides = array<i32>} : memref<1x8x32xbf16, #tpu.memory_space<vmem>>, vector<1x8x32xbf16>,
    } else {
    }
    return
  }
  func.func @transform_0(%arg0: i32, %arg1: i32, %arg2: i32) -> (i32, i32, i32) {
    %c0_i32 = arith.constant 0 : i32
    %c0_i32_0 = arith.constant 0 : i32
    return %arg0, %arg1, %c0_i32 : i32, i32, i32
  }
  func.func @transform_1(%arg0: i32, %arg1: i32, %arg2: i32) -> (i32, i32, i32) {
    %c0_i32 = arith.constant 0 : i32
    %c0_i32_0 = arith.constant 0 : i32
    return %arg0, %arg2, %c0_i32 : i32, i32, i32
  }
  func.func @transform_2(%arg0: i32, %arg1: i32, %arg2: i32) -> (i32, i32, i32) {
    %c0_i32 = arith.constant 0 : i32
    %c0_i32_0 = arith.constant 0 : i32
    return %arg0, %arg1, %c0_i32 : i32, i32, i32
  }
}

module attributes {stable_mosaic.version = 11 : i64} {
  func.func @_matmul_kernel(%arg0: i32, %arg1: i32, %arg2: i32, %arg3: memref<16x32xbf16, #tpu.memory_space<vmem>>, %arg4: memref<32x64xbf16, #tpu.memory_space<vmem>>, %arg5: memref<1x64xf32, #tpu.memory_space<vmem>>, %arg6: memref<16x64xbf16, #tpu.memory_space<vmem>>, %arg7: memref<16x64xf32, #tpu.memory_space<vmem>>) attributes {dimension_semantics = [#tpu.dimension_semantics<parallel>, #tpu.dimension_semantics<parallel>, #tpu.dimension_semantics<arbitrary>], iteration_bounds = array<i64: 1, 1, 1>, scalar_prefetch = 0 : i64, scratch_operands = 1 : i64, tpu.core_type = #tpu.core_type<tc>, window_params = [{transform_indices = @transform_0, window_bounds = array<i64: 16, 32>}, {transform_indices = @transform_1, window_bounds = array<i64: 32, 64>}, {transform_indices = @transform_2, window_bounds = array<i64: 1, 64>}, {transform_indices = @transform_3, window_bounds = array<i64: 16, 64>}]} {
    %c0_i32 = arith.constant 0 : i32
    %0 = arith.cmpi eq, %arg2, %c0_i32 : i32
    %1 = arith.extui %0 : i1 to i32
    %c0_i32_0 = arith.constant 0 : i32
    %2 = arith.cmpi ne, %1, %c0_i32_0 : i32
    scf.if %2 {
      %cst_10 = arith.constant 0.000000e+00 : f32
      %12 = vector.broadcast %cst_10 : f32 to vector<16x64xf32>
      %c0_11 = arith.constant 0 : index
      %c0_12 = arith.constant 0 : index
      %13 = vector.load %arg7[%c0_11, %c0_12] : memref<16x64xf32, #tpu.memory_space<vmem>>, vector<16x64xf32>
      tpu.vector_store %arg7[%c0_11, %c0_12], %12 {strides = array<i32>} : memref<16x64xf32, #tpu.memory_space<vmem>>, vector<16x64xf32>,
    } else {
    }
    %c0 = arith.constant 0 : index
    %c0_1 = arith.constant 0 : index
    %3 = vector.load %arg7[%c0, %c0_1] : memref<16x64xf32, #tpu.memory_space<vmem>>, vector<16x64xf32>
    %c0_2 = arith.constant 0 : index
    %c0_3 = arith.constant 0 : index
    %4 = vector.load %arg3[%c0_2, %c0_3] : memref<16x32xbf16, #tpu.memory_space<vmem>>, vector<16x32xbf16>
    %c0_4 = arith.constant 0 : index
    %c0_5 = arith.constant 0 : index
    %5 = vector.load %arg4[%c0_4, %c0_5] : memref<32x64xbf16, #tpu.memory_space<vmem>>, vector<32x64xbf16>
    %cst = arith.constant dense<0.000000e+00> : vector<16x64xf32>
    %6 = tpu.matmul %4, %5, %cst {dimension_numbers = #tpu.dot_dimension_numbers<[1], [0], [0], [1], [0, 0, 1, 1], [], []>} : vector<16x32xbf16>, vector<32x64xbf16>, vector<16x64xf32> -> vector<16x64xf32>
    %7 = arith.addf %3, %6 : vector<16x64xf32>
    %c0_6 = arith.constant 0 : index
    %c0_7 = arith.constant 0 : index
    %8 = vector.load %arg7[%c0_6, %c0_7] : memref<16x64xf32, #tpu.memory_space<vmem>>, vector<16x64xf32>
    tpu.vector_store %arg7[%c0_6, %c0_7], %7 {strides = array<i32>} : memref<16x64xf32, #tpu.memory_space<vmem>>, vector<16x64xf32>,
    %c0_i32_8 = arith.constant 0 : i32
    %9 = arith.cmpi eq, %arg2, %c0_i32_8 : i32
    %10 = arith.extui %9 : i1 to i32
    %c0_i32_9 = arith.constant 0 : i32
    %11 = arith.cmpi ne, %10, %c0_i32_9 : i32
    scf.if %11 {
      %c0_10 = arith.constant 0 : index
      %c0_11 = arith.constant 0 : index
      %12 = vector.load %arg7[%c0_10, %c0_11] : memref<16x64xf32, #tpu.memory_space<vmem>>, vector<16x64xf32>
      %c0_12 = arith.constant 0 : index
      %c0_13 = arith.constant 0 : index
      %13 = vector.load %arg5[%c0_12, %c0_13] : memref<1x64xf32, #tpu.memory_space<vmem>>, vector<1x64xf32>
      %14 = vector.broadcast %13 : vector<1x64xf32> to vector<16x64xf32>
      %15 = arith.addf %12, %14 : vector<16x64xf32>
      %cst_14 = arith.constant 5.000000e-01 : f32
      %16 = vector.broadcast %cst_14 : f32 to vector<16x64xf32>
      %17 = arith.mulf %16, %15 : vector<16x64xf32>
      %cst_15 = arith.constant 0.707106769 : f32
      %18 = vector.broadcast %cst_15 : f32 to vector<16x64xf32>
      %19 = arith.mulf %15, %18 : vector<16x64xf32>
      %20 = math.absf %19 : vector<16x64xf32>
      %cst_16 = arith.constant 0.327591091 : f32
      %21 = vector.broadcast %cst_16 : f32 to vector<16x64xf32>
      %22 = arith.mulf %21, %20 : vector<16x64xf32>
      %cst_17 = arith.constant 1.000000e+00 : f32
      %23 = vector.broadcast %cst_17 : f32 to vector<16x64xf32>
      %24 = arith.addf %23, %22 : vector<16x64xf32>
      %cst_18 = arith.constant 1.000000e+00 : f32
      %25 = vector.broadcast %cst_18 : f32 to vector<16x64xf32>
      %26 = arith.divf %25, %24 : vector<16x64xf32>
      %cst_19 = arith.constant 1.06140542 : f32
      %27 = vector.broadcast %cst_19 : f32 to vector<16x64xf32>
      %28 = arith.mulf %27, %26 : vector<16x64xf32>
      %cst_20 = arith.constant 1.45315206 : f32
      %29 = vector.broadcast %cst_20 : f32 to vector<16x64xf32>
      %30 = arith.subf %28, %29 : vector<16x64xf32>
      %31 = arith.mulf %30, %26 : vector<16x64xf32>
      %cst_21 = arith.constant 1.42141378 : f32
      %32 = vector.broadcast %cst_21 : f32 to vector<16x64xf32>
      %33 = arith.addf %31, %32 : vector<16x64xf32>
      %34 = arith.mulf %33, %26 : vector<16x64xf32>
      %cst_22 = arith.constant 0.284496725 : f32
      %35 = vector.broadcast %cst_22 : f32 to vector<16x64xf32>
      %36 = arith.subf %34, %35 : vector<16x64xf32>
      %37 = arith.mulf %36, %26 : vector<16x64xf32>
      %cst_23 = arith.constant 0.254829586 : f32
      %38 = vector.broadcast %cst_23 : f32 to vector<16x64xf32>
      %39 = arith.addf %37, %38 : vector<16x64xf32>
      %40 = arith.mulf %39, %26 : vector<16x64xf32>
      %cst_24 = arith.constant 0.000000e+00 : f32
      %41 = vector.broadcast %cst_24 : f32 to vector<16x64xf32>
      %42 = arith.subf %41, %20 : vector<16x64xf32>
      %43 = arith.mulf %42, %20 : vector<16x64xf32>
      %44 = math.exp %43 : vector<16x64xf32>
      %45 = arith.mulf %40, %44 : vector<16x64xf32>
      %cst_25 = arith.constant 1.000000e+00 : f32
      %46 = vector.broadcast %cst_25 : f32 to vector<16x64xf32>
      %47 = arith.subf %46, %45 : vector<16x64xf32>
      %cst_26 = arith.constant 0.000000e+00 : f32
      %48 = vector.broadcast %cst_26 : f32 to vector<16x64xf32>
      %49 = arith.cmpf oge, %19, %48 : vector<16x64xf32>
      %cst_27 = arith.constant 0.000000e+00 : f32
      %50 = vector.broadcast %cst_27 : f32 to vector<16x64xf32>
      %51 = arith.subf %50, %47 : vector<16x64xf32>
      %52 = arith.select %49, %47, %51 : vector<16x64xi1>, vector<16x64xf32>
      %cst_28 = arith.constant 1.000000e+00 : f32
      %53 = vector.broadcast %cst_28 : f32 to vector<16x64xf32>
      %54 = arith.addf %53, %52 : vector<16x64xf32>
      %55 = arith.mulf %17, %54 : vector<16x64xf32>
      %56 = arith.truncf %55 : vector<16x64xf32> to vector<16x64xbf16>
      %c0_29 = arith.constant 0 : index
      %c0_30 = arith.constant 0 : index
      %57 = vector.load %arg6[%c0_29, %c0_30] : memref<16x64xbf16, #tpu.memory_space<vmem>>, vector<16x64xbf16>
      tpu.vector_store %arg6[%c0_29, %c0_30], %56 {strides = array<i32>} : memref<16x64xbf16, #tpu.memory_space<vmem>>, vector<16x64xbf16>,
    } else {
    }
    return
  }
  func.func @transform_0(%arg0: i32, %arg1: i32, %arg2: i32) -> (i32, i32) {
    %c0_i32 = arith.constant 0 : i32
    return %arg0, %arg2 : i32, i32
  }
  func.func @transform_1(%arg0: i32, %arg1: i32, %arg2: i32) -> (i32, i32) {
    %c0_i32 = arith.constant 0 : i32
    return %arg2, %arg1 : i32, i32
  }
  func.func @transform_2(%arg0: i32, %arg1: i32, %arg2: i32) -> (i32, i32) {
    %c0_i32 = arith.constant 0 : i32
    %c0_i32_0 = arith.constant 0 : i32
    return %c0_i32, %arg1 : i32, i32
  }
  func.func @transform_3(%arg0: i32, %arg1: i32, %arg2: i32) -> (i32, i32) {
    %c0_i32 = arith.constant 0 : i32
    return %arg0, %arg1 : i32, i32
  }
}

module attributes {stable_mosaic.version = 11 : i64} {
  func.func @_matmul_kernel(%arg0: i32, %arg1: i32, %arg2: i32, %arg3: memref<16x64xbf16, #tpu.memory_space<vmem>>, %arg4: memref<64x32xbf16, #tpu.memory_space<vmem>>, %arg5: memref<1x32xf32, #tpu.memory_space<vmem>>, %arg6: memref<16x32xbf16, #tpu.memory_space<vmem>>, %arg7: memref<16x32xbf16, #tpu.memory_space<vmem>>, %arg8: memref<16x32xf32, #tpu.memory_space<vmem>>) attributes {dimension_semantics = [#tpu.dimension_semantics<parallel>, #tpu.dimension_semantics<parallel>, #tpu.dimension_semantics<arbitrary>], iteration_bounds = array<i64: 1, 1, 1>, scalar_prefetch = 0 : i64, scratch_operands = 1 : i64, tpu.core_type = #tpu.core_type<tc>, window_params = [{transform_indices = @transform_0, window_bounds = array<i64: 16, 64>}, {transform_indices = @transform_1, window_bounds = array<i64: 64, 32>}, {transform_indices = @transform_2, window_bounds = array<i64: 1, 32>}, {transform_indices = @transform_3, window_bounds = array<i64: 16, 32>}, {transform_indices = @transform_4, window_bounds = array<i64: 16, 32>}]} {
    %c0_i32 = arith.constant 0 : i32
    %0 = arith.cmpi eq, %arg2, %c0_i32 : i32
    %1 = arith.extui %0 : i1 to i32
    %c0_i32_0 = arith.constant 0 : i32
    %2 = arith.cmpi ne, %1, %c0_i32_0 : i32
    scf.if %2 {
      %cst_10 = arith.constant 0.000000e+00 : f32
      %12 = vector.broadcast %cst_10 : f32 to vector<16x32xf32>
      %c0_11 = arith.constant 0 : index
      %c0_12 = arith.constant 0 : index
      %13 = vector.load %arg8[%c0_11, %c0_12] : memref<16x32xf32, #tpu.memory_space<vmem>>, vector<16x32xf32>
      tpu.vector_store %arg8[%c0_11, %c0_12], %12 {strides = array<i32>} : memref<16x32xf32, #tpu.memory_space<vmem>>, vector<16x32xf32>,
    } else {
    }
    %c0 = arith.constant 0 : index
    %c0_1 = arith.constant 0 : index
    %3 = vector.load %arg8[%c0, %c0_1] : memref<16x32xf32, #tpu.memory_space<vmem>>, vector<16x32xf32>
    %c0_2 = arith.constant 0 : index
    %c0_3 = arith.constant 0 : index
    %4 = vector.load %arg3[%c0_2, %c0_3] : memref<16x64xbf16, #tpu.memory_space<vmem>>, vector<16x64xbf16>
    %c0_4 = arith.constant 0 : index
    %c0_5 = arith.constant 0 : index
    %5 = vector.load %arg4[%c0_4, %c0_5] : memref<64x32xbf16, #tpu.memory_space<vmem>>, vector<64x32xbf16>
    %cst = arith.constant dense<0.000000e+00> : vector<16x32xf32>
    %6 = tpu.matmul %4, %5, %cst {dimension_numbers = #tpu.dot_dimension_numbers<[1], [0], [0], [1], [0, 0, 1, 1], [], []>} : vector<16x64xbf16>, vector<64x32xbf16>, vector<16x32xf32> -> vector<16x32xf32>
    %7 = arith.addf %3, %6 : vector<16x32xf32>
    %c0_6 = arith.constant 0 : index
    %c0_7 = arith.constant 0 : index
    %8 = vector.load %arg8[%c0_6, %c0_7] : memref<16x32xf32, #tpu.memory_space<vmem>>, vector<16x32xf32>
    tpu.vector_store %arg8[%c0_6, %c0_7], %7 {strides = array<i32>} : memref<16x32xf32, #tpu.memory_space<vmem>>, vector<16x32xf32>,
    %c0_i32_8 = arith.constant 0 : i32
    %9 = arith.cmpi eq, %arg2, %c0_i32_8 : i32
    %10 = arith.extui %9 : i1 to i32
    %c0_i32_9 = arith.constant 0 : i32
    %11 = arith.cmpi ne, %10, %c0_i32_9 : i32
    scf.if %11 {
      %c0_10 = arith.constant 0 : index
      %c0_11 = arith.constant 0 : index
      %12 = vector.load %arg8[%c0_10, %c0_11] : memref<16x32xf32, #tpu.memory_space<vmem>>, vector<16x32xf32>
      %c0_12 = arith.constant 0 : index
      %c0_13 = arith.constant 0 : index
      %13 = vector.load %arg5[%c0_12, %c0_13] : memref<1x32xf32, #tpu.memory_space<vmem>>, vector<1x32xf32>
      %14 = vector.broadcast %13 : vector<1x32xf32> to vector<16x32xf32>
      %15 = arith.addf %12, %14 : vector<16x32xf32>
      %c0_14 = arith.constant 0 : index
      %c0_15 = arith.constant 0 : index
      %16 = vector.load %arg6[%c0_14, %c0_15] : memref<16x32xbf16, #tpu.memory_space<vmem>>, vector<16x32xbf16>
      %17 = arith.extf %16 : vector<16x32xbf16> to vector<16x32xf32>
      %18 = arith.addf %15, %17 : vector<16x32xf32>
      %19 = arith.truncf %18 : vector<16x32xf32> to vector<16x32xbf16>
      %c0_16 = arith.constant 0 : index
      %c0_17 = arith.constant 0 : index
      %20 = vector.load %arg7[%c0_16, %c0_17] : memref<16x32xbf16, #tpu.memory_space<vmem>>, vector<16x32xbf16>
      tpu.vector_store %arg7[%c0_16, %c0_17], %19 {strides = array<i32>} : memref<16x32xbf16, #tpu.memory_space<vmem>>, vector<16x32xbf16>,
    } else {
    }
    return
  }
  func.func @transform_0(%arg0: i32, %arg1: i32, %arg2: i32) -> (i32, i32) {
    %c0_i32 = arith.constant 0 : i32
    return %arg0, %arg2 : i32, i32
  }
  func.func @transform_1(%arg0: i32, %arg1: i32, %arg2: i32) -> (i32, i32) {
    %c0_i32 = arith.constant 0 : i32
    return %arg2, %arg1 : i32, i32
  }
  func.func @transform_2(%arg0: i32, %arg1: i32, %arg2: i32) -> (i32, i32) {
    %c0_i32 = arith.constant 0 : i32
    %c0_i32_0 = arith.constant 0 : i32
    return %c0_i32, %arg1 : i32, i32
  }
  func.func @transform_3(%arg0: i32, %arg1: i32, %arg2: i32) -> (i32, i32) {
    %c0_i32 = arith.constant 0 : i32
    return %arg0, %arg1 : i32, i32
  }
  func.func @transform_4(%arg0: i32, %arg1: i32, %arg2: i32) -> (i32, i32) {
    %c0_i32 = arith.constant 0 : i32
    return %arg0, %arg1 : i32, i32
  }
}

module attributes {stable_mosaic.version = 11 : i64} {
  func.func @_matmul_kernel(%arg0: i32, %arg1: i32, %arg2: i32, %arg3: memref<32x32xbf16, #tpu.memory_space<vmem>>, %arg4: memref<32x64xbf16, #tpu.memory_space<vmem>>, %arg5: memref<1x64xf32, #tpu.memory_space<vmem>>, %arg6: memref<32x64xbf16, #tpu.memory_space<vmem>>, %arg7: memref<32x64xf32, #tpu.memory_space<vmem>>) attributes {dimension_semantics = [#tpu.dimension_semantics<parallel>, #tpu.dimension_semantics<parallel>, #tpu.dimension_semantics<arbitrary>], iteration_bounds = array<i64: 1, 1, 1>, scalar_prefetch = 0 : i64, scratch_operands = 1 : i64, tpu.core_type = #tpu.core_type<tc>, window_params = [{transform_indices = @transform_0, window_bounds = array<i64: 32, 32>}, {transform_indices = @transform_1, window_bounds = array<i64: 32, 64>}, {transform_indices = @transform_2, window_bounds = array<i64: 1, 64>}, {transform_indices = @transform_3, window_bounds = array<i64: 32, 64>}]} {
    %c0_i32 = arith.constant 0 : i32
    %0 = arith.cmpi eq, %arg2, %c0_i32 : i32
    %1 = arith.extui %0 : i1 to i32
    %c0_i32_0 = arith.constant 0 : i32
    %2 = arith.cmpi ne, %1, %c0_i32_0 : i32
    scf.if %2 {
      %cst_10 = arith.constant 0.000000e+00 : f32
      %12 = vector.broadcast %cst_10 : f32 to vector<32x64xf32>
      %c0_11 = arith.constant 0 : index
      %c0_12 = arith.constant 0 : index
      %13 = vector.load %arg7[%c0_11, %c0_12] : memref<32x64xf32, #tpu.memory_space<vmem>>, vector<32x64xf32>
      tpu.vector_store %arg7[%c0_11, %c0_12], %12 {strides = array<i32>} : memref<32x64xf32, #tpu.memory_space<vmem>>, vector<32x64xf32>,
    } else {
    }
    %c0 = arith.constant 0 : index
    %c0_1 = arith.constant 0 : index
    %3 = vector.load %arg7[%c0, %c0_1] : memref<32x64xf32, #tpu.memory_space<vmem>>, vector<32x64xf32>
    %c0_2 = arith.constant 0 : index
    %c0_3 = arith.constant 0 : index
    %4 = vector.load %arg3[%c0_2, %c0_3] : memref<32x32xbf16, #tpu.memory_space<vmem>>, vector<32x32xbf16>
    %c0_4 = arith.constant 0 : index
    %c0_5 = arith.constant 0 : index
    %5 = vector.load %arg4[%c0_4, %c0_5] : memref<32x64xbf16, #tpu.memory_space<vmem>>, vector<32x64xbf16>
    %cst = arith.constant dense<0.000000e+00> : vector<32x64xf32>
    %6 = tpu.matmul %4, %5, %cst {dimension_numbers = #tpu.dot_dimension_numbers<[1], [0], [0], [1], [0, 0, 1, 1], [], []>} : vector<32x32xbf16>, vector<32x64xbf16>, vector<32x64xf32> -> vector<32x64xf32>
    %7 = arith.addf %3, %6 : vector<32x64xf32>
    %c0_6 = arith.constant 0 : index
    %c0_7 = arith.constant 0 : index
    %8 = vector.load %arg7[%c0_6, %c0_7] : memref<32x64xf32, #tpu.memory_space<vmem>>, vector<32x64xf32>
    tpu.vector_store %arg7[%c0_6, %c0_7], %7 {strides = array<i32>} : memref<32x64xf32, #tpu.memory_space<vmem>>, vector<32x64xf32>,
    %c0_i32_8 = arith.constant 0 : i32
    %9 = arith.cmpi eq, %arg2, %c0_i32_8 : i32
    %10 = arith.extui %9 : i1 to i32
    %c0_i32_9 = arith.constant 0 : i32
    %11 = arith.cmpi ne, %10, %c0_i32_9 : i32
    scf.if %11 {
      %c0_10 = arith.constant 0 : index
      %c0_11 = arith.constant 0 : index
      %12 = vector.load %arg7[%c0_10, %c0_11] : memref<32x64xf32, #tpu.memory_space<vmem>>, vector<32x64xf32>
      %c0_12 = arith.constant 0 : index
      %c0_13 = arith.constant 0 : index
      %13 = vector.load %arg5[%c0_12, %c0_13] : memref<1x64xf32, #tpu.memory_space<vmem>>, vector<1x64xf32>
      %14 = vector.broadcast %13 : vector<1x64xf32> to vector<32x64xf32>
      %15 = arith.addf %12, %14 : vector<32x64xf32>
      %16 = arith.truncf %15 : vector<32x64xf32> to vector<32x64xbf16>
      %c0_14 = arith.constant 0 : index
      %c0_15 = arith.constant 0 : index
      %17 = vector.load %arg6[%c0_14, %c0_15] : memref<32x64xbf16, #tpu.memory_space<vmem>>, vector<32x64xbf16>
      tpu.vector_store %arg6[%c0_14, %c0_15], %16 {strides = array<i32>} : memref<32x64xbf16, #tpu.memory_space<vmem>>, vector<32x64xbf16>,
    } else {
    }
    return
  }
  func.func @transform_0(%arg0: i32, %arg1: i32, %arg2: i32) -> (i32, i32) {
    %c0_i32 = arith.constant 0 : i32
    return %arg0, %arg2 : i32, i32
  }
  func.func @transform_1(%arg0: i32, %arg1: i32, %arg2: i32) -> (i32, i32) {
    %c0_i32 = arith.constant 0 : i32
    return %arg2, %arg1 : i32, i32
  }
  func.func @transform_2(%arg0: i32, %arg1: i32, %arg2: i32) -> (i32, i32) {
    %c0_i32 = arith.constant 0 : i32
    %c0_i32_0 = arith.constant 0 : i32
    return %c0_i32, %arg1 : i32, i32
  }
  func.func @transform_3(%arg0: i32, %arg1: i32, %arg2: i32) -> (i32, i32) {
    %c0_i32 = arith.constant 0 : i32
    return %arg0, %arg1 : i32, i32
  }
}

module attributes {stable_mosaic.version = 11 : i64} {
  func.func @_matmul_kernel(%arg0: i32, %arg1: i32, %arg2: i32, %arg3: memref<16x32xbf16, #tpu.memory_space<vmem>>, %arg4: memref<32x32xbf16, #tpu.memory_space<vmem>>, %arg5: memref<1x32xf32, #tpu.memory_space<vmem>>, %arg6: memref<16x32xbf16, #tpu.memory_space<vmem>>, %arg7: memref<16x32xbf16, #tpu.memory_space<vmem>>, %arg8: memref<16x32xf32, #tpu.memory_space<vmem>>) attributes {dimension_semantics = [#tpu.dimension_semantics<parallel>, #tpu.dimension_semantics<parallel>, #tpu.dimension_semantics<arbitrary>], iteration_bounds = array<i64: 1, 1, 1>, scalar_prefetch = 0 : i64, scratch_operands = 1 : i64, tpu.core_type = #tpu.core_type<tc>, window_params = [{transform_indices = @transform_0, window_bounds = array<i64: 16, 32>}, {transform_indices = @transform_1, window_bounds = array<i64: 32, 32>}, {transform_indices = @transform_2, window_bounds = array<i64: 1, 32>}, {transform_indices = @transform_3, window_bounds = array<i64: 16, 32>}, {transform_indices = @transform_4, window_bounds = array<i64: 16, 32>}]} {
    %c0_i32 = arith.constant 0 : i32
    %0 = arith.cmpi eq, %arg2, %c0_i32 : i32
    %1 = arith.extui %0 : i1 to i32
    %c0_i32_0 = arith.constant 0 : i32
    %2 = arith.cmpi ne, %1, %c0_i32_0 : i32
    scf.if %2 {
      %cst_10 = arith.constant 0.000000e+00 : f32
      %12 = vector.broadcast %cst_10 : f32 to vector<16x32xf32>
      %c0_11 = arith.constant 0 : index
      %c0_12 = arith.constant 0 : index
      %13 = vector.load %arg8[%c0_11, %c0_12] : memref<16x32xf32, #tpu.memory_space<vmem>>, vector<16x32xf32>
      tpu.vector_store %arg8[%c0_11, %c0_12], %12 {strides = array<i32>} : memref<16x32xf32, #tpu.memory_space<vmem>>, vector<16x32xf32>,
    } else {
    }
    %c0 = arith.constant 0 : index
    %c0_1 = arith.constant 0 : index
    %3 = vector.load %arg8[%c0, %c0_1] : memref<16x32xf32, #tpu.memory_space<vmem>>, vector<16x32xf32>
    %c0_2 = arith.constant 0 : index
    %c0_3 = arith.constant 0 : index
    %4 = vector.load %arg3[%c0_2, %c0_3] : memref<16x32xbf16, #tpu.memory_space<vmem>>, vector<16x32xbf16>
    %c0_4 = arith.constant 0 : index
    %c0_5 = arith.constant 0 : index
    %5 = vector.load %arg4[%c0_4, %c0_5] : memref<32x32xbf16, #tpu.memory_space<vmem>>, vector<32x32xbf16>
    %cst = arith.constant dense<0.000000e+00> : vector<16x32xf32>
    %6 = tpu.matmul %4, %5, %cst {dimension_numbers = #tpu.dot_dimension_numbers<[1], [0], [0], [1], [0, 0, 1, 1], [], []>} : vector<16x32xbf16>, vector<32x32xbf16>, vector<16x32xf32> -> vector<16x32xf32>
    %7 = arith.addf %3, %6 : vector<16x32xf32>
    %c0_6 = arith.constant 0 : index
    %c0_7 = arith.constant 0 : index
    %8 = vector.load %arg8[%c0_6, %c0_7] : memref<16x32xf32, #tpu.memory_space<vmem>>, vector<16x32xf32>
    tpu.vector_store %arg8[%c0_6, %c0_7], %7 {strides = array<i32>} : memref<16x32xf32, #tpu.memory_space<vmem>>, vector<16x32xf32>,
    %c0_i32_8 = arith.constant 0 : i32
    %9 = arith.cmpi eq, %arg2, %c0_i32_8 : i32
    %10 = arith.extui %9 : i1 to i32
    %c0_i32_9 = arith.constant 0 : i32
    %11 = arith.cmpi ne, %10, %c0_i32_9 : i32
    scf.if %11 {
      %c0_10 = arith.constant 0 : index
      %c0_11 = arith.constant 0 : index
      %12 = vector.load %arg8[%c0_10, %c0_11] : memref<16x32xf32, #tpu.memory_space<vmem>>, vector<16x32xf32>
      %c0_12 = arith.constant 0 : index
      %c0_13 = arith.constant 0 : index
      %13 = vector.load %arg5[%c0_12, %c0_13] : memref<1x32xf32, #tpu.memory_space<vmem>>, vector<1x32xf32>
      %14 = vector.broadcast %13 : vector<1x32xf32> to vector<16x32xf32>
      %15 = arith.addf %12, %14 : vector<16x32xf32>
      %c0_14 = arith.constant 0 : index
      %c0_15 = arith.constant 0 : index
      %16 = vector.load %arg6[%c0_14, %c0_15] : memref<16x32xbf16, #tpu.memory_space<vmem>>, vector<16x32xbf16>
      %17 = arith.extf %16 : vector<16x32xbf16> to vector<16x32xf32>
      %18 = arith.addf %15, %17 : vector<16x32xf32>
      %19 = arith.truncf %18 : vector<16x32xf32> to vector<16x32xbf16>
      %c0_16 = arith.constant 0 : index
      %c0_17 = arith.constant 0 : index
      %20 = vector.load %arg7[%c0_16, %c0_17] : memref<16x32xbf16, #tpu.memory_space<vmem>>, vector<16x32xbf16>
      tpu.vector_store %arg7[%c0_16, %c0_17], %19 {strides = array<i32>} : memref<16x32xbf16, #tpu.memory_space<vmem>>, vector<16x32xbf16>,
    } else {
    }
    return
  }
  func.func @transform_0(%arg0: i32, %arg1: i32, %arg2: i32) -> (i32, i32) {
    %c0_i32 = arith.constant 0 : i32
    return %arg0, %arg2 : i32, i32
  }
  func.func @transform_1(%arg0: i32, %arg1: i32, %arg2: i32) -> (i32, i32) {
    %c0_i32 = arith.constant 0 : i32
    return %arg2, %arg1 : i32, i32
  }
  func.func @transform_2(%arg0: i32, %arg1: i32, %arg2: i32) -> (i32, i32) {
    %c0_i32 = arith.constant 0 : i32
    %c0_i32_0 = arith.constant 0 : i32
    return %c0_i32, %arg1 : i32, i32
  }
  func.func @transform_3(%arg0: i32, %arg1: i32, %arg2: i32) -> (i32, i32) {
    %c0_i32 = arith.constant 0 : i32
    return %arg0, %arg1 : i32, i32
  }
  func.func @transform_4(%arg0: i32, %arg1: i32, %arg2: i32) -> (i32, i32) {
    %c0_i32 = arith.constant 0 : i32
    return %arg0, %arg1 : i32, i32
  }
}

module attributes {stable_mosaic.version = 11 : i64} {
  func.func @_layernorm_kernel(%arg0: i32, %arg1: memref<16x32xbf16, #tpu.memory_space<vmem>>, %arg2: memref<1x32xf32, #tpu.memory_space<vmem>>, %arg3: memref<1x32xf32, #tpu.memory_space<vmem>>, %arg4: memref<16x32xbf16, #tpu.memory_space<vmem>>) attributes {dimension_semantics = [#tpu.dimension_semantics<parallel>], iteration_bounds = array<i64: 1>, scalar_prefetch = 0 : i64, scratch_operands = 0 : i64, tpu.core_type = #tpu.core_type<tc>, window_params = [{transform_indices = @transform_0, window_bounds = array<i64: 16, 32>}, {pipeline_mode = #tpu.pipeline_mode<synchronous>, transform_indices = @transform_1, window_bounds = array<i64: 1, 32>}, {pipeline_mode = #tpu.pipeline_mode<synchronous>, transform_indices = @transform_2, window_bounds = array<i64: 1, 32>}, {transform_indices = @transform_3, window_bounds = array<i64: 16, 32>}]} {
    %c0 = arith.constant 0 : index
    %c0_0 = arith.constant 0 : index
    %0 = vector.load %arg1[%c0, %c0_0] : memref<16x32xbf16, #tpu.memory_space<vmem>>, vector<16x32xbf16>
    %1 = arith.extf %0 : vector<16x32xbf16> to vector<16x32xf32>
    %cst = arith.constant dense<0.000000e+00> : vector<16xf32>
    %2 = vector.multi_reduction <add>, %1, %cst [1] : vector<16x32xf32> to vector<16xf32>
    %3 = vector.shape_cast %2 : vector<16xf32> to vector<16x1xf32>
    %cst_1 = arith.constant 3.200000e+01 : f32
    %4 = vector.broadcast %cst_1 : f32 to vector<16x1xf32>
    %5 = arith.divf %3, %4 : vector<16x1xf32>
    %6 = vector.broadcast %5 : vector<16x1xf32> to vector<16x32xf32>
    %7 = arith.subf %1, %6 : vector<16x32xf32>
    %8 = arith.mulf %7, %7 : vector<16x32xf32>
    %cst_2 = arith.constant dense<0.000000e+00> : vector<16xf32>
    %9 = vector.multi_reduction <add>, %8, %cst_2 [1] : vector<16x32xf32> to vector<16xf32>
    %10 = vector.shape_cast %9 : vector<16xf32> to vector<16x1xf32>
    %cst_3 = arith.constant 3.200000e+01 : f32
    %11 = vector.broadcast %cst_3 : f32 to vector<16x1xf32>
    %12 = arith.divf %10, %11 : vector<16x1xf32>
    %13 = vector.broadcast %5 : vector<16x1xf32> to vector<16x32xf32>
    %14 = arith.subf %1, %13 : vector<16x32xf32>
    %cst_4 = arith.constant 9.99999974E-6 : f32
    %15 = vector.broadcast %cst_4 : f32 to vector<16x1xf32>
    %16 = arith.addf %12, %15 : vector<16x1xf32>
    %17 = math.rsqrt %16 : vector<16x1xf32>
    %18 = vector.broadcast %17 : vector<16x1xf32> to vector<16x32xf32>
    %19 = arith.mulf %14, %18 : vector<16x32xf32>
    %c0_5 = arith.constant 0 : index
    %c0_6 = arith.constant 0 : index
    %20 = vector.load %arg2[%c0_5, %c0_6] : memref<1x32xf32, #tpu.memory_space<vmem>>, vector<1x32xf32>
    %21 = vector.broadcast %20 : vector<1x32xf32> to vector<16x32xf32>
    %22 = arith.mulf %19, %21 : vector<16x32xf32>
    %c0_7 = arith.constant 0 : index
    %c0_8 = arith.constant 0 : index
    %23 = vector.load %arg3[%c0_7, %c0_8] : memref<1x32xf32, #tpu.memory_space<vmem>>, vector<1x32xf32>
    %24 = vector.broadcast %23 : vector<1x32xf32> to vector<16x32xf32>
    %25 = arith.addf %22, %24 : vector<16x32xf32>
    %26 = arith.truncf %25 : vector<16x32xf32> to vector<16x32xbf16>
    %c0_9 = arith.constant 0 : index
    %c0_10 = arith.constant 0 : index
    %27 = vector.load %arg4[%c0_9, %c0_10] : memref<16x32xbf16, #tpu.memory_space<vmem>>, vector<16x32xbf16>
    tpu.vector_store %arg4[%c0_9, %c0_10], %26 {strides = array<i32>} : memref<16x32xbf16, #tpu.memory_space<vmem>>, vector<16x32xbf16>,
    return
  }
  func.func @transform_0(%arg0: i32) -> (i32, i32) {
    %c0_i32 = arith.constant 0 : i32
    %c0_i32_0 = arith.constant 0 : i32
    return %arg0, %c0_i32 : i32, i32
  }
  func.func @transform_1(%arg0: i32) -> (i32, i32) {
    %c0_i32 = arith.constant 0 : i32
    %c0_i32_0 = arith.constant 0 : i32
    %c0_i32_1 = arith.constant 0 : i32
    return %c0_i32, %c0_i32_0 : i32, i32
  }
  func.func @transform_2(%arg0: i32) -> (i32, i32) {
    %c0_i32 = arith.constant 0 : i32
    %c0_i32_0 = arith.constant 0 : i32
    %c0_i32_1 = arith.constant 0 : i32
    return %c0_i32, %c0_i32_0 : i32, i32
  }
  func.func @transform_3(%arg0: i32) -> (i32, i32) {
    %c0_i32 = arith.constant 0 : i32
    %c0_i32_0 = arith.constant 0 : i32
    return %arg0, %c0_i32 : i32, i32
  }
}

module attributes {stable_mosaic.version = 11 : i64} {
  func.func @_matmul_kernel(%arg0: i32, %arg1: i32, %arg2: i32, %arg3: memref<16x32xbf16, #tpu.memory_space<vmem>>, %arg4: memref<32x64xbf16, #tpu.memory_space<vmem>>, %arg5: memref<1x64xf32, #tpu.memory_space<vmem>>, %arg6: memref<16x64xbf16, #tpu.memory_space<vmem>>, %arg7: memref<16x64xf32, #tpu.memory_space<vmem>>) attributes {dimension_semantics = [#tpu.dimension_semantics<parallel>, #tpu.dimension_semantics<parallel>, #tpu.dimension_semantics<arbitrary>], iteration_bounds = array<i64: 1, 1, 1>, scalar_prefetch = 0 : i64, scratch_operands = 1 : i64, tpu.core_type = #tpu.core_type<tc>, window_params = [{transform_indices = @transform_0, window_bounds = array<i64: 16, 32>}, {transform_indices = @transform_1, window_bounds = array<i64: 32, 64>}, {transform_indices = @transform_2, window_bounds = array<i64: 1, 64>}, {transform_indices = @transform_3, window_bounds = array<i64: 16, 64>}]} {
    %c0_i32 = arith.constant 0 : i32
    %0 = arith.cmpi eq, %arg2, %c0_i32 : i32
    %1 = arith.extui %0 : i1 to i32
    %c0_i32_0 = arith.constant 0 : i32
    %2 = arith.cmpi ne, %1, %c0_i32_0 : i32
    scf.if %2 {
      %cst_10 = arith.constant 0.000000e+00 : f32
      %12 = vector.broadcast %cst_10 : f32 to vector<16x64xf32>
      %c0_11 = arith.constant 0 : index
      %c0_12 = arith.constant 0 : index
      %13 = vector.load %arg7[%c0_11, %c0_12] : memref<16x64xf32, #tpu.memory_space<vmem>>, vector<16x64xf32>
      tpu.vector_store %arg7[%c0_11, %c0_12], %12 {strides = array<i32>} : memref<16x64xf32, #tpu.memory_space<vmem>>, vector<16x64xf32>,
    } else {
    }
    %c0 = arith.constant 0 : index
    %c0_1 = arith.constant 0 : index
    %3 = vector.load %arg7[%c0, %c0_1] : memref<16x64xf32, #tpu.memory_space<vmem>>, vector<16x64xf32>
    %c0_2 = arith.constant 0 : index
    %c0_3 = arith.constant 0 : index
    %4 = vector.load %arg3[%c0_2, %c0_3] : memref<16x32xbf16, #tpu.memory_space<vmem>>, vector<16x32xbf16>
    %c0_4 = arith.constant 0 : index
    %c0_5 = arith.constant 0 : index
    %5 = vector.load %arg4[%c0_4, %c0_5] : memref<32x64xbf16, #tpu.memory_space<vmem>>, vector<32x64xbf16>
    %cst = arith.constant dense<0.000000e+00> : vector<16x64xf32>
    %6 = tpu.matmul %4, %5, %cst {dimension_numbers = #tpu.dot_dimension_numbers<[1], [0], [0], [1], [0, 0, 1, 1], [], []>} : vector<16x32xbf16>, vector<32x64xbf16>, vector<16x64xf32> -> vector<16x64xf32>
    %7 = arith.addf %3, %6 : vector<16x64xf32>
    %c0_6 = arith.constant 0 : index
    %c0_7 = arith.constant 0 : index
    %8 = vector.load %arg7[%c0_6, %c0_7] : memref<16x64xf32, #tpu.memory_space<vmem>>, vector<16x64xf32>
    tpu.vector_store %arg7[%c0_6, %c0_7], %7 {strides = array<i32>} : memref<16x64xf32, #tpu.memory_space<vmem>>, vector<16x64xf32>,
    %c0_i32_8 = arith.constant 0 : i32
    %9 = arith.cmpi eq, %arg2, %c0_i32_8 : i32
    %10 = arith.extui %9 : i1 to i32
    %c0_i32_9 = arith.constant 0 : i32
    %11 = arith.cmpi ne, %10, %c0_i32_9 : i32
    scf.if %11 {
      %c0_10 = arith.constant 0 : index
      %c0_11 = arith.constant 0 : index
      %12 = vector.load %arg7[%c0_10, %c0_11] : memref<16x64xf32, #tpu.memory_space<vmem>>, vector<16x64xf32>
      %c0_12 = arith.constant 0 : index
      %c0_13 = arith.constant 0 : index
      %13 = vector.load %arg5[%c0_12, %c0_13] : memref<1x64xf32, #tpu.memory_space<vmem>>, vector<1x64xf32>
      %14 = vector.broadcast %13 : vector<1x64xf32> to vector<16x64xf32>
      %15 = arith.addf %12, %14 : vector<16x64xf32>
      %cst_14 = arith.constant 5.000000e-01 : f32
      %16 = vector.broadcast %cst_14 : f32 to vector<16x64xf32>
      %17 = arith.mulf %16, %15 : vector<16x64xf32>
      %cst_15 = arith.constant 0.707106769 : f32
      %18 = vector.broadcast %cst_15 : f32 to vector<16x64xf32>
      %19 = arith.mulf %15, %18 : vector<16x64xf32>
      %20 = math.absf %19 : vector<16x64xf32>
      %cst_16 = arith.constant 0.327591091 : f32
      %21 = vector.broadcast %cst_16 : f32 to vector<16x64xf32>
      %22 = arith.mulf %21, %20 : vector<16x64xf32>
      %cst_17 = arith.constant 1.000000e+00 : f32
      %23 = vector.broadcast %cst_17 : f32 to vector<16x64xf32>
      %24 = arith.addf %23, %22 : vector<16x64xf32>
      %cst_18 = arith.constant 1.000000e+00 : f32
      %25 = vector.broadcast %cst_18 : f32 to vector<16x64xf32>
      %26 = arith.divf %25, %24 : vector<16x64xf32>
      %cst_19 = arith.constant 1.06140542 : f32
      %27 = vector.broadcast %cst_19 : f32 to vector<16x64xf32>
      %28 = arith.mulf %27, %26 : vector<16x64xf32>
      %cst_20 = arith.constant 1.45315206 : f32
      %29 = vector.broadcast %cst_20 : f32 to vector<16x64xf32>
      %30 = arith.subf %28, %29 : vector<16x64xf32>
      %31 = arith.mulf %30, %26 : vector<16x64xf32>
      %cst_21 = arith.constant 1.42141378 : f32
      %32 = vector.broadcast %cst_21 : f32 to vector<16x64xf32>
      %33 = arith.addf %31, %32 : vector<16x64xf32>
      %34 = arith.mulf %33, %26 : vector<16x64xf32>
      %cst_22 = arith.constant 0.284496725 : f32
      %35 = vector.broadcast %cst_22 : f32 to vector<16x64xf32>
      %36 = arith.subf %34, %35 : vector<16x64xf32>
      %37 = arith.mulf %36, %26 : vector<16x64xf32>
      %cst_23 = arith.constant 0.254829586 : f32
      %38 = vector.broadcast %cst_23 : f32 to vector<16x64xf32>
      %39 = arith.addf %37, %38 : vector<16x64xf32>
      %40 = arith.mulf %39, %26 : vector<16x64xf32>
      %cst_24 = arith.constant 0.000000e+00 : f32
      %41 = vector.broadcast %cst_24 : f32 to vector<16x64xf32>
      %42 = arith.subf %41, %20 : vector<16x64xf32>
      %43 = arith.mulf %42, %20 : vector<16x64xf32>
      %44 = math.exp %43 : vector<16x64xf32>
      %45 = arith.mulf %40, %44 : vector<16x64xf32>
      %cst_25 = arith.constant 1.000000e+00 : f32
      %46 = vector.broadcast %cst_25 : f32 to vector<16x64xf32>
      %47 = arith.subf %46, %45 : vector<16x64xf32>
      %cst_26 = arith.constant 0.000000e+00 : f32
      %48 = vector.broadcast %cst_26 : f32 to vector<16x64xf32>
      %49 = arith.cmpf oge, %19, %48 : vector<16x64xf32>
      %cst_27 = arith.constant 0.000000e+00 : f32
      %50 = vector.broadcast %cst_27 : f32 to vector<16x64xf32>
      %51 = arith.subf %50, %47 : vector<16x64xf32>
      %52 = arith.select %49, %47, %51 : vector<16x64xi1>, vector<16x64xf32>
      %cst_28 = arith.constant 1.000000e+00 : f32
      %53 = vector.broadcast %cst_28 : f32 to vector<16x64xf32>
      %54 = arith.addf %53, %52 : vector<16x64xf32>
      %55 = arith.mulf %17, %54 : vector<16x64xf32>
      %56 = arith.truncf %55 : vector<16x64xf32> to vector<16x64xbf16>
      %c0_29 = arith.constant 0 : index
      %c0_30 = arith.constant 0 : index
      %57 = vector.load %arg6[%c0_29, %c0_30] : memref<16x64xbf16, #tpu.memory_space<vmem>>, vector<16x64xbf16>
      tpu.vector_store %arg6[%c0_29, %c0_30], %56 {strides = array<i32>} : memref<16x64xbf16, #tpu.memory_space<vmem>>, vector<16x64xbf16>,
    } else {
    }
    return
  }
  func.func @transform_0(%arg0: i32, %arg1: i32, %arg2: i32) -> (i32, i32) {
    %c0_i32 = arith.constant 0 : i32
    return %arg0, %arg2 : i32, i32
  }
  func.func @transform_1(%arg0: i32, %arg1: i32, %arg2: i32) -> (i32, i32) {
    %c0_i32 = arith.constant 0 : i32
    return %arg2, %arg1 : i32, i32
  }
  func.func @transform_2(%arg0: i32, %arg1: i32, %arg2: i32) -> (i32, i32) {
    %c0_i32 = arith.constant 0 : i32
    %c0_i32_0 = arith.constant 0 : i32
    return %c0_i32, %arg1 : i32, i32
  }
  func.func @transform_3(%arg0: i32, %arg1: i32, %arg2: i32) -> (i32, i32) {
    %c0_i32 = arith.constant 0 : i32
    return %arg0, %arg1 : i32, i32
  }
}

module attributes {stable_mosaic.version = 11 : i64} {
  func.func @_matmul_kernel(%arg0: i32, %arg1: i32, %arg2: i32, %arg3: memref<16x32xbf16, #tpu.memory_space<vmem>>, %arg4: memref<32x512xbf16, #tpu.memory_space<vmem>>, %arg5: memref<16x512xf32, #tpu.memory_space<vmem>>, %arg6: memref<16x512xf32, #tpu.memory_space<vmem>>) attributes {dimension_semantics = [#tpu.dimension_semantics<parallel>, #tpu.dimension_semantics<parallel>, #tpu.dimension_semantics<arbitrary>], iteration_bounds = array<i64: 1, 1, 1>, scalar_prefetch = 0 : i64, scratch_operands = 1 : i64, tpu.core_type = #tpu.core_type<tc>, window_params = [{transform_indices = @transform_0, window_bounds = array<i64: 16, 32>}, {transform_indices = @transform_1, window_bounds = array<i64: 32, 512>}, {transform_indices = @transform_2, window_bounds = array<i64: 16, 512>}]} {
    %c0_i32 = arith.constant 0 : i32
    %0 = arith.cmpi eq, %arg2, %c0_i32 : i32
    %1 = arith.extui %0 : i1 to i32
    %c0_i32_0 = arith.constant 0 : i32
    %2 = arith.cmpi ne, %1, %c0_i32_0 : i32
    scf.if %2 {
      %cst_10 = arith.constant 0.000000e+00 : f32
      %12 = vector.broadcast %cst_10 : f32 to vector<16x512xf32>
      %c0_11 = arith.constant 0 : index
      %c0_12 = arith.constant 0 : index
      %13 = vector.load %arg6[%c0_11, %c0_12] : memref<16x512xf32, #tpu.memory_space<vmem>>, vector<16x512xf32>
      tpu.vector_store %arg6[%c0_11, %c0_12], %12 {strides = array<i32>} : memref<16x512xf32, #tpu.memory_space<vmem>>, vector<16x512xf32>,
    } else {
    }
    %c0 = arith.constant 0 : index
    %c0_1 = arith.constant 0 : index
    %3 = vector.load %arg6[%c0, %c0_1] : memref<16x512xf32, #tpu.memory_space<vmem>>, vector<16x512xf32>
    %c0_2 = arith.constant 0 : index
    %c0_3 = arith.constant 0 : index
    %4 = vector.load %arg3[%c0_2, %c0_3] : memref<16x32xbf16, #tpu.memory_space<vmem>>, vector<16x32xbf16>
    %c0_4 = arith.constant 0 : index
    %c0_5 = arith.constant 0 : index
    %5 = vector.load %arg4[%c0_4, %c0_5] : memref<32x512xbf16, #tpu.memory_space<vmem>>, vector<32x512xbf16>
    %cst = arith.constant dense<0.000000e+00> : vector<16x512xf32>
    %6 = tpu.matmul %4, %5, %cst {dimension_numbers = #tpu.dot_dimension_numbers<[1], [0], [0], [1], [0, 0, 1, 1], [], []>} : vector<16x32xbf16>, vector<32x512xbf16>, vector<16x512xf32> -> vector<16x512xf32>
    %7 = arith.addf %3, %6 : vector<16x512xf32>
    %c0_6 = arith.constant 0 : index
    %c0_7 = arith.constant 0 : index
    %8 = vector.load %arg6[%c0_6, %c0_7] : memref<16x512xf32, #tpu.memory_space<vmem>>, vector<16x512xf32>
    tpu.vector_store %arg6[%c0_6, %c0_7], %7 {strides = array<i32>} : memref<16x512xf32, #tpu.memory_space<vmem>>, vector<16x512xf32>,
    %c0_i32_8 = arith.constant 0 : i32
    %9 = arith.cmpi eq, %arg2, %c0_i32_8 : i32
    %10 = arith.extui %9 : i1 to i32
    %c0_i32_9 = arith.constant 0 : i32
    %11 = arith.cmpi ne, %10, %c0_i32_9 : i32
    scf.if %11 {
      %c0_10 = arith.constant 0 : index
      %c0_11 = arith.constant 0 : index
      %12 = vector.load %arg6[%c0_10, %c0_11] : memref<16x512xf32, #tpu.memory_space<vmem>>, vector<16x512xf32>
      %c0_12 = arith.constant 0 : index
      %c0_13 = arith.constant 0 : index
      %13 = vector.load %arg5[%c0_12, %c0_13] : memref<16x512xf32, #tpu.memory_space<vmem>>, vector<16x512xf32>
      tpu.vector_store %arg5[%c0_12, %c0_13], %12 {strides = array<i32>} : memref<16x512xf32, #tpu.memory_space<vmem>>, vector<16x512xf32>,
    } else {
    }
    return
  }
  func.func @transform_0(%arg0: i32, %arg1: i32, %arg2: i32) -> (i32, i32) {
    %c0_i32 = arith.constant 0 : i32
    return %arg0, %arg2 : i32, i32
  }
  func.func @transform_1(%arg0: i32, %arg1: i32, %arg2: i32) -> (i32, i32) {
    %c0_i32 = arith.constant 0 : i32
    return %arg2, %arg1 : i32, i32
  }
  func.func @transform_2(%arg0: i32, %arg1: i32, %arg2: i32) -> (i32, i32) {
    %c0_i32 = arith.constant 0 : i32
    return %arg0, %arg1 : i32, i32
  }
}

</mosaic_0001>

<bundles_post_ra>
// kernel: bart_decoder_forward.29
= control target key start
LH: loop header
LB: loop body
LE: loop exit
PB: predicated region body
PF: predicated region fallthrough
CT: control target
= control target key end

     0   :  { %vm19_vm0 = vcmask 785408   ;;  %v108_v1 = vmov 0.0   ;;  %vm47_vm1 = vcmask 261120   ;;  %vm83_vm2 = vcmask 781312   ;;  %s151_s1 = inlined_call_operand.vmem [shape: bf16[32,96], index: 1, kind: input, shape index: {}]   ;;  %s152_s2 = inlined_call_operand.vmem [shape: f32[1,96], index: 2, kind: input, shape index: {}]   ;;  %s153_s0 = inlined_call_operand.vmem [shape: bf16[16,32], index: 0, kind: input, shape index: {}]   ;;  %s154_s3 = inlined_call_operand.vmem [shape: bf16[16,96], index: 3, kind: output, shape index: {}]  }
   0x1   :  { %v105_v0 = vld [vmem:[%s151_s1 + $0x8] sm:$0xff]  ;;  %20 = vst.msk [vmem:[#allocation2] sm:$0xff] %vm19_vm0, %v108_v1  ;;  %v104_v2 = vld [vmem:[%s151_s1] sm:$0xff] }
   0x2   :  { %21 = vst.msk [vmem:[#allocation2 + $0x8] sm:$0xff] %vm19_vm0, %v108_v1  ;;  %57 = vmatpush.bf16.msra.mxu0 %v105_v0  ;;  %v103_v3 = vld [vmem:[%s153_s0] sm:$0xff] }
   0x3   :  { %v107_v8 = vld [vmem:[%s152_s2] ss:$0 sm:$0xff] }
   0x6   :  { %58 = vmatpush.bf16.msra.mxu0 %v104_v2 }
   0x8   :  { %v22_v4 = vld [vmem:[#allocation2] sm:$0xff] }
   0x9   :  { %102 = vmatmul.msk.bf16.vlgmr.msra.gmra.mxu0 %vm47_vm1, %v103_v3  ;;  %v23_v7 = vld [vmem:[#allocation2 + $0x8] sm:$0xff] }
  0x86   :  { %v60_v5 = vpop.f32.mrf.mxu0 }
  0x87   :  { %v65_v6 = vadd.f32 %v60_v5, %v22_v4 }
  0x89   :  { %68 = vst.msk [vmem:[#allocation2] sm:$0xff] %vm19_vm0, %v65_v6 }
  0x8e   :  { %v62_v9 = vpop.f32.mrf.mxu0 }
  0x8f   :  { %v66_v10 = vadd.f32 %v62_v9, %v23_v7 }
  0x90   :  { %v73_v11 = vld [vmem:[#allocation2] sm:$0xff] }
  0x91   :  { %v79_v12 = vadd.f32 %v107_v8, %v73_v11  ;;  %69 = vst.msk [vmem:[#allocation2 + $0x8] sm:$0xff] %vm19_vm0, %v66_v10 }
  0x93   :  { %v81_v13 = vpack.c.bf16 %v79_v12, %v79_v12 }
  0x95   :  { %84 = vst.msk [vmem:[%s154_s3] sm:$0xf] %vm83_vm2, %v81_v13 }
  0x98   :  { %v74_v14 = vld [vmem:[#allocation2 + $0x8] sm:$0xff] }
  0x99   :  { %v80_v15 = vadd.f32 %v107_v8, %v74_v14 }
  0x9b   :  { %v82_v16 = vpack.c.bf16 %v80_v15, %v80_v15 }
  0x9d   :  { %85 = vst.msk [vmem:[%s154_s3 + $0x4] sm:$0xf] %vm83_vm2, %v82_v16 }

// kernel: bart_decoder_forward.28
= control target key start
LH: loop header
LB: loop body
LE: loop exit
PB: predicated region body
PF: predicated region fallthrough
CT: control target
= control target key end

     0   :  { %vm18_vm0 = vcmask 261120   ;;  %v104_v5 = vmov 32.0   ;;  %vm84_vm6 = vcmask 257024   ;;  %s144_s0 = inlined_call_operand.vmem [shape: bf16[16,32], index: 0, kind: input, shape index: {}]   ;;  %s145_s1 = inlined_call_operand.vmem [shape: f32[1,32], index: 1, kind: input, shape index: {}]   ;;  %s146_s2 = inlined_call_operand.vmem [shape: f32[1,32], index: 2, kind: input, shape index: {}]   ;;  %s147_s3 = inlined_call_operand.vmem [shape: bf16[16,32], index: 3, kind: output, shape index: {}]  }
   0x1   :  { %v92_v0 = vld [vmem:[%s144_s0] sm:$0xff]   ;;  %98 = vrcp.f32 %v104_v5 }
   0x2   :  { %v93_v1 = vunpack.c.l.bf16 %v92_v0  ;;  %v94_v3 = vunpack.c.h.bf16 %v92_v0  ;;  %v96_v36 = vld [vmem:[%s145_s1] ss:$0 sm:$0xff] }
   0x3   :  { %v97_v39 = vld [vmem:[%s146_s2] ss:$0 sm:$0xff] }
   0x4   :  { %v19_v2 = vsel %vm18_vm0, %v93_v1, 0.0  ;;  %v22_v4 = vsel %vm18_vm0, %v94_v3, 0.0 }
   0x5   :  { %20 = vadd.xlane.f32.xlu0 %v19_v2 }
   0x7   :  { %v99_v6 = vpop.eup %98 }
   0x8   :  { %v26_v7 = vmul.f32 32.0, %v99_v6  ;;  %vm30_vm1 = vweird.f32 %v99_v6 }
   0xa   :  { %v27_v8 = vsub.f32 1.0, %v26_v7 }
   0xc   :  { %v28_v9 = vmul.f32 %v99_v6, %v27_v8 }
   0xd   :  { %23 = vadd.xlane.f32.xlu0 %v22_v4 }
   0xe   :  { %v29_v10 = vadd.f32 %v99_v6, %v28_v9 }
  0x10   :  { %v31_v11 = vsel %vm30_vm1, %v99_v6, %v29_v10 }
  0x78   :  { %v21_v12 = vpop.xlane.xlu0 %20 }
  0x79   :  { %v32_v13 = vmul.f32 %v31_v11, %v21_v12 }
  0x7b   :  { %v34_v14 = vsub.f32 %v93_v1, %v32_v13 }
  0x7d   :  { %v36_v15 = vmul.f32 %v34_v14, %v34_v14 }
  0x7f   :  { %v38_v16 = vsel %vm18_vm0, %v36_v15, 0.0 }
  0x80   :  { %39 = vadd.xlane.f32.xlu1 %v38_v16  ;;  %v24_v17 = vpop.xlane.xlu0 %23 }
  0x81   :  { %v33_v18 = vmul.f32 %v31_v11, %v24_v17 }
  0x83   :  { %v35_v19 = vsub.f32 %v94_v3, %v33_v18 }
  0x85   :  { %v37_v20 = vmul.f32 %v35_v19, %v35_v19 }
  0x87   :  { %v41_v21 = vsel %vm18_vm0, %v37_v20, 0.0 }
  0x88   :  { %42 = vadd.xlane.f32.xlu1 %v41_v21 }
  0xf3   :  { %v40_v22 = vpop.xlane.xlu1 %39 }
  0xf4   :  { %v44_v23 = vmul.f32 %v40_v22, %v31_v11 }
  0xf6   :  { %v46_v24 = vadd.f32 1e-05, %v44_v23 }
  0xf8   :  { %100 = vrsqrt.f32 %v46_v24  ;;  %vm54_vm3 = vweird.f32 %v46_v24 }
  0xfb   :  { %v43_v25 = vpop.xlane.xlu1 %42 }
  0xfc   :  { %v45_v26 = vmul.f32 %v43_v25, %v31_v11 }
  0xfe   :  { %v101_v27 = vpop.eup %100  ;;  %v47_v28 = vadd.f32 1e-05, %v45_v26 }
  0xff   :  { %v49_v29 = vmul.f32 %v101_v27, %v46_v24  ;;  %vm55_vm2 = vweird.f32 %v101_v27 }
 0x100   :  { %102 = vrsqrt.f32 %v47_v28  ;;  %vm56_vm4 = vmor %vm54_vm3, %vm55_vm2  ;;  %vm64_vm7 = vweird.f32 %v47_v28 }
 0x101   :  { %v50_v30 = vmul.f32 %v101_v27, %v49_v29 }
 0x103   :  { %v51_v31 = vmul.f32 0.5, %v50_v30 }
 0x105   :  { %v52_v32 = vsub.f32 1.5, %v51_v31 }
 0x106   :  { %v103_v33 = vpop.eup %102 }
 0x107   :  { %v53_v34 = vmul.f32 %v101_v27, %v52_v32  ;;  %v59_v35 = vmul.f32 %v103_v33, %v47_v28  ;;  %vm65_vm5 = vweird.f32 %v103_v33 }
 0x108   :  { %vm66_vm8 = vmor %vm64_vm7, %vm65_vm5 }
 0x109   :  { %v57_v37 = vsel %vm56_vm4, %v101_v27, %v53_v34  ;;  %v60_v38 = vmul.f32 %v103_v33, %v59_v35 }
 0x10a   :  { %v68_v40 = vmul.f32 %v57_v37, %v34_v14 }
 0x10b   :  { %v61_v41 = vmul.f32 0.5, %v60_v38 }
 0x10c   :  { %v74_v42 = vmul.f32 %v96_v36, %v68_v40 }
 0x10d   :  { %v62_v43 = vsub.f32 1.5, %v61_v41 }
 0x10e   :  { %v80_v44 = vadd.f32 %v97_v39, %v74_v42 }
 0x10f   :  { %v63_v45 = vmul.f32 %v103_v33, %v62_v43 }
 0x110   :  { %v82_v46 = vpack.c.bf16 %v80_v44, %v80_v44 }
 0x111   :  { %v67_v47 = vsel %vm66_vm8, %v103_v33, %v63_v45 }
 0x112   :  { %85 = vst.msk [vmem:[%s147_s3] sm:$0xf] %vm84_vm6, %v82_v46  ;;  %v69_v48 = vmul.f32 %v67_v47, %v35_v19 }
 0x114   :  { %v75_v49 = vmul.f32 %v96_v36, %v69_v48 }
 0x116   :  { %v81_v50 = vadd.f32 %v97_v39, %v75_v49 }
 0x118   :  { %v83_v51 = vpack.c.bf16 %v81_v50, %v81_v50 }
 0x11a   :  { %86 = vst.msk [vmem:[%s147_s3 + $0x4] sm:$0xf] %vm84_vm6, %v83_v51 }

// kernel: bart_decoder_forward.27
= control target key start
LH: loop header
LB: loop body
LE: loop exit
PB: predicated region body
PF: predicated region fallthrough
CT: control target
= control target key end

     0   :  { %vm16_vm0 = vcmask 261120   ;;  %v98_v4 = vmov 32.0   ;;  %vm82_vm6 = vcmask 257024   ;;  %s141_s0 = inlined_call_operand.vmem [shape: f32[16,32], index: 0, kind: input, shape index: {}]   ;;  %s142_s1 = inlined_call_operand.vmem [shape: f32[1,32], index: 1, kind: input, shape index: {}]   ;;  %s143_s2 = inlined_call_operand.vmem [shape: f32[1,32], index: 2, kind: input, shape index: {}]   ;;  %s144_s3 = inlined_call_operand.vmem [shape: bf16[16,32], index: 3, kind: output, shape index: {}]  }
   0x1   :  { %v14_v0 = vld [vmem:[%s141_s0] sm:$0xff]  ;;  %v15_v2 = vld [vmem:[%s141_s0 + $0x8] sm:$0xff]  ;;  %92 = vrcp.f32 %v98_v4 }
   0x2   :  { %v17_v1 = vsel %vm16_vm0, %v14_v0, 0.0  ;;  %v20_v3 = vsel %vm16_vm0, %v15_v2, 0.0  ;;  %v90_v35 = vld [vmem:[%s142_s1] ss:$0 sm:$0xff] }
   0x3   :  { %18 = vadd.xlane.f32.xlu0 %v17_v1  ;;  %v91_v38 = vld [vmem:[%s143_s2] ss:$0 sm:$0xff] }
   0x7   :  { %v93_v5 = vpop.eup %92 }
   0x8   :  { %v24_v6 = vmul.f32 32.0, %v93_v5  ;;  %vm28_vm1 = vweird.f32 %v93_v5 }
   0xa   :  { %v25_v7 = vsub.f32 1.0, %v24_v6 }
   0xb   :  { %21 = vadd.xlane.f32.xlu0 %v20_v3 }
   0xc   :  { %v26_v8 = vmul.f32 %v93_v5, %v25_v7 }
   0xe   :  { %v27_v9 = vadd.f32 %v93_v5, %v26_v8 }
  0x10   :  { %v29_v10 = vsel %vm28_vm1, %v93_v5, %v27_v9 }
  0x76   :  { %v19_v11 = vpop.xlane.xlu0 %18 }
  0x77   :  { %v30_v12 = vmul.f32 %v29_v10, %v19_v11 }
  0x79   :  { %v32_v13 = vsub.f32 %v14_v0, %v30_v12 }
  0x7b   :  { %v34_v14 = vmul.f32 %v32_v13, %v32_v13 }
  0x7d   :  { %v36_v15 = vsel %vm16_vm0, %v34_v14, 0.0 }
  0x7e   :  { %37 = vadd.xlane.f32.xlu1 %v36_v15  ;;  %v22_v16 = vpop.xlane.xlu0 %21 }
  0x7f   :  { %v31_v17 = vmul.f32 %v29_v10, %v22_v16 }
  0x81   :  { %v33_v18 = vsub.f32 %v15_v2, %v31_v17 }
  0x83   :  { %v35_v19 = vmul.f32 %v33_v18, %v33_v18 }
  0x85   :  { %v39_v20 = vsel %vm16_vm0, %v35_v19, 0.0 }
  0x86   :  { %40 = vadd.xlane.f32.xlu1 %v39_v20 }
  0xf1   :  { %v38_v21 = vpop.xlane.xlu1 %37 }
  0xf2   :  { %v42_v22 = vmul.f32 %v38_v21, %v29_v10 }
  0xf4   :  { %v44_v23 = vadd.f32 1e-05, %v42_v22 }
  0xf6   :  { %94 = vrsqrt.f32 %v44_v23  ;;  %vm52_vm3 = vweird.f32 %v44_v23 }
  0xf9   :  { %v41_v24 = vpop.xlane.xlu1 %40 }
  0xfa   :  { %v43_v25 = vmul.f32 %v41_v24, %v29_v10 }
  0xfc   :  { %v95_v26 = vpop.eup %94  ;;  %v45_v27 = vadd.f32 1e-05, %v43_v25 }
  0xfd   :  { %v47_v28 = vmul.f32 %v95_v26, %v44_v23  ;;  %vm53_vm2 = vweird.f32 %v95_v26 }
  0xfe   :  { %96 = vrsqrt.f32 %v45_v27  ;;  %vm54_vm4 = vmor %vm52_vm3, %vm53_vm2  ;;  %vm62_vm7 = vweird.f32 %v45_v27 }
  0xff   :  { %v48_v29 = vmul.f32 %v95_v26, %v47_v28 }
 0x101   :  { %v49_v30 = vmul.f32 0.5, %v48_v29 }
 0x103   :  { %v50_v31 = vsub.f32 1.5, %v49_v30 }
 0x104   :  { %v97_v32 = vpop.eup %96 }
 0x105   :  { %v51_v33 = vmul.f32 %v95_v26, %v50_v31  ;;  %v57_v34 = vmul.f32 %v97_v32, %v45_v27  ;;  %vm63_vm5 = vweird.f32 %v97_v32 }
 0x106   :  { %vm64_vm8 = vmor %vm62_vm7, %vm63_vm5 }
 0x107   :  { %v55_v36 = vsel %vm54_vm4, %v95_v26, %v51_v33  ;;  %v58_v37 = vmul.f32 %v97_v32, %v57_v34 }
 0x108   :  { %v66_v39 = vmul.f32 %v55_v36, %v32_v13 }
 0x109   :  { %v59_v40 = vmul.f32 0.5, %v58_v37 }
 0x10a   :  { %v72_v41 = vmul.f32 %v90_v35, %v66_v39 }
 0x10b   :  { %v60_v42 = vsub.f32 1.5, %v59_v40 }
 0x10c   :  { %v78_v43 = vadd.f32 %v91_v38, %v72_v41 }
 0x10d   :  { %v61_v44 = vmul.f32 %v97_v32, %v60_v42 }
 0x10e   :  { %v80_v45 = vpack.c.bf16 %v78_v43, %v78_v43 }
 0x10f   :  { %v65_v46 = vsel %vm64_vm8, %v97_v32, %v61_v44 }
 0x110   :  { %83 = vst.msk [vmem:[%s144_s3] sm:$0xf] %vm82_vm6, %v80_v45  ;;  %v67_v47 = vmul.f32 %v65_v46, %v33_v18 }
 0x112   :  { %v73_v48 = vmul.f32 %v90_v35, %v67_v47 }
 0x114   :  { %v79_v49 = vadd.f32 %v91_v38, %v73_v48 }
 0x116   :  { %v81_v50 = vpack.c.bf16 %v79_v49, %v79_v49 }
 0x118   :  { %84 = vst.msk [vmem:[%s144_s3 + $0x4] sm:$0xf] %vm82_vm6, %v81_v50 }

// kernel: bart_decoder_forward.30
= control target key start
LH: loop header
LB: loop body
LE: loop exit
PB: predicated region body
PF: predicated region fallthrough
CT: control target
= control target key end

     0   :  { %s887_s12 = smov 0   ;;  %s889_s13 = smov 0   ;;  %s1025_s0 = inlined_call_operand.vmem [shape: bf16[2,8,96], index: 0, kind: input, shape index: {}, may-alias: {0,1}]   ;;  %s1026_s1 = inlined_call_operand.vmem [shape: bf16[2,8,96], index: 1, kind: input, shape index: {}, may-alias: {0,1}]   ;;  %s1027_s2 = inlined_call_operand.vmem [shape: f32[2,1,8], index: 2, kind: input, shape index: {}]   ;;  %s1028_s3 = inlined_call_operand.vmem [shape: bf16[2,8,32], index: 3, kind: output, shape index: {}]  }
   0x1   :  { %s891_s14 = smov 0  }
   0x2 LB: > { %s32_s15 = sadd.s32 1, %s840_s13  ;;  %p736_p0 = scmp.ge.s32.totalorder %s844_s14, 1  ;;  %s844_s14 = sphi %s891_s14, %s13_s14   ;;  %s840_s13 = sphi %s889_s13, %s1030_s13   ;;  %s836_s12 = sphi %s887_s12, %s1029_s12  }
   0x3   : > { %p34_p1 = scmp.ge.s32.totalorder %s32_s15, 2  ;;  %p189_p2 = scmp.lt.s32.totalorder %s844_s14, 3 }
   0x5   : > { %s1032_s15 = smov (%p34_p1, %s32_s15), 0  ;;  %p190_p3 = pnand %p736_p0, %p189_p2 }
   0x6   : > { %p230_p4 = scmp.lt.s32.totalorder (!%p190_p3), %s836_s12, 1  ;;  %s846_s23 = smov (!%p190_p3), 96  }
   0x7   : > { %193 = sbr.rel (%p190_p3) target bundleno = 1173 (0x495), region = 32  ;;  %s847_s24 = smov (!%p190_p3), 88  }
   0x8   : > { %s848_s28 = smov (!%p190_p3), 120   ;;  %s849_s29 = smov (!%p190_p3), 64  }
   0x9   : > { %s850_s30 = smov (!%p190_p3), 72   ;;  %s851_s4 = smov (!%p190_p3), 104  }
   0xa   : > { %s855_s7 = smov (!%p190_p3), 80   ;;  %s856_s8 = smov (!%p190_p3), 112  }
   0xb   : > { %s858_s9 = smov (!%p190_p3), 48   ;;  %s860_s10 = smov (!%p190_p3), 56  }
   0xc   : > { %s1034_s12 = smov (!%p230_p4, %s836_s12), 1  ;;  %vm297_vm0 = vcmask 64512   ;;  %vm262_vm1 = vcmask 261120   ;;  %v852_v10 = vmov -inf   ;;  %v273_v12 = vlaneseq  ;;  %s862_s11 = smov 40  }
   0xd   : > { %s908_s16 = sshll.u32 %s1034_s12, 2  ;;  %s249_s22 = scalar_lea.vmem %s1027_s2, %s1034_s12  ;;  %263 = vst.msk [vmem:[#allocation2] sm:$0xff] %vm262_vm1, %v852_v10  ;;  %v853_v16 = vmov -1e+09   ;;  %v854_v23 = vmov 0   ;;  %vm338_vm3 = vcmask 1043456  }
   0xe   : > { %s243_s19 = scalar_lea.vmem %s1026_s1, %s908_s16  ;;  %s236_s27 = scalar_lea.vmem %s1025_s0, %s908_s16  ;;  %v274_v13 = vshrl.u32 %v273_v12, 7  ;;  %v278_v14 = vand.u32 127, %v273_v12  ;;  %v803_v15 = vld [vmem:[%s249_s22] ss:$0 sm:$0xff]  ;;  %795 = vset.pattern.permute.xlu1 %v854_v23  ;;  %v857_v48 = vmov 8   ;;  %v859_v59 = vmov 24  }
   0xf   : > { %v291_v0 = vld [vmem:[%s243_s19] sm:$0xf]  ;;  %796 = vset.pattern.permute.xlu0 %v857_v48  ;;  %798 = vset.pattern.permute.xlu2 %v859_v59  ;;  %vm571_vm4 = vcmask 130048   ;;  %vm573_vm5 = vcmask 195584   ;;  %s864_s12 = smov 8   ;;  %s865_s17 = smov 24  }
  0x10   : > { %v293_v1 = vunpack.c.l.b16 %v291_v0  ;;  %v290_v3 = vld [vmem:[%s236_s27] sm:$0xf]  ;;  %vm281_vm2 = vcmp.ge.s32.totalorder %v274_v13, %v278_v14  ;;  %s866_s18 = smov 16   ;;  %s256_s21 = scalar_lea.vmem %s1028_s3, %s908_s16  ;;  %vm626_vm10 = vcmask 257024  }
  0x11   : > { %v364_v4 = vunpack.c.l.b16 %v290_v3  ;;  %v282_v17 = vsel %vm281_vm2, 0.0, %v853_v16 }
  0x12   : > { %v918_v2 = vpack.c.b16 %v293_v1, %v293_v1  ;;  %v938_v18 = vadd.f32 %v803_v15, %v282_v17 }
  0x13   : > { %v365_v5 = vpack.c.b16 %v364_v4, %v364_v4 }
  0x14   : > { %295 = vrot.lane.b32.xlu0 %v918_v2, %s846_s23  ;;  %368 = vrot.lane.b32.xlu1 %v918_v2, %s847_s24  ;;  %v945_v29 = vld [vmem:[#allocation2] sm:$0xff] }
  0x15   : > { %366 = vrot.lane.b32.xlu2 %v365_v5, %s848_s28 }
  0x1d   : > { %333 = vrot.lane.b32.xlu2 %v918_v2, %s849_s29 }
  0x25   : > { %504 = vrot.lane.b32.xlu2 %v918_v2, %s850_s30 }
  0x2d   : > { %502 = vrot.lane.b32.xlu2 %v365_v5, %s851_s4 }
  0x6f   : > { %v367_v11 = vpop.permute.xlu2 %366 }
  0x77   : > { %v334_v24 = vpop.permute.xlu2 %333 }
  0x78   : > { %v340_v35 = vsel %vm338_vm3, %v334_v24, 0 }
  0x79   : > { %349 = vmatpush.bf16.msra.mxu1 %v340_v35 }
  0x7f   : > { %v505_v25 = vpop.permute.xlu2 %504 }
  0x80   : > { %v510_v26 = vsel %vm297_vm0, %v505_v25, 0 }
  0x86   : > { %v296_v6 = vpop.permute.xlu0 %295  ;;  %v369_v8 = vpop.permute.xlu1 %368 }
  0x87   : > { %v302_v7 = vsel %vm297_vm0, %v296_v6, 0  ;;  %v374_v9 = vsel %vm297_vm0, %v369_v8, 0  ;;  %v503_v27 = vpop.permute.xlu2 %502 }
  0x88   : > { %311 = vmatpush.bf16.xpose.msra.mxu0 %v302_v7  ;;  %383 = vmatpush.bf16.xpose.msra.mxu2 %v374_v9  ;;  %v861_v9 = vmov 16  }
  0x8f   : > { %740 = vmatmul.msk.bf16.vlgmr.msra.gmra.mxu0 %vm297_vm0, %v290_v3  ;;  %742 = vmatmul.msk.bf16.vlgmr.msra.gmra.mxu2 %vm297_vm0, %v367_v11 }
  0x90   : > { %519 = vmatpush.bf16.xpose.msrb.mxu0 %v510_v26 }
  0x9f   : > { %746 = vmatmul.msk.bf16.vlgmr.msrb.gmra.mxu0 %vm297_vm0, %v503_v27  ;;  %v863_v27 = vmov 0.0  }
  0xa0   : > { %264 = vst.msk [vmem:[#allocation3] sm:$0xff] %vm262_vm1, %v863_v27 }
  0xa1   : > { %265 = vst.msk [vmem:[#allocation4] sm:$0xff] %vm262_vm1, %v863_v27 }
 0x10c   : > { %v313_v19 = vpop.f32.mrf.mxu0 }
 0x10d   : > { %v314_v20 = vadd.f32 %v313_v19, %v938_v18 }
 0x10f   : > { %v317_v21 = vsel %vm297_vm0, %v314_v20, -inf }
 0x110   : > { %318 = vmax.xlane.f32.xlu0 %v317_v21 }
 0x112   : > { %v385_v28 = vpop.f32.mrf.mxu2 }
 0x113   : > { %v386_v33 = vadd.f32 %v385_v28, %v938_v18 }
 0x114   : > { %v315_v22 = vpop.f32.mrf.mxu0 }
 0x115   : > { %v389_v34 = vsel %vm297_vm0, %v386_v33, -inf }
 0x11a   : > { %v387_v32 = vpop.f32.mrf.mxu2 }
 0x11c   : > { %v521_v39 = vpop.f32.mrf.mxu0 }
 0x11d   : > { %v956_v40 = vadd.f32 %v521_v39, %v938_v18 }
 0x11f   : > { %v525_v41 = vsel %vm297_vm0, %v956_v40, -inf }
 0x120   : > { %526 = vmax.xlane.f32.xlu0 %v525_v41 }
 0x124   : > { %v523_v46 = vpop.f32.mrf.mxu0 }
 0x183   : > { %v319_v30 = vpop.xlane.xlu0 %318 }
 0x184   : > { %v320_v31 = vmax.f32 %v945_v29, %v319_v30 }
 0x186   : > { %326 = vperm.xlu1 %795, %v320_v31   ;;  %v321_v0 = vsub.f32 %v945_v29, %v320_v31 }
 0x188   : > { %v322_v1 = vmul.f32 1.442695, %v321_v0 }
 0x18e   : > { %436 = vrot.lane.b32.xlu1 %v918_v2, %s855_s7 }
 0x18f   : > { %797 = vset.pattern.permute.xlu1 %v861_v9 }
 0x193   : > { %v527_v52 = vpop.xlane.xlu0 %526 }
 0x194   : > { %v528_v53 = vmax.f32 %v945_v29, %v527_v52 }
 0x196   : > { %434 = vrot.lane.b32.xlu1 %v365_v5, %s856_s8  ;;  %v529_v54 = vsub.f32 %v945_v29, %v528_v53 }
 0x198   : > { %v530_v56 = vmul.f32 1.442695, %v529_v54 }
 0x1c0   : > { %390 = vmax.xlane.f32.xlu1 %v389_v34 }
 0x1f8   : > { %v952_v36 = vpop.permute.xlu1 %326 }
 0x1f9   : > { %v329_v37 = vsub.f32 %v314_v20, %v952_v36 }
 0x1fb   : > { %v330_v38 = vmul.f32 1.442695, %v329_v37 }
 0x1fd   : > { %804 = vpow2.f32 %v330_v38 }
 0x1fe   : > { %806 = vpow2.f32 %v530_v56 }
 0x1ff   : > { %808 = vpow2.f32 %v322_v1 }
 0x200   : > { %v437_v42 = vpop.permute.xlu1 %436 }
 0x201   : > { %v442_v43 = vsel %vm297_vm0, %v437_v42, 0 }
 0x202   : > { %451 = vmatpush.bf16.xpose.msrb.mxu1 %v442_v43 }
 0x203   : > { %v805_v44 = vpop.eup %804 }
 0x204   : > { %v332_v45 = vpack.c.bf16 %v805_v44, %v805_v44  ;;  %v360_v51 = vsel %vm297_vm0, %v805_v44, 0.0  ;;  %v807_v58 = vpop.eup %806 }
 0x205   : > { %v809_v3 = vpop.eup %808 }
 0x206   : > { %741 = vmatmul.msk.bf16.vlgmr.msra.gmra.mxu1 %vm297_vm0, %v332_v45 }
 0x208   : > { %v435_v47 = vpop.permute.xlu1 %434 }
 0x216   : > { %744 = vmatmul.msk.bf16.vlgmr.msrb.gmra.mxu1 %vm297_vm0, %v435_v47 }
 0x233   : > { %v391_v49 = vpop.xlane.xlu1 %390 }
 0x234   : > { %v392_v50 = vmax.f32 %v945_v29, %v391_v49 }
 0x236   : > { %398 = vperm.xlu0 %796, %v392_v50   ;;  %v393_v12 = vsub.f32 %v945_v29, %v392_v50  ;;  %v289_v50 = vld [vmem:[#allocation3] sm:$0xff] }
 0x238   : > { %v394_v13 = vmul.f32 1.442695, %v393_v12 }
 0x23e   : > { %473 = vrot.lane.b32.xlu0 %v918_v2, %s858_s9 }
 0x23f   : > { %801 = vset.pattern.permute.xlu0 %v859_v59 }
 0x268   : > { %361 = vadd.xlane.f32.xlu0 %v360_v51 }
 0x27c   : > { %564 = vperm.xlu0 %801, %v807_v58  }
 0x283   : > { %v968_v55 = vpop.f32.mrf.mxu1 }
 0x28b   : > { %v353_v57 = vpop.f32.mrf.mxu1 }
 0x293   : > { %v453_v60 = vpop.f32.mrf.mxu1 }
 0x294   : > { %v971_v61 = vadd.f32 %v453_v60, %v938_v18 }
 0x296   : > { %v457_v62 = vsel %vm297_vm0, %v971_v61, -inf }
 0x297   : > { %458 = vmax.xlane.f32.xlu2 %v457_v62 }
 0x29b   : > { %v455_v63 = vpop.f32.mrf.mxu1 }
 0x2a8   : > { %v399_v4 = vpop.permute.xlu0 %398 }
 0x2a9   : > { %v401_v5 = vsub.f32 %v386_v33, %v399_v4  ;;  %v575_v28 = vsel %vm297_vm0, %v952_v36, %v399_v4 }
 0x2ab   : > { %v402_v6 = vmul.f32 1.442695, %v401_v5 }
 0x2ad   : > { %810 = vpow2.f32 %v402_v6  ;;  %v586_v6 = vld [vmem:[#allocation4] sm:$0xff] }
 0x2ae   : > { %812 = vpow2.f32 %v394_v13 }
 0x2af   : > { %405 = vrot.lane.b32.xlu2 %v918_v2, %s860_s10 }
 0x2b0   : > { %v474_v25 = vpop.permute.xlu0 %473 }
 0x2b1   : > { %v479_v26 = vsel %vm338_vm3, %v474_v25, 0 }
 0x2b3   : > { %v811_v7 = vpop.eup %810 }
 0x2b4   : > { %v431_v8 = vsel %vm297_vm0, %v811_v7, 0.0  ;;  %v404_v16 = vpack.c.bf16 %v811_v7, %v811_v7  ;;  %v813_v21 = vpop.eup %812 }
 0x2b7   : > { %534 = vperm.xlu2 %798, %v528_v53  }
 0x2bf   : > { %799 = vset.pattern.permute.xlu2 %v854_v23 }
 0x2c0   : > { %357 = vperm.xlu2 %799, %v809_v3  }
 0x2db   : > { %v362_v44 = vpop.xlane.xlu0 %361 }
 0x2e9   : > { %432 = vadd.xlane.f32.xlu2 %v431_v8 }
 0x2ee   : > { %v565_v49 = vpop.permute.xlu0 %564 }
 0x30a   : > { %v459_v10 = vpop.xlane.xlu2 %458 }
 0x30b   : > { %v460_v11 = vmax.f32 %v945_v29, %v459_v10 }
 0x30d   : > { %466 = vperm.xlu1 %797, %v460_v11   ;;  %v461_v17 = vsub.f32 %v945_v29, %v460_v11 }
 0x30f   : > { %v462_v18 = vmul.f32 1.442695, %v461_v17 }
 0x311   : > { %814 = vpow2.f32 %v462_v18 }
 0x312   : > { %v406_v14 = vpop.permute.xlu2 %405 }
 0x313   : > { %v411_v15 = vsel %vm338_vm3, %v406_v14, 0 }
 0x314   : > { %420 = vmatpush.bf16.msra.mxu3 %v411_v15 }
 0x315   : > { %541 = vrot.lane.b32.xlu1 %v918_v2, %s862_s11 }
 0x316   : > { %800 = vset.pattern.permute.xlu1 %v857_v48 }
 0x317   : > { %743 = vmatmul.msk.bf16.vlgmr.msra.gmra.mxu3 %vm297_vm0, %v404_v16  ;;  %v815_v23 = vpop.eup %814 }
 0x318   : > { %488 = vmatpush.bf16.msrb.mxu3 %v479_v26 }
 0x31a   : > { %v535_v19 = vpop.permute.xlu2 %534 }
 0x31b   : > { %v537_v20 = vsub.f32 %v956_v40, %v535_v19 }
 0x31d   : > { %v538_v22 = vmul.f32 1.442695, %v537_v20  ;;  %428 = vperm.xlu1 %800, %v813_v21  }
 0x31f   : > { %816 = vpow2.f32 %v538_v22 }
 0x322   : > { %v358_v43 = vpop.permute.xlu2 %357 }
 0x325   : > { %v817_v24 = vpop.eup %816  ;;  %802 = vset.pattern.permute.xlu1 %v861_v9 }
 0x326   : > { %496 = vperm.xlu1 %802, %v815_v23   ;;  %v567_v2 = vsel %vm297_vm0, %v817_v24, 0.0  ;;  %v540_v38 = vpack.c.bf16 %v817_v24, %v817_v24 }
 0x327   : > { %568 = vadd.xlane.f32.xlu2 %v567_v2 }
 0x35c   : > { %v433_v46 = vpop.xlane.xlu2 %432 }
 0x35d   : > { %v581_v52 = vsel %vm297_vm0, %v362_v44, %v433_v46 }
 0x37f   : > { %v467_v29 = vpop.permute.xlu1 %466 }
 0x380   : > { %v469_v30 = vsub.f32 %v971_v61, %v467_v29  ;;  %v576_v31 = vsel %vm571_vm4, %v575_v28, %v467_v29 }
 0x381   : > { %v577_v32 = vsel %vm573_vm5, %v576_v31, %v535_v19 }
 0x382   : > { %v470_v33 = vmul.f32 1.442695, %v469_v30  ;;  %579 = vst.msk [vmem:[#allocation2] sm:$0xff] %vm262_vm1, %v577_v32 }
 0x384   : > { %818 = vpow2.f32 %v470_v33 }
 0x387   : > { %v542_v34 = vpop.permute.xlu1 %541 }
 0x388   : > { %v547_v35 = vsel %vm338_vm3, %v542_v34, 0 }
 0x389   : > { %556 = vmatpush.bf16.msrb.mxu2 %v547_v35 }
 0x38a   : > { %v819_v37 = vpop.eup %818 }
 0x38b   : > { %v499_v39 = vsel %vm297_vm0, %v819_v37, 0.0  ;;  %v472_v36 = vpack.c.bf16 %v819_v37, %v819_v37 }
 0x38c   : > { %500 = vadd.xlane.f32.xlu1 %v499_v39  ;;  %747 = vmatmul.msk.bf16.vlgmr.msrb.gmra.mxu2 %vm297_vm0, %v540_v38 }
 0x38d   : > { %745 = vmatmul.msk.bf16.vlgmr.msrb.gmra.mxu3 %vm297_vm0, %v472_v36 }
 0x38f   : > { %v429_v42 = vpop.permute.xlu1 %428 }
 0x390   : > { %v570_v47 = vsel %vm297_vm0, %v358_v43, %v429_v42 }
 0x398   : > { %v497_v45 = vpop.permute.xlu1 %496 }
 0x399   : > { %v572_v48 = vsel %vm571_vm4, %v570_v47, %v497_v45 }
 0x39a   : > { %v422_v40 = vpop.f32.mrf.mxu3  ;;  %v574_v51 = vsel %vm573_vm5, %v572_v48, %v565_v49  ;;  %v569_v56 = vpop.xlane.xlu2 %568 }
 0x39b   : > { %589 = vrot.lane.b32.xlu2 %v422_v40, %s864_s12  ;;  %v580_v54 = vmul.f32 %v574_v51, %v289_v50  ;;  %v587_v9 = vmul.f32 %v586_v6, %v574_v51 }
 0x3a2   : > { %v424_v41 = vpop.f32.mrf.mxu3 }
 0x3f5   : > { %v590_v3 = vpop.permute.xlu2 %589 }
 0x3f6   : > { %v600_v7 = vsel %vm297_vm0, %v968_v55, %v590_v3 }
 0x3ff   : > { %v501_v53 = vpop.xlane.xlu1 %500 }
 0x400   : > { %v582_v57 = vsel %vm571_vm4, %v581_v52, %v501_v53 }
 0x401   : > { %v583_v58 = vsel %vm573_vm5, %v582_v57, %v569_v56 }
 0x402   : > { %v584_v59 = vadd.f32 %v583_v58, %v580_v54 }
 0x404   : > { %585 = vst.msk [vmem:[#allocation3] sm:$0xff] %vm262_vm1, %v584_v59 }
 0x40b   : > { %v609_v0 = vld [vmem:[#allocation3] sm:$0xff] }
 0x40c   : > { %820 = vrcp.f32 %v609_v0  ;;  %v621_v16 = vand.u32 2147483648, %v609_v0  ;;  %vm615_vm7 = vweird.f32 %v609_v0  ;;  %v619_v17 = vand.u32 2147483647, %v609_v0 }
 0x40e   : > { %v622_v55 = vor.u32 1.1754944e-38, %v621_v16  ;;  %vm620_vm9 = vcmp.eq.f32.partialorder %v619_v17, 8.507059e+37 }
 0x40f   : > { %v558_v60 = vpop.f32.mrf.mxu2 }
 0x410   : > { %597 = vrot.lane.b32.xlu2 %v558_v60, %s865_s17  ;;  %v490_v61 = vpop.f32.mrf.mxu3 }
 0x411   : > { %593 = vrot.lane.b32.xlu1 %v490_v61, %s866_s18 }
 0x412   : > { %v821_v1 = vpop.eup %820 }
 0x413   : > { %v611_v4 = vmul.f32 %v821_v1, %v609_v0  ;;  %vm616_vm6 = vweird.f32 %v821_v1 }
 0x414   : > { %vm617_vm8 = vmor %vm615_vm7, %vm616_vm6 }
 0x415   : > { %v612_v5 = vsub.f32 1.0, %v611_v4 }
 0x417   : > { %v560_v62 = vpop.f32.mrf.mxu2  ;;  %v613_v10 = vmul.f32 %v821_v1, %v612_v5 }
 0x418   : > { %v492_v63 = vpop.f32.mrf.mxu3 }
 0x419   : > { %v614_v15 = vadd.f32 %v821_v1, %v613_v10 }
 0x41b   : > { %v618_v18 = vsel %vm617_vm8, %v821_v1, %v614_v15 }
 0x41c   : > { %v623_v20 = vsel %vm620_vm9, %v622_v55, %v618_v18 }
 0x46a   : > { %v598_v11 = vpop.permute.xlu2 %597 }
 0x483   : > { %v594_v8 = vpop.permute.xlu1 %593 }
 0x484   : > { %v601_v12 = vsel %vm571_vm4, %v600_v7, %v594_v8 }
 0x485   : > { %v602_v13 = vsel %vm573_vm5, %v601_v12, %v598_v11 }
 0x486   : > { %v603_v14 = vadd.f32 %v602_v13, %v587_v9 }
 0x488   : > { %604 = vst.msk [vmem:[#allocation4] sm:$0xff] %vm262_vm1, %v603_v14 }
 0x48f   : > { %v608_v19 = vld [vmem:[#allocation4] sm:$0xff] }
 0x490   : > { %v624_v21 = vmul.f32 %v623_v20, %v608_v19 }
 0x492   : > { %v625_v22 = vpack.c.bf16 %v624_v21, %v624_v21 }
 0x494   : > { %627 = vst.msk [vmem:[%s256_s21] sm:$0xf] %vm626_vm10, %v625_v22 }
 0x495 PF: > { %s13_s14 = sadd.s32 1, %s844_s14   ;;  %s1029_s12 = smov %s840_s13 }
 0x496   : > { %p10_p5 = scmp.ge.s32.totalorder %s13_s14, 4   ;;  %s1030_s13 = smov %s1032_s15 }
 0x498   :  { %12 = sbr.rel (!%p10_p5) target bundleno = 2 (0x2), region = 80 }

// kernel: bart_decoder_forward.33
= control target key start
LH: loop header
LB: loop body
LE: loop exit
PB: predicated region body
PF: predicated region fallthrough
CT: control target
= control target key end

     0   :  { %vm19_vm0 = vcmask 261120   ;;  %v107_v1 = vmov 0.0   ;;  %vm82_vm1 = vcmask 257024   ;;  %s151_s1 = inlined_call_operand.vmem [shape: bf16[32,32], index: 1, kind: input, shape index: {}]   ;;  %s152_s2 = inlined_call_operand.vmem [shape: f32[1,32], index: 2, kind: input, shape index: {}]   ;;  %s153_s0 = inlined_call_operand.vmem [shape: bf16[16,32], index: 0, kind: input, shape index: {}]   ;;  %s154_s3 = inlined_call_operand.vmem [shape: bf16[16,32], index: 3, kind: output, shape index: {}]  }
   0x1   :  { %v104_v0 = vld [vmem:[%s151_s1 + $0x8] sm:$0xff]  ;;  %20 = vst.msk [vmem:[#allocation2] sm:$0xff] %vm19_vm0, %v107_v1  ;;  %v103_v2 = vld [vmem:[%s151_s1] sm:$0xff] }
   0x2   :  { %21 = vst.msk [vmem:[#allocation2 + $0x8] sm:$0xff] %vm19_vm0, %v107_v1  ;;  %57 = vmatpush.bf16.msra.mxu0 %v104_v0  ;;  %v102_v3 = vld [vmem:[%s153_s0] sm:$0xff] }
   0x3   :  { %v106_v8 = vld [vmem:[%s152_s2] ss:$0 sm:$0xff] }
   0x6   :  { %58 = vmatpush.bf16.msra.mxu0 %v103_v2 }
   0x8   :  { %v22_v4 = vld [vmem:[#allocation2] sm:$0xff] }
   0x9   :  { %101 = vmatmul.msk.bf16.vlgmr.msra.gmra.mxu0 %vm19_vm0, %v102_v3  ;;  %v23_v7 = vld [vmem:[#allocation2 + $0x8] sm:$0xff] }
  0x86   :  { %v60_v5 = vpop.f32.mrf.mxu0 }
  0x87   :  { %v65_v6 = vadd.f32 %v60_v5, %v22_v4 }
  0x89   :  { %67 = vst.msk [vmem:[#allocation2] sm:$0xff] %vm19_vm0, %v65_v6 }
  0x8e   :  { %v62_v9 = vpop.f32.mrf.mxu0 }
  0x8f   :  { %v66_v10 = vadd.f32 %v62_v9, %v23_v7 }
  0x90   :  { %v72_v11 = vld [vmem:[#allocation2] sm:$0xff] }
  0x91   :  { %v78_v12 = vadd.f32 %v106_v8, %v72_v11  ;;  %68 = vst.msk [vmem:[#allocation2 + $0x8] sm:$0xff] %vm19_vm0, %v66_v10 }
  0x93   :  { %v80_v13 = vpack.c.bf16 %v78_v12, %v78_v12 }
  0x95   :  { %83 = vst.msk [vmem:[%s154_s3] sm:$0xf] %vm82_vm1, %v80_v13 }
  0x98   :  { %v73_v14 = vld [vmem:[#allocation2 + $0x8] sm:$0xff] }
  0x99   :  { %v79_v15 = vadd.f32 %v106_v8, %v73_v14 }
  0x9b   :  { %v81_v16 = vpack.c.bf16 %v79_v15, %v79_v15 }
  0x9d   :  { %84 = vst.msk [vmem:[%s154_s3 + $0x4] sm:$0xf] %vm82_vm1, %v81_v16 }

// kernel: bart_decoder_forward.34
= control target key start
LH: loop header
LB: loop body
LE: loop exit
PB: predicated region body
PF: predicated region fallthrough
CT: control target
= control target key end

     0   :  { %vm19_vm0 = vcmask 523264   ;;  %v147_v1 = vmov 0.0   ;;  %vm58_vm1 = vcmask 261120   ;;  %vm112_vm2 = vcmask 519168   ;;  %s203_s1 = inlined_call_operand.vmem [shape: bf16[32,64], index: 1, kind: input, shape index: {}]   ;;  %s204_s2 = inlined_call_operand.vmem [shape: f32[1,64], index: 2, kind: input, shape index: {}]   ;;  %s205_s0 = inlined_call_operand.vmem [shape: bf16[32,32], index: 0, kind: input, shape index: {}]   ;;  %s206_s3 = inlined_call_operand.vmem [shape: bf16[32,64], index: 3, kind: output, shape index: {}]  }
   0x1   :  { %v142_v0 = vld [vmem:[%s203_s1 + $0x8] sm:$0xff]  ;;  %20 = vst.msk [vmem:[#allocation2] sm:$0xff] %vm19_vm0, %v147_v1  ;;  %v141_v2 = vld [vmem:[%s203_s1] sm:$0xff] }
   0x2   :  { %21 = vst.msk [vmem:[#allocation2 + $0x8] sm:$0xff] %vm19_vm0, %v147_v1  ;;  %71 = vmatpush.bf16.msra.mxu0 %v142_v0  ;;  %143 = vmatpush.bf16.msra.mxu1 %v142_v0  ;;  %v139_v3 = vld [vmem:[%s205_s0] sm:$0xff]  ;;  %v140_v4 = vld [vmem:[%s205_s0 + $0x8] sm:$0xff] }
   0x3   :  { %22 = vst.msk [vmem:[#allocation2 + $0x10] sm:$0xff] %vm19_vm0, %v147_v1  ;;  %v146_v13 = vld [vmem:[%s204_s2] ss:$0 sm:$0xff] }
   0x4   :  { %23 = vst.msk [vmem:[#allocation2 + $0x18] sm:$0xff] %vm19_vm0, %v147_v1 }
   0x6   :  { %72 = vmatpush.bf16.msra.mxu0 %v141_v2  ;;  %144 = vmatpush.bf16.msra.mxu1 %v141_v2 }
   0x8   :  { %v24_v5 = vld [vmem:[#allocation2] sm:$0xff] }
   0x9   :  { %137 = vmatmul.msk.bf16.vlgmr.msra.gmra.mxu0 %vm58_vm1, %v139_v3  ;;  %138 = vmatmul.msk.bf16.vlgmr.msra.gmra.mxu1 %vm58_vm1, %v140_v4  ;;  %v25_v11 = vld [vmem:[#allocation2 + $0x8] sm:$0xff] }
   0xa   :  { %v26_v6 = vld [vmem:[#allocation2 + $0x10] sm:$0xff] }
   0xb   :  { %v27_v12 = vld [vmem:[#allocation2 + $0x18] sm:$0xff] }
  0x86   :  { %v74_v7 = vpop.f32.mrf.mxu0  ;;  %v79_v8 = vpop.f32.mrf.mxu1 }
  0x87   :  { %v84_v9 = vadd.f32 %v74_v7, %v24_v5  ;;  %v86_v10 = vadd.f32 %v79_v8, %v26_v6 }
  0x89   :  { %89 = vst.msk [vmem:[#allocation2] sm:$0xff] %vm19_vm0, %v84_v9 }
  0x8a   :  { %91 = vst.msk [vmem:[#allocation2 + $0x10] sm:$0xff] %vm19_vm0, %v86_v10 }
  0x8e   :  { %v76_v14 = vpop.f32.mrf.mxu0  ;;  %v81_v15 = vpop.f32.mrf.mxu1 }
  0x8f   :  { %v85_v16 = vadd.f32 %v76_v14, %v25_v11  ;;  %v87_v17 = vadd.f32 %v81_v15, %v27_v12 }
  0x90   :  { %v96_v18 = vld [vmem:[#allocation2] sm:$0xff] }
  0x91   :  { %v104_v19 = vadd.f32 %v146_v13, %v96_v18  ;;  %v98_v20 = vld [vmem:[#allocation2 + $0x10] sm:$0xff]  ;;  %90 = vst.msk [vmem:[#allocation2 + $0x8] sm:$0xff] %vm19_vm0, %v85_v16 }
  0x92   :  { %v106_v21 = vadd.f32 %v146_v13, %v98_v20  ;;  %92 = vst.msk [vmem:[#allocation2 + $0x18] sm:$0xff] %vm19_vm0, %v87_v17 }
  0x93   :  { %v108_v22 = vpack.c.bf16 %v104_v19, %v104_v19 }
  0x94   :  { %v110_v23 = vpack.c.bf16 %v106_v21, %v106_v21 }
  0x95   :  { %113 = vst.msk [vmem:[%s206_s3] sm:$0xf] %vm112_vm2, %v108_v22 }
  0x96   :  { %115 = vst.msk [vmem:[%s206_s3 + $0x8] sm:$0xf] %vm112_vm2, %v110_v23 }
  0x98   :  { %v97_v24 = vld [vmem:[#allocation2 + $0x8] sm:$0xff] }
  0x99   :  { %v105_v25 = vadd.f32 %v146_v13, %v97_v24  ;;  %v99_v26 = vld [vmem:[#allocation2 + $0x18] sm:$0xff] }
  0x9a   :  { %v107_v27 = vadd.f32 %v146_v13, %v99_v26 }
  0x9b   :  { %v109_v28 = vpack.c.bf16 %v105_v25, %v105_v25 }
  0x9c   :  { %v111_v29 = vpack.c.bf16 %v107_v27, %v107_v27 }
  0x9d   :  { %114 = vst.msk [vmem:[%s206_s3 + $0x4] sm:$0xf] %vm112_vm2, %v109_v28 }
  0x9e   :  { %116 = vst.msk [vmem:[%s206_s3 + $0xc] sm:$0xf] %vm112_vm2, %v111_v29 }

// kernel: bart_decoder_forward.31
= control target key start
LH: loop header
LB: loop body
LE: loop exit
PB: predicated region body
PF: predicated region fallthrough
CT: control target
= control target key end

     0   :  { %vm22_vm0 = vcmask 261120   ;;  %v120_v1 = vmov 0.0   ;;  %vm91_vm1 = vcmask 257024   ;;  %s172_s1 = inlined_call_operand.vmem [shape: bf16[32,32], index: 1, kind: input, shape index: {}]   ;;  %s173_s2 = inlined_call_operand.vmem [shape: f32[1,32], index: 2, kind: input, shape index: {}]   ;;  %s174_s0 = inlined_call_operand.vmem [shape: bf16[16,32], index: 0, kind: input, shape index: {}]   ;;  %s175_s3 = inlined_call_operand.vmem [shape: bf16[16,32], index: 3, kind: input, shape index: {}]   ;;  %s176_s4 = inlined_call_operand.vmem [shape: bf16[16,32], index: 4, kind: output, shape index: {}]  }
   0x1   :  { %v113_v0 = vld [vmem:[%s172_s1 + $0x8] sm:$0xff]  ;;  %23 = vst.msk [vmem:[#allocation2] sm:$0xff] %vm22_vm0, %v120_v1  ;;  %v112_v2 = vld [vmem:[%s172_s1] sm:$0xff] }
   0x2   :  { %24 = vst.msk [vmem:[#allocation2 + $0x8] sm:$0xff] %vm22_vm0, %v120_v1  ;;  %60 = vmatpush.bf16.msra.mxu0 %v113_v0  ;;  %v111_v3 = vld [vmem:[%s174_s0] sm:$0xff] }
   0x3   :  { %v115_v7 = vld [vmem:[%s175_s3] sm:$0xff]  }
   0x4   :  { %v119_v9 = vld [vmem:[%s173_s2] ss:$0 sm:$0xff]  ;;  %v116_v11 = vunpack.c.l.bf16 %v115_v7  ;;  %v117_v17 = vunpack.c.h.bf16 %v115_v7 }
   0x6   :  { %61 = vmatpush.bf16.msra.mxu0 %v112_v2 }
   0x8   :  { %v25_v4 = vld [vmem:[#allocation2] sm:$0xff] }
   0x9   :  { %110 = vmatmul.msk.bf16.vlgmr.msra.gmra.mxu0 %vm22_vm0, %v111_v3  ;;  %v26_v8 = vld [vmem:[#allocation2 + $0x8] sm:$0xff] }
  0x86   :  { %v63_v5 = vpop.f32.mrf.mxu0 }
  0x87   :  { %v68_v6 = vadd.f32 %v63_v5, %v25_v4 }
  0x89   :  { %70 = vst.msk [vmem:[#allocation2] sm:$0xff] %vm22_vm0, %v68_v6 }
  0x8e   :  { %v65_v10 = vpop.f32.mrf.mxu0 }
  0x8f   :  { %v69_v12 = vadd.f32 %v65_v10, %v26_v8 }
  0x90   :  { %v75_v13 = vld [vmem:[#allocation2] sm:$0xff] }
  0x91   :  { %v81_v14 = vadd.f32 %v119_v9, %v75_v13  ;;  %71 = vst.msk [vmem:[#allocation2 + $0x8] sm:$0xff] %vm22_vm0, %v69_v12 }
  0x93   :  { %v87_v15 = vadd.f32 %v116_v11, %v81_v14 }
  0x95   :  { %v89_v16 = vpack.c.bf16 %v87_v15, %v87_v15 }
  0x97   :  { %92 = vst.msk [vmem:[%s176_s4] sm:$0xf] %vm91_vm1, %v89_v16 }
  0x98   :  { %v76_v18 = vld [vmem:[#allocation2 + $0x8] sm:$0xff] }
  0x99   :  { %v82_v19 = vadd.f32 %v119_v9, %v76_v18 }
  0x9b   :  { %v88_v20 = vadd.f32 %v117_v17, %v82_v19 }
  0x9d   :  { %v90_v21 = vpack.c.bf16 %v88_v20, %v88_v20 }
  0x9f   :  { %93 = vst.msk [vmem:[%s176_s4 + $0x4] sm:$0xf] %vm91_vm1, %v90_v21 }

// kernel: bart_decoder_forward.35
= control target key start
LH: loop header
LB: loop body
LE: loop exit
PB: predicated region body
PF: predicated region fallthrough
CT: control target
= control target key end

     0   :  { %s796_s9 = smov 0   ;;  %s798_s10 = smov 0   ;;  %s922_s0 = inlined_call_operand.vmem [shape: bf16[2,8,32], index: 0, kind: input, shape index: {}]   ;;  %s923_s1 = inlined_call_operand.vmem [shape: bf16[2,16,64], index: 1, kind: input, shape index: {}]   ;;  %s924_s2 = inlined_call_operand.vmem [shape: bf16[2,8,32], index: 2, kind: output, shape index: {}]  }
   0x1   :  { %s800_s11 = smov 0  }
   0x2 LB: > { %s31_s12 = sadd.s32 1, %s759_s10  ;;  %p653_p0 = scmp.ge.s32.totalorder %s763_s11, 1  ;;  %s763_s11 = sphi %s800_s11, %s12_s11   ;;  %s759_s10 = sphi %s798_s10, %s926_s10   ;;  %s755_s9 = sphi %s796_s9, %s925_s9  }
   0x3   : > { %p33_p1 = scmp.ge.s32.totalorder %s31_s12, 2  ;;  %p154_p2 = scmp.lt.s32.totalorder %s763_s11, 3 }
   0x5   : > { %s928_s12 = smov (%p33_p1, %s31_s12), 0  ;;  %p155_p3 = pnand %p653_p0, %p154_p2 }
   0x6   : > { %p189_p4 = scmp.lt.s32.totalorder (!%p155_p3), %s755_s9, 1  ;;  %s766_s21 = smov (!%p155_p3), 96  }
   0x7   : > { %158 = sbr.rel (%p155_p3) target bundleno = 1050 (0x41a), region = 28  ;;  %s767_s22 = smov (!%p155_p3), 120  }
   0x8   : > { %s768_s23 = smov (!%p155_p3), 112   ;;  %s770_s24 = smov (!%p155_p3), 104  }
   0x9   : > { %s771_s25 = smov (!%p155_p3), 88   ;;  %s772_s26 = smov (!%p155_p3), 80  }
   0xa   : > { %s776_s27 = smov (!%p155_p3), 72   ;;  %s778_s28 = smov (!%p155_p3), 8  }
   0xb   : > { %s779_s29 = smov (!%p155_p3), 24   ;;  %s780_s30 = smov (!%p155_p3), 16  }
   0xc   : > { %s930_s9 = smov (!%p189_p4, %s755_s9), 1  ;;  %vm232_vm0 = vcmask 64512   ;;  %vm218_vm1 = vcmask 261120   ;;  %v765_v3 = vmov -inf   ;;  %vm252_vm2 = vcmask 130048  }
   0xd   : > { %s672_s13 = sshll.u32 %s930_s9, 3  ;;  %s654_s17 = sshll.u32 %s930_s9, 2  ;;  %219 = vst.msk [vmem:[#allocation2] sm:$0xff] %vm218_vm1, %v765_v3  ;;  %v769_v9 = vmov 0   ;;  %v773_v42 = vmov 8   ;;  %v774_v43 = vmov 16  }
   0xe   : > { %s204_s16 = scalar_lea.vmem %s923_s1, %s672_s13  ;;  %s195_s20 = scalar_lea.vmem %s922_s0, %s654_s17  ;;  %714 = vset.pattern.permute.xlu1 %v769_v9  ;;  %718 = vset.pattern.permute.xlu0 %v769_v9  ;;  %v775_v48 = vmov 24   ;;  %vm499_vm3 = vcmask 195584   ;;  %vm552_vm8 = vcmask 257024  }
   0xf   : > { %v820_v0 = vld [vmem:[%s204_s16] sm:$0xff]  ;;  %715 = vset.pattern.permute.xlu2 %v773_v42  ;;  %s212_s5 = scalar_lea.vmem %s924_s2, %s654_s17 }
  0x10   : > { %v237_v1 = vsel %vm232_vm0, %v820_v0, 0  ;;  %v224_v2 = vld [vmem:[%s195_s20] sm:$0xf]  ;;  %269 = vrot.lane.b32.xlu2 %v820_v0, %s766_s21 }
  0x11   : > { %246 = vmatpush.bf16.xpose.msra.mxu0 %v237_v1  ;;  %v297_v7 = vunpack.c.l.b16 %v224_v2 }
  0x13   : > { %v298_v8 = vpack.c.b16 %v297_v7, %v297_v7 }
  0x14   : > { %v836_v10 = vld [vmem:[#allocation2] sm:$0xff] }
  0x18   : > { %662 = vmatmul.msk.bf16.vlgmr.msra.gmra.mxu0 %vm232_vm0, %v224_v2  ;;  %367 = vrot.lane.b32.xlu2 %v820_v0, %s768_s23 }
  0x20   : > { %365 = vrot.lane.b32.xlu2 %v298_v8, %s768_s23 }
  0x6a   : > { %v270_v15 = vpop.permute.xlu2 %269 }
  0x6b   : > { %282 = vmatpush.bf16.msra.mxu1 %v270_v15 }
  0x72   : > { %v368_v16 = vpop.permute.xlu2 %367 }
  0x73   : > { %v373_v17 = vsel %vm232_vm0, %v368_v16, 0 }
  0x74   : > { %382 = vmatpush.bf16.xpose.msrb.mxu1 %v373_v17 }
  0x7a   : > { %v366_v27 = vpop.permute.xlu2 %365 }
  0x95   : > { %v248_v4 = vpop.f32.mrf.mxu0 }
  0x96   : > { %v253_v5 = vsel %vm252_vm2, %v248_v4, -inf }
  0x97   : > { %254 = vmax.xlane.f32.xlu0 %v253_v5 }
  0x9d   : > { %v250_v6 = vpop.f32.mrf.mxu0 }
  0xab   : > { %301 = vrot.lane.b32.xlu0 %v820_v0, %s767_s22 }
 0x10a   : > { %v255_v11 = vpop.xlane.xlu0 %254 }
 0x10b   : > { %v256_v12 = vmax.f32 %v836_v10, %v255_v11 }
 0x10d   : > { %262 = vperm.xlu1 %714, %v256_v12   ;;  %v257_v39 = vsub.f32 %v836_v10, %v256_v12 }
 0x10f   : > { %v258_v40 = vmul.f32 1.442695, %v257_v39 }
 0x115   : > { %299 = vrot.lane.b32.xlu1 %v298_v8, %s767_s22 }
 0x116   : > { %716 = vset.pattern.permute.xlu1 %v774_v43 }
 0x11d   : > { %433 = vrot.lane.b32.xlu1 %v820_v0, %s770_s24  ;;  %v302_v13 = vpop.permute.xlu0 %301 }
 0x11e   : > { %v307_v14 = vsel %vm232_vm0, %v302_v13, 0 }
 0x11f   : > { %316 = vmatpush.bf16.xpose.msra.mxu2 %v307_v14 }
 0x125   : > { %431 = vrot.lane.b32.xlu1 %v298_v8, %s770_s24 }
 0x17f   : > { %v842_v18 = vpop.permute.xlu1 %262 }
 0x180   : > { %v265_v19 = vsub.f32 %v248_v4, %v842_v18 }
 0x182   : > { %v266_v20 = vmul.f32 1.442695, %v265_v19 }
 0x184   : > { %723 = vpow2.f32 %v266_v20 }
 0x185   : > { %725 = vpow2.f32 %v258_v40 }
 0x187   : > { %v300_v21 = vpop.permute.xlu1 %299 }
 0x188   : > { %664 = vmatmul.msk.bf16.vlgmr.msra.gmra.mxu2 %vm232_vm0, %v300_v21 }
 0x18a   : > { %v846_v22 = vpop.eup %723 }
 0x18b   : > { %v268_v23 = vpack.c.bf16 %v846_v22, %v846_v22  ;;  %v726_v41 = vpop.eup %725  ;;  %v293_v59 = vsel %vm252_vm2, %v846_v22, 0.0  ;;  %v777_v22 = vmov 0.0  }
 0x18c   : > { %220 = vst.msk [vmem:[#allocation3] sm:$0xff] %vm218_vm1, %v777_v22 }
 0x18d   : > { %663 = vmatmul.msk.bf16.vlgmr.msra.gmra.mxu1 %vm252_vm2, %v268_v23  ;;  %221 = vst.msk [vmem:[#allocation4] sm:$0xff] %vm218_vm1, %v777_v22 }
 0x18f   : > { %v434_v24 = vpop.permute.xlu1 %433 }
 0x190   : > { %v439_v25 = vsel %vm232_vm0, %v434_v24, 0 }
 0x191   : > { %448 = vmatpush.bf16.xpose.msrb.mxu0 %v439_v25 }
 0x197   : > { %v432_v26 = vpop.permute.xlu1 %431 }
 0x198   : > { %668 = vmatmul.msk.bf16.vlgmr.msrb.gmra.mxu0 %vm232_vm0, %v432_v26 }
 0x19d   : > { %666 = vmatmul.msk.bf16.vlgmr.msrb.gmra.mxu1 %vm232_vm0, %v366_v27 }
 0x20a   : > { %v854_v28 = vpop.f32.mrf.mxu1 }
 0x20b   : > { %v856_v29 = vpop.f32.mrf.mxu2 }
 0x20c   : > { %v322_v30 = vsel %vm252_vm2, %v856_v29, -inf }
 0x20d   : > { %323 = vmax.xlane.f32.xlu2 %v322_v30 }
 0x212   : > { %v286_v31 = vpop.f32.mrf.mxu1 }
 0x213   : > { %v320_v32 = vpop.f32.mrf.mxu2 }
 0x215   : > { %v860_v33 = vpop.f32.mrf.mxu0 }
 0x216   : > { %v454_v34 = vsel %vm252_vm2, %v860_v33, -inf }
 0x217   : > { %455 = vmax.xlane.f32.xlu1 %v454_v34 }
 0x21a   : > { %v864_v35 = vpop.f32.mrf.mxu1 }
 0x21b   : > { %v388_v36 = vsel %vm252_vm2, %v864_v35, -inf }
 0x21c   : > { %389 = vmax.xlane.f32.xlu0 %v388_v36 }
 0x21d   : > { %v452_v37 = vpop.f32.mrf.mxu0 }
 0x222   : > { %v386_v38 = vpop.f32.mrf.mxu1 }
 0x230   : > { %338 = vrot.lane.b32.xlu0 %v820_v0, %s771_s25 }
 0x238   : > { %404 = vrot.lane.b32.xlu0 %v820_v0, %s772_s26 }
 0x240   : > { %290 = vperm.xlu0 %718, %v726_v41  }
 0x248   : > { %721 = vset.pattern.permute.xlu0 %v774_v43 }
 0x280   : > { %v324_v44 = vpop.xlane.xlu2 %323 }
 0x281   : > { %v325_v45 = vmax.f32 %v836_v10, %v324_v44 }
 0x283   : > { %331 = vperm.xlu2 %715, %v325_v45   ;;  %v326_v49 = vsub.f32 %v836_v10, %v325_v45 }
 0x285   : > { %v327_v51 = vmul.f32 1.442695, %v326_v49 }
 0x287   : > { %727 = vpow2.f32 %v327_v51  ;;  %v512_v51 = vld [vmem:[#allocation4] sm:$0xff] }
 0x28a   : > { %v456_v46 = vpop.xlane.xlu1 %455 }
 0x28b   : > { %v457_v47 = vmax.f32 %v836_v10, %v456_v46  ;;  %717 = vset.pattern.permute.xlu2 %v775_v48 }
 0x28d   : > { %463 = vperm.xlu2 %717, %v457_v47   ;;  %v728_v55 = vpop.eup %727  ;;  %v458_v60 = vsub.f32 %v836_v10, %v457_v47 }
 0x28f   : > { %v390_v50 = vpop.xlane.xlu0 %389  ;;  %v459_v61 = vmul.f32 1.442695, %v458_v60 }
 0x290   : > { %v391_v52 = vmax.f32 %v836_v10, %v390_v50 }
 0x292   : > { %v392_v53 = vsub.f32 %v836_v10, %v391_v52  ;;  %397 = vperm.xlu1 %716, %v391_v52  }
 0x294   : > { %v393_v54 = vmul.f32 1.442695, %v392_v53 }
 0x295   : > { %470 = vrot.lane.b32.xlu2 %v820_v0, %s776_s27 }
 0x296   : > { %729 = vpow2.f32 %v393_v54  ;;  %719 = vset.pattern.permute.xlu2 %v773_v42 }
 0x297   : > { %731 = vpow2.f32 %v459_v61 }
 0x29a   : > { %720 = vset.pattern.permute.xlu1 %v775_v48 }
 0x29c   : > { %v730_v56 = vpop.eup %729 }
 0x29d   : > { %425 = vperm.xlu0 %721, %v730_v56   ;;  %359 = vperm.xlu2 %719, %v728_v55   ;;  %v732_v62 = vpop.eup %731 }
 0x2a2   : > { %v339_v57 = vpop.permute.xlu0 %338 }
 0x2a3   : > { %351 = vmatpush.bf16.msra.mxu3 %v339_v57 }
 0x2a5   : > { %722 = vset.pattern.permute.xlu0 %v775_v48 }
 0x2aa   : > { %v405_v58 = vpop.permute.xlu0 %404 }
 0x2ab   : > { %417 = vmatpush.bf16.msrb.mxu3 %v405_v58 }
 0x2b2   : > { %v291_v23 = vpop.permute.xlu0 %290 }
 0x2bc   : > { %294 = vadd.xlane.f32.xlu1 %v293_v59 }
 0x2d5   : > { %491 = vperm.xlu1 %720, %v732_v62  }
 0x2dd   : > { %v332_v63 = vpop.permute.xlu2 %331 }
 0x2de   : > { %v334_v0 = vsub.f32 %v856_v29, %v332_v63  ;;  %v501_v12 = vsel %vm232_vm0, %v842_v18, %v332_v63 }
 0x2e0   : > { %v335_v1 = vmul.f32 1.442695, %v334_v0 }
 0x2e2   : > { %733 = vpow2.f32 %v335_v1 }
 0x2e7   : > { %v464_v2 = vpop.permute.xlu2 %463 }
 0x2e8   : > { %v734_v3 = vpop.eup %733  ;;  %v466_v4 = vsub.f32 %v860_v33, %v464_v2 }
 0x2e9   : > { %v362_v5 = vsel %vm252_vm2, %v734_v3, 0.0  ;;  %v337_v6 = vpack.c.bf16 %v734_v3, %v734_v3 }
 0x2ea   : > { %v467_v7 = vmul.f32 1.442695, %v466_v4  ;;  %363 = vadd.xlane.f32.xlu2 %v362_v5 }
 0x2eb   : > { %665 = vmatmul.msk.bf16.vlgmr.msra.gmra.mxu3 %vm252_vm2, %v337_v6 }
 0x2ec   : > { %735 = vpow2.f32 %v467_v7 }
 0x2ef   : > { %v471_v8 = vpop.permute.xlu2 %470 }
 0x2f0   : > { %483 = vmatpush.bf16.msrb.mxu2 %v471_v8 }
 0x2f2   : > { %v736_v9 = vpop.eup %735 }
 0x2f3   : > { %v494_v10 = vsel %vm252_vm2, %v736_v9, 0.0  ;;  %v469_v11 = vpack.c.bf16 %v736_v9, %v736_v9 }
 0x2f4   : > { %495 = vadd.xlane.f32.xlu2 %v494_v10 }
 0x2f5   : > { %669 = vmatmul.msk.bf16.vlgmr.msrb.gmra.mxu2 %vm252_vm2, %v469_v11 }
 0x2f7   : > { %v360_v24 = vpop.permute.xlu2 %359 }
 0x2f8   : > { %v497_v32 = vsel %vm232_vm0, %v291_v23, %v360_v24 }
 0x304   : > { %v398_v13 = vpop.permute.xlu1 %397 }
 0x305   : > { %v400_v14 = vsub.f32 %v864_v35, %v398_v13  ;;  %v502_v15 = vsel %vm252_vm2, %v501_v12, %v398_v13  ;;  %v223_v35 = vld [vmem:[#allocation3] sm:$0xff] }
 0x306   : > { %v503_v16 = vsel %vm499_vm3, %v502_v15, %v464_v2 }
 0x307   : > { %v401_v17 = vmul.f32 1.442695, %v400_v14  ;;  %505 = vst.msk [vmem:[#allocation2] sm:$0xff] %vm218_vm1, %v503_v16 }
 0x309   : > { %737 = vpow2.f32 %v401_v17 }
 0x30f   : > { %v738_v19 = vpop.eup %737  ;;  %v426_v29 = vpop.permute.xlu0 %425 }
 0x310   : > { %v428_v20 = vsel %vm252_vm2, %v738_v19, 0.0  ;;  %v403_v21 = vpack.c.bf16 %v738_v19, %v738_v19  ;;  %v498_v34 = vsel %vm252_vm2, %v497_v32, %v426_v29 }
 0x311   : > { %429 = vadd.xlane.f32.xlu0 %v428_v20 }
 0x312   : > { %667 = vmatmul.msk.bf16.vlgmr.msrb.gmra.mxu3 %vm252_vm2, %v403_v21 }
 0x32f   : > { %v295_v26 = vpop.xlane.xlu1 %294 }
 0x347   : > { %v492_v31 = vpop.permute.xlu1 %491 }
 0x348   : > { %v500_v36 = vsel %vm499_vm3, %v498_v34, %v492_v31 }
 0x349   : > { %v506_v39 = vmul.f32 %v500_v36, %v223_v35  ;;  %v513_v54 = vmul.f32 %v512_v51, %v500_v36 }
 0x35d   : > { %v364_v30 = vpop.xlane.xlu2 %363 }
 0x35e   : > { %v507_v37 = vsel %vm232_vm0, %v295_v26, %v364_v30 }
 0x367   : > { %v496_v40 = vpop.xlane.xlu2 %495 }
 0x36e   : > { %v353_v18 = vpop.f32.mrf.mxu3 }
 0x36f   : > { %515 = vrot.lane.b32.xlu2 %v353_v18, %s778_s28 }
 0x376   : > { %v355_v25 = vpop.f32.mrf.mxu3 }
 0x378   : > { %v485_v27 = vpop.f32.mrf.mxu2 }
 0x379   : > { %523 = vrot.lane.b32.xlu0 %v485_v27, %s779_s29 }
 0x380   : > { %v487_v33 = vpop.f32.mrf.mxu2 }
 0x384   : > { %v430_v38 = vpop.xlane.xlu0 %429 }
 0x385   : > { %v508_v41 = vsel %vm252_vm2, %v507_v37, %v430_v38 }
 0x386   : > { %v509_v42 = vsel %vm499_vm3, %v508_v41, %v496_v40 }
 0x387   : > { %v510_v43 = vadd.f32 %v509_v42, %v506_v39 }
 0x389   : > { %511 = vst.msk [vmem:[#allocation3] sm:$0xff] %vm218_vm1, %v510_v43 }
 0x390   : > { %v535_v46 = vld [vmem:[#allocation3] sm:$0xff] }
 0x391   : > { %739 = vrcp.f32 %v535_v46  ;;  %v547_v61 = vand.u32 2147483648, %v535_v46  ;;  %vm541_vm5 = vweird.f32 %v535_v46  ;;  %v545_v62 = vand.u32 2147483647, %v535_v46 }
 0x393   : > { %vm546_vm7 = vcmp.eq.f32.partialorder %v545_v62, 8.507059e+37 }
 0x395   : > { %v419_v44 = vpop.f32.mrf.mxu3 }
 0x396   : > { %519 = vrot.lane.b32.xlu1 %v419_v44, %s780_s30 }
 0x397   : > { %v740_v47 = vpop.eup %739 }
 0x398   : > { %v537_v48 = vmul.f32 %v740_v47, %v535_v46  ;;  %vm542_vm4 = vweird.f32 %v740_v47 }
 0x399   : > { %vm543_vm6 = vmor %vm541_vm5, %vm542_vm4 }
 0x39a   : > { %v538_v49 = vsub.f32 1.0, %v537_v48 }
 0x39c   : > { %v539_v55 = vmul.f32 %v740_v47, %v538_v49 }
 0x39d   : > { %v421_v45 = vpop.f32.mrf.mxu3 }
 0x39e   : > { %v540_v60 = vadd.f32 %v740_v47, %v539_v55 }
 0x3a0   : > { %v544_v63 = vsel %vm543_vm6, %v740_v47, %v540_v60 }
 0x3c9   : > { %v516_v50 = vpop.permute.xlu2 %515 }
 0x3ca   : > { %v526_v52 = vsel %vm232_vm0, %v854_v28, %v516_v50  ;;  %v548_v28 = vor.u32 1.1754944e-38, %v547_v61 }
 0x3cc   : > { %v549_v0 = vsel %vm546_vm7, %v548_v28, %v544_v63 }
 0x3eb   : > { %v524_v56 = vpop.permute.xlu0 %523 }
 0x408   : > { %v520_v53 = vpop.permute.xlu1 %519 }
 0x409   : > { %v527_v57 = vsel %vm252_vm2, %v526_v52, %v520_v53 }
 0x40a   : > { %v528_v58 = vsel %vm499_vm3, %v527_v57, %v524_v56 }
 0x40b   : > { %v529_v59 = vadd.f32 %v528_v58, %v513_v54 }
 0x40d   : > { %530 = vst.msk [vmem:[#allocation4] sm:$0xff] %vm218_vm1, %v529_v59 }
 0x414   : > { %v534_v1 = vld [vmem:[#allocation4] sm:$0xff] }
 0x415   : > { %v550_v2 = vmul.f32 %v549_v0, %v534_v1 }
 0x417   : > { %v551_v3 = vpack.c.bf16 %v550_v2, %v550_v2 }
 0x419   : > { %553 = vst.msk [vmem:[%s212_s5] sm:$0xf] %vm552_vm8, %v551_v3 }
 0x41a PF: > { %s12_s11 = sadd.s32 1, %s763_s11   ;;  %s925_s9 = smov %s759_s10 }
 0x41b   : > { %p9_p5 = scmp.ge.s32.totalorder %s12_s11, 4   ;;  %s926_s10 = smov %s928_s12 }
 0x41d   :  { %11 = sbr.rel (!%p9_p5) target bundleno = 2 (0x2), region = 69 }

// kernel: bart_decoder_forward.38
= control target key start
LH: loop header
LB: loop body
LE: loop exit
PB: predicated region body
PF: predicated region fallthrough
CT: control target
= control target key end

     0   :  { %vm19_vm0 = vcmask 523264   ;;  %v200_v1 = vmov 0.0   ;;  %vm47_vm1 = vcmask 261120   ;;  %vm163_vm11 = vcmask 519168   ;;  %s259_s1 = inlined_call_operand.vmem [shape: bf16[32,64], index: 1, kind: input, shape index: {}]   ;;  %s260_s2 = inlined_call_operand.vmem [shape: f32[1,64], index: 2, kind: input, shape index: {}]   ;;  %s261_s0 = inlined_call_operand.vmem [shape: bf16[16,32], index: 0, kind: input, shape index: {}]   ;;  %s262_s3 = inlined_call_operand.vmem [shape: bf16[16,64], index: 3, kind: output, shape index: {}]  }
   0x1   :  { %v189_v0 = vld [vmem:[%s259_s1 + $0x8] sm:$0xff]  ;;  %20 = vst.msk [vmem:[#allocation2] sm:$0xff] %vm19_vm0, %v200_v1  ;;  %v188_v2 = vld [vmem:[%s259_s1] sm:$0xff] }
   0x2   :  { %21 = vst.msk [vmem:[#allocation2 + $0x8] sm:$0xff] %vm19_vm0, %v200_v1  ;;  %57 = vmatpush.bf16.msra.mxu0 %v189_v0  ;;  %v187_v3 = vld [vmem:[%s261_s0] sm:$0xff] }
   0x3   :  { %v191_v8 = vld [vmem:[%s260_s2] ss:$0 sm:$0xff] }
   0x6   :  { %58 = vmatpush.bf16.msra.mxu0 %v188_v2 }
   0x8   :  { %v22_v4 = vld [vmem:[#allocation2] sm:$0xff] }
   0x9   :  { %182 = vmatmul.msk.bf16.vlgmr.msra.gmra.mxu0 %vm47_vm1, %v187_v3  ;;  %v23_v7 = vld [vmem:[#allocation2 + $0x8] sm:$0xff] }
  0x86   :  { %v60_v5 = vpop.f32.mrf.mxu0 }
  0x87   :  { %v65_v6 = vadd.f32 %v60_v5, %v22_v4 }
  0x89   :  { %68 = vst.msk [vmem:[#allocation2] sm:$0xff] %vm19_vm0, %v65_v6 }
  0x8e   :  { %v62_v9 = vpop.f32.mrf.mxu0 }
  0x8f   :  { %v66_v10 = vadd.f32 %v62_v9, %v23_v7 }
  0x90   :  { %v73_v11 = vld [vmem:[#allocation2] sm:$0xff] }
  0x91   :  { %v236_v12 = vadd.f32 %v191_v8, %v73_v11  ;;  %69 = vst.msk [vmem:[#allocation2 + $0x8] sm:$0xff] %vm19_vm0, %v66_v10 }
  0x93   :  { %v240_v13 = vmul.f32 0.70710677, %v236_v12  ;;  %v81_v7 = vmul.f32 0.5, %v236_v12 }
  0x95   :  { %v85_v14 = vand.u32 2147483647, %v240_v13  ;;  %vm151_vm10 = vcmp.ge.f32.partialorder %v240_v13, 0.0 }
  0x97   :  { %v87_v15 = vmul.f32 0.3275911, %v85_v14  ;;  %v139_v34 = vsub.f32 0.0, %v85_v14 }
  0x98   :  { %v74_v16 = vld [vmem:[#allocation2 + $0x8] sm:$0xff] }
  0x99   :  { %v89_v17 = vadd.f32 1.0, %v87_v15  ;;  %v243_v18 = vadd.f32 %v191_v8, %v74_v16  ;;  %v141_v40 = vmul.f32 %v139_v34, %v85_v14 }
  0x9b   :  { %192 = vrcp.f32 %v89_v17  ;;  %v246_v19 = vmul.f32 0.70710677, %v243_v18  ;;  %v102_v26 = vand.u32 2147483648, %v89_v17  ;;  %v100_v28 = vand.u32 2147483647, %v89_v17 }
  0x9c   :  { %vm96_vm3 = vweird.f32 %v89_v17  ;;  %v143_v47 = vmul.f32 1.442695, %v141_v40 }
  0x9d   :  { %v86_v20 = vand.u32 2147483647, %v246_v19  ;;  %v103_v30 = vor.u32 1.1754944e-38, %v102_v26  ;;  %vm101_vm5 = vcmp.eq.f32.partialorder %v100_v28, 8.507059e+37  ;;  %vm152_vm12 = vcmp.ge.f32.partialorder %v246_v19, 0.0 }
  0x9f   :  { %v88_v21 = vmul.f32 0.3275911, %v86_v20  ;;  %v140_v51 = vsub.f32 0.0, %v86_v20 }
  0xa1   :  { %v193_v22 = vpop.eup %192  ;;  %v90_v24 = vadd.f32 1.0, %v88_v21  ;;  %v142_v56 = vmul.f32 %v140_v51, %v86_v20  ;;  %v82_v20 = vmul.f32 0.5, %v243_v18 }
  0xa2   :  { %v92_v23 = vmul.f32 %v193_v22, %v89_v17  ;;  %vm97_vm2 = vweird.f32 %v193_v22 }
  0xa3   :  { %194 = vrcp.f32 %v90_v24  ;;  %vm98_vm4 = vmor %vm96_vm3, %vm97_vm2  ;;  %v117_v39 = vand.u32 2147483648, %v90_v24  ;;  %v115_v42 = vand.u32 2147483647, %v90_v24  ;;  %vm111_vm7 = vweird.f32 %v90_v24 }
  0xa4   :  { %v93_v25 = vsub.f32 1.0, %v92_v23  ;;  %196 = vpow2.f32 %v143_v47  ;;  %v145_v61 = vmul.f32 1.442695, %v142_v56 }
  0xa5   :  { %v118_v46 = vor.u32 1.1754944e-38, %v117_v39  ;;  %vm116_vm9 = vcmp.eq.f32.partialorder %v115_v42, 8.507059e+37 }
  0xa6   :  { %v94_v27 = vmul.f32 %v193_v22, %v93_v25  ;;  %198 = vpow2.f32 %v145_v61 }
  0xa8   :  { %v95_v29 = vadd.f32 %v193_v22, %v94_v27 }
  0xa9   :  { %v195_v31 = vpop.eup %194 }
  0xaa   :  { %v99_v32 = vsel %vm98_vm4, %v193_v22, %v95_v29  ;;  %v107_v35 = vmul.f32 %v195_v31, %v90_v24  ;;  %vm112_vm6 = vweird.f32 %v195_v31  ;;  %v197_v62 = vpop.eup %196 }
  0xab   :  { %v104_v33 = vsel %vm101_vm5, %v103_v30, %v99_v32  ;;  %vm113_vm8 = vmor %vm111_vm7, %vm112_vm6 }
  0xac   :  { %v121_v36 = vmul.f32 1.0614054, %v104_v33  ;;  %v108_v37 = vsub.f32 1.0, %v107_v35  ;;  %v199_v10 = vpop.eup %198 }
  0xae   :  { %v183_v38 = vadd.f32 -1.4531521, %v121_v36  ;;  %v109_v41 = vmul.f32 %v195_v31, %v108_v37 }
  0xb0   :  { %v125_v43 = vmul.f32 %v183_v38, %v104_v33  ;;  %v110_v44 = vadd.f32 %v195_v31, %v109_v41 }
  0xb2   :  { %v127_v45 = vadd.f32 1.4214138, %v125_v43  ;;  %v114_v48 = vsel %vm113_vm8, %v195_v31, %v110_v44 }
  0xb3   :  { %v119_v50 = vsel %vm116_vm9, %v118_v46, %v114_v48 }
  0xb4   :  { %v129_v49 = vmul.f32 %v127_v45, %v104_v33  ;;  %v122_v52 = vmul.f32 1.0614054, %v119_v50 }
  0xb6   :  { %v185_v53 = vadd.f32 -0.28449672, %v129_v49  ;;  %v184_v54 = vadd.f32 -1.4531521, %v122_v52 }
  0xb8   :  { %v133_v55 = vmul.f32 %v185_v53, %v104_v33  ;;  %v126_v57 = vmul.f32 %v184_v54, %v119_v50 }
  0xba   :  { %v135_v58 = vadd.f32 0.2548296, %v133_v55  ;;  %v128_v59 = vadd.f32 1.4214138, %v126_v57 }
  0xbc   :  { %v137_v60 = vmul.f32 %v135_v58, %v104_v33  ;;  %v130_v63 = vmul.f32 %v128_v59, %v119_v50 }
  0xbe   :  { %v147_v0 = vmul.f32 %v197_v62, %v137_v60  ;;  %v186_v1 = vadd.f32 -0.28449672, %v130_v63 }
  0xc0   :  { %v149_v2 = vsub.f32 1.0, %v147_v0  ;;  %v134_v3 = vmul.f32 %v186_v1, %v119_v50 }
  0xc2   :  { %v153_v4 = vsub.f32 0.0, %v149_v2  ;;  %v136_v5 = vadd.f32 0.2548296, %v134_v3 }
  0xc4   :  { %v155_v6 = vsel %vm151_vm10, %v149_v2, %v153_v4  ;;  %v138_v9 = vmul.f32 %v136_v5, %v119_v50 }
  0xc5   :  { %v157_v8 = vadd.f32 1.0, %v155_v6 }
  0xc6   :  { %v148_v14 = vmul.f32 %v199_v10, %v138_v9 }
  0xc7   :  { %v159_v11 = vmul.f32 %v157_v8, %v81_v7 }
  0xc8   :  { %v150_v16 = vsub.f32 1.0, %v148_v14 }
  0xc9   :  { %v161_v15 = vpack.c.bf16 %v159_v11, %v159_v11 }
  0xca   :  { %v154_v17 = vsub.f32 0.0, %v150_v16 }
  0xcb   :  { %164 = vst.msk [vmem:[%s262_s3] sm:$0xf] %vm163_vm11, %v161_v15 }
  0xcc   :  { %v156_v13 = vsel %vm152_vm12, %v150_v16, %v154_v17 }
  0xcd   :  { %v158_v21 = vadd.f32 1.0, %v156_v13 }
  0xcf   :  { %v160_v12 = vmul.f32 %v158_v21, %v82_v20 }
  0xd1   :  { %v162_v22 = vpack.c.bf16 %v160_v12, %v160_v12 }
  0xd3   :  { %165 = vst.msk [vmem:[%s262_s3 + $0x4] sm:$0xf] %vm163_vm11, %v162_v22 }

// kernel: bart_decoder_forward.39
= control target key start
LH: loop header
LB: loop body
LE: loop exit
PB: predicated region body
PF: predicated region fallthrough
CT: control target
= control target key end

     0   :  { %vm22_vm0 = vcmask 261120   ;;  %v147_v1 = vmov 0.0   ;;  %vm66_vm1 = vcmask 523264   ;;  %vm108_vm2 = vcmask 257024   ;;  %s204_s1 = inlined_call_operand.vmem [shape: bf16[64,32], index: 1, kind: input, shape index: {}]   ;;  %s205_s2 = inlined_call_operand.vmem [shape: f32[1,32], index: 2, kind: input, shape index: {}]   ;;  %s206_s0 = inlined_call_operand.vmem [shape: bf16[16,64], index: 0, kind: input, shape index: {}]   ;;  %s207_s3 = inlined_call_operand.vmem [shape: bf16[16,32], index: 3, kind: input, shape index: {}]   ;;  %s208_s4 = inlined_call_operand.vmem [shape: bf16[16,32], index: 4, kind: output, shape index: {}]  }
   0x1   :  { %v140_v0 = vld [vmem:[%s204_s1 + $0x18] sm:$0xff]  ;;  %23 = vst.msk [vmem:[#allocation2] sm:$0xff] %vm22_vm0, %v147_v1  ;;  %v139_v2 = vld [vmem:[%s204_s1 + $0x10] sm:$0xff]  ;;  %v138_v3 = vld [vmem:[%s204_s1 + $0x8] sm:$0xff] }
   0x2   :  { %24 = vst.msk [vmem:[#allocation2 + $0x8] sm:$0xff] %vm22_vm0, %v147_v1  ;;  %74 = vmatpush.bf16.msra.mxu0 %v140_v0  ;;  %v137_v4 = vld [vmem:[%s204_s1] sm:$0xff] }
   0x3   :  { %v136_v5 = vld [vmem:[%s206_s0] sm:$0xff] }
   0x4   :  { %v142_v9 = vld [vmem:[%s207_s3] sm:$0xff]  }
   0x5   :  { %v146_v11 = vld [vmem:[%s205_s2] ss:$0 sm:$0xff]  ;;  %v143_v13 = vunpack.c.l.bf16 %v142_v9  ;;  %v144_v19 = vunpack.c.h.bf16 %v142_v9 }
   0x6   :  { %75 = vmatpush.bf16.msra.mxu0 %v139_v2 }
   0x8   :  { %v25_v6 = vld [vmem:[#allocation2] sm:$0xff] }
   0x9   :  { %v26_v10 = vld [vmem:[#allocation2 + $0x8] sm:$0xff] }
   0xa   :  { %76 = vmatpush.bf16.msra.mxu0 %v138_v3 }
   0xe   :  { %77 = vmatpush.bf16.msra.mxu0 %v137_v4 }
  0x11   :  { %135 = vmatmul.msk.bf16.vlgmr.msra.gmra.mxu0 %vm66_vm1, %v136_v5 }
  0x8e   :  { %v79_v7 = vpop.f32.mrf.mxu0 }
  0x8f   :  { %v84_v8 = vadd.f32 %v79_v7, %v25_v6 }
  0x91   :  { %87 = vst.msk [vmem:[#allocation2] sm:$0xff] %vm22_vm0, %v84_v8 }
  0x96   :  { %v81_v12 = vpop.f32.mrf.mxu0 }
  0x97   :  { %v85_v14 = vadd.f32 %v81_v12, %v26_v10 }
  0x98   :  { %v92_v15 = vld [vmem:[#allocation2] sm:$0xff] }
  0x99   :  { %v98_v16 = vadd.f32 %v146_v11, %v92_v15  ;;  %88 = vst.msk [vmem:[#allocation2 + $0x8] sm:$0xff] %vm22_vm0, %v85_v14 }
  0x9b   :  { %v104_v17 = vadd.f32 %v143_v13, %v98_v16 }
  0x9d   :  { %v106_v18 = vpack.c.bf16 %v104_v17, %v104_v17 }
  0x9f   :  { %109 = vst.msk [vmem:[%s208_s4] sm:$0xf] %vm108_vm2, %v106_v18 }
  0xa0   :  { %v93_v20 = vld [vmem:[#allocation2 + $0x8] sm:$0xff] }
  0xa1   :  { %v99_v21 = vadd.f32 %v146_v11, %v93_v20 }
  0xa3   :  { %v105_v22 = vadd.f32 %v144_v19, %v99_v21 }
  0xa5   :  { %v107_v23 = vpack.c.bf16 %v105_v22, %v105_v22 }
  0xa7   :  { %110 = vst.msk [vmem:[%s208_s4 + $0x4] sm:$0xf] %vm108_vm2, %v107_v23 }

// kernel: bart_decoder_forward.46
= control target key start
LH: loop header
LB: loop body
LE: loop exit
PB: predicated region body
PF: predicated region fallthrough
CT: control target
= control target key end

     0   :  { %8 = vsyncpa [#allocation4], 0  ;;  %s189_s15 = smov [#allocation3]   ;;  %s246_s0 = inlined_call_operand.vmem [shape: bf16[32,32], index: 0, kind: input, shape index: {}]   ;;  %s247_s1 = inlined_call_operand.vmem [shape: bf16[32,64], index: 1, kind: input, shape index: {}]   ;;  %s248_s2 = inlined_call_operand.hbm [shape: f32[1,64], index: 2, kind: input, shape index: {}]   ;;  %s249_s3 = inlined_call_operand.vmem [shape: bf16[32,64], index: 3, kind: output, shape index: {}]  }
   0x1   :  { %s18_s14 = sshll.u32 %s248_s2, 4  ;;  %s20_s16 = sshll.u32 %s189_s15, 4  ;;  %s19_s14 = int_to_ptr.hbm [resolvable:$true] %s18_s14  ;;  %s21_s16 = int_to_ptr.vmem [resolvable:$true] %s20_s16 }
   0x2   :  { %23 = dma.hbm_to_vmem [thread:$0]  %s19_s14, 16, %s21_s16, [#allocation4]  }
   0x3   :  { %187 = dma.done.wait [#allocation4], 16  }
   0x4   :  { %188 = vsyncadd [#allocation4], 4294967280  ;;  %vm33_vm0 = vcmask 523264   ;;  %v190_v0 = vmov 0.0   ;;  %v157_v1 = vld [vmem:[%s247_s1 + $0x8] sm:$0xff]  ;;  %v156_v2 = vld [vmem:[%s247_s1] sm:$0xff] }
   0x5   :  { %34 = vst.msk [vmem:[#allocation2] sm:$0xff] %vm33_vm0, %v190_v0  ;;  %85 = vmatpush.bf16.msra.mxu0 %v157_v1  ;;  %158 = vmatpush.bf16.msra.mxu1 %v157_v1  ;;  %v154_v3 = vld [vmem:[%s246_s0] sm:$0xff]  ;;  %v155_v4 = vld [vmem:[%s246_s0 + $0x8] sm:$0xff]  ;;  %vm72_vm1 = vcmask 261120   ;;  %vm126_vm2 = vcmask 519168  }
   0x6   :  { %35 = vst.msk [vmem:[#allocation2 + $0x8] sm:$0xff] %vm33_vm0, %v190_v0  ;;  %v162_v13 = vld [vmem:[#allocation3] ss:$0 sm:$0xff] }
   0x7   :  { %36 = vst.msk [vmem:[#allocation2 + $0x10] sm:$0xff] %vm33_vm0, %v190_v0 }
   0x8   :  { %37 = vst.msk [vmem:[#allocation2 + $0x18] sm:$0xff] %vm33_vm0, %v190_v0 }
   0x9   :  { %86 = vmatpush.bf16.msra.mxu0 %v156_v2  ;;  %159 = vmatpush.bf16.msra.mxu1 %v156_v2 }
   0xc   :  { %152 = vmatmul.msk.bf16.vlgmr.msra.gmra.mxu0 %vm72_vm1, %v154_v3  ;;  %153 = vmatmul.msk.bf16.vlgmr.msra.gmra.mxu1 %vm72_vm1, %v155_v4  ;;  %v38_v5 = vld [vmem:[#allocation2] sm:$0xff] }
   0xd   :  { %v39_v11 = vld [vmem:[#allocation2 + $0x8] sm:$0xff] }
   0xe   :  { %v40_v6 = vld [vmem:[#allocation2 + $0x10] sm:$0xff] }
   0xf   :  { %v41_v12 = vld [vmem:[#allocation2 + $0x18] sm:$0xff] }
  0x89   :  { %v88_v7 = vpop.f32.mrf.mxu0  ;;  %v93_v8 = vpop.f32.mrf.mxu1 }
  0x8a   :  { %v98_v9 = vadd.f32 %v88_v7, %v38_v5  ;;  %v100_v10 = vadd.f32 %v93_v8, %v40_v6 }
  0x8c   :  { %103 = vst.msk [vmem:[#allocation2] sm:$0xff] %vm33_vm0, %v98_v9 }
  0x8d   :  { %105 = vst.msk [vmem:[#allocation2 + $0x10] sm:$0xff] %vm33_vm0, %v100_v10 }
  0x91   :  { %v90_v14 = vpop.f32.mrf.mxu0  ;;  %v95_v15 = vpop.f32.mrf.mxu1 }
  0x92   :  { %v99_v16 = vadd.f32 %v90_v14, %v39_v11  ;;  %v101_v17 = vadd.f32 %v95_v15, %v41_v12 }
  0x93   :  { %v110_v18 = vld [vmem:[#allocation2] sm:$0xff] }
  0x94   :  { %v118_v19 = vadd.f32 %v162_v13, %v110_v18  ;;  %v112_v20 = vld [vmem:[#allocation2 + $0x10] sm:$0xff]  ;;  %104 = vst.msk [vmem:[#allocation2 + $0x8] sm:$0xff] %vm33_vm0, %v99_v16 }
  0x95   :  { %v120_v21 = vadd.f32 %v162_v13, %v112_v20  ;;  %106 = vst.msk [vmem:[#allocation2 + $0x18] sm:$0xff] %vm33_vm0, %v101_v17 }
  0x96   :  { %v122_v22 = vpack.c.bf16 %v118_v19, %v118_v19 }
  0x97   :  { %v124_v23 = vpack.c.bf16 %v120_v21, %v120_v21 }
  0x98   :  { %127 = vst.msk [vmem:[%s249_s3] sm:$0xf] %vm126_vm2, %v122_v22 }
  0x99   :  { %129 = vst.msk [vmem:[%s249_s3 + $0x8] sm:$0xf] %vm126_vm2, %v124_v23 }
  0x9b   :  { %v111_v24 = vld [vmem:[#allocation2 + $0x8] sm:$0xff] }
  0x9c   :  { %v119_v25 = vadd.f32 %v162_v13, %v111_v24  ;;  %v113_v26 = vld [vmem:[#allocation2 + $0x18] sm:$0xff] }
  0x9d   :  { %v121_v27 = vadd.f32 %v162_v13, %v113_v26 }
  0x9e   :  { %v123_v28 = vpack.c.bf16 %v119_v25, %v119_v25 }
  0x9f   :  { %v125_v29 = vpack.c.bf16 %v121_v27, %v121_v27 }
  0xa0   :  { %128 = vst.msk [vmem:[%s249_s3 + $0x4] sm:$0xf] %vm126_vm2, %v123_v28 }
  0xa1   :  { %130 = vst.msk [vmem:[%s249_s3 + $0xc] sm:$0xf] %vm126_vm2, %v125_v29 }
  0xa2   :  { %135 = vsyncpa [#allocation4], 1 }

// kernel: bart_decoder_forward.49
= control target key start
LH: loop header
LB: loop body
LE: loop exit
PB: predicated region body
PF: predicated region fallthrough
CT: control target
= control target key end

     0   :  { %8 = vsyncpa [#allocation3], 0  ;;  %s230_s0 = inlined_call_operand.vmem [shape: bf16[16,32], index: 0, kind: input, shape index: {}]   ;;  %s231_s1 = inlined_call_operand.hbm [shape: f32[1,32], index: 1, kind: input, shape index: {}]   ;;  %s232_s2 = inlined_call_operand.hbm [shape: f32[1,32], index: 2, kind: input, shape index: {}]   ;;  %s233_s3 = inlined_call_operand.vmem [shape: bf16[16,32], index: 3, kind: output, shape index: {}]  }
   0x1   :  { %s17_s14 = sshll.u32 %s231_s1, 4  ;;  %s18_s14 = int_to_ptr.hbm [resolvable:$true] %s17_s14 }
   0x2   :  { %9 = vsyncpa [#allocation5], 0  ;;  %s188_s15 = smov [#allocation2]   ;;  %s28_s19 = sshll.u32 %s232_s2, 4  ;;  %s29_s19 = int_to_ptr.hbm [resolvable:$true] %s28_s19 }
   0x3   :  { %s19_s16 = sshll.u32 %s188_s15, 4  ;;  %s189_s20 = smov [#allocation4]   ;;  %s20_s16 = int_to_ptr.vmem [resolvable:$true] %s19_s16 }
   0x4   :  { %22 = dma.hbm_to_vmem [thread:$0]  %s18_s14, 16, %s20_s16, [#allocation3]  }
   0x5   :  { %s30_s21 = sshll.u32 %s189_s20, 4  ;;  %s31_s21 = int_to_ptr.vmem [resolvable:$true] %s30_s21 }
   0x6   :  { %33 = dma.hbm_to_vmem [thread:$0]  %s29_s19, 16, %s31_s21, [#allocation5]  }
   0x7   :  { %184 = dma.done.wait [#allocation3], 16  }
   0x8   :  { %185 = vsyncadd [#allocation3], 4294967280 }
   0x9   :  { %186 = dma.done.wait [#allocation5], 16  }
   0xa   :  { %187 = vsyncadd [#allocation5], 4294967280  ;;  %v122_v0 = vld [vmem:[%s230_s0] sm:$0xff]   ;;  %vm46_vm0 = vcmask 261120   ;;  %v190_v5 = vmov 32.0   ;;  %vm112_vm6 = vcmask 257024  }
   0xb   :  { %v123_v1 = vunpack.c.l.bf16 %v122_v0  ;;  %v124_v3 = vunpack.c.h.bf16 %v122_v0  ;;  %130 = vrcp.f32 %v190_v5  ;;  %v128_v36 = vld [vmem:[#allocation2] ss:$0 sm:$0xff]  ;;  %v129_v39 = vld [vmem:[#allocation4] ss:$0 sm:$0xff] }
   0xd   :  { %v47_v2 = vsel %vm46_vm0, %v123_v1, 0.0  ;;  %v50_v4 = vsel %vm46_vm0, %v124_v3, 0.0 }
   0xe   :  { %48 = vadd.xlane.f32.xlu0 %v47_v2 }
  0x11   :  { %v131_v6 = vpop.eup %130 }
  0x12   :  { %v54_v7 = vmul.f32 32.0, %v131_v6  ;;  %vm58_vm1 = vweird.f32 %v131_v6 }
  0x14   :  { %v55_v8 = vsub.f32 1.0, %v54_v7 }
  0x16   :  { %51 = vadd.xlane.f32.xlu0 %v50_v4  ;;  %v56_v9 = vmul.f32 %v131_v6, %v55_v8 }
  0x18   :  { %v57_v10 = vadd.f32 %v131_v6, %v56_v9 }
  0x1a   :  { %v59_v11 = vsel %vm58_vm1, %v131_v6, %v57_v10 }
  0x81   :  { %v49_v12 = vpop.xlane.xlu0 %48 }
  0x82   :  { %v60_v13 = vmul.f32 %v59_v11, %v49_v12 }
  0x84   :  { %v62_v14 = vsub.f32 %v123_v1, %v60_v13 }
  0x86   :  { %v64_v15 = vmul.f32 %v62_v14, %v62_v14 }
  0x88   :  { %v66_v16 = vsel %vm46_vm0, %v64_v15, 0.0 }
  0x89   :  { %67 = vadd.xlane.f32.xlu1 %v66_v16  ;;  %v52_v17 = vpop.xlane.xlu0 %51 }
  0x8a   :  { %v61_v18 = vmul.f32 %v59_v11, %v52_v17 }
  0x8c   :  { %v63_v19 = vsub.f32 %v124_v3, %v61_v18 }
  0x8e   :  { %v65_v20 = vmul.f32 %v63_v19, %v63_v19 }
  0x90   :  { %v69_v21 = vsel %vm46_vm0, %v65_v20, 0.0 }
  0x91   :  { %70 = vadd.xlane.f32.xlu1 %v69_v21 }
  0xfc   :  { %v68_v22 = vpop.xlane.xlu1 %67 }
  0xfd   :  { %v72_v23 = vmul.f32 %v68_v22, %v59_v11 }
  0xff   :  { %v74_v24 = vadd.f32 1e-05, %v72_v23 }
 0x101   :  { %132 = vrsqrt.f32 %v74_v24  ;;  %vm82_vm3 = vweird.f32 %v74_v24 }
 0x104   :  { %v71_v25 = vpop.xlane.xlu1 %70 }
 0x105   :  { %v73_v26 = vmul.f32 %v71_v25, %v59_v11 }
 0x107   :  { %v133_v27 = vpop.eup %132  ;;  %v75_v28 = vadd.f32 1e-05, %v73_v26 }
 0x108   :  { %v77_v29 = vmul.f32 %v133_v27, %v74_v24  ;;  %vm83_vm2 = vweird.f32 %v133_v27 }
 0x109   :  { %134 = vrsqrt.f32 %v75_v28  ;;  %vm84_vm4 = vmor %vm82_vm3, %vm83_vm2  ;;  %vm92_vm7 = vweird.f32 %v75_v28 }
 0x10a   :  { %v78_v30 = vmul.f32 %v133_v27, %v77_v29 }
 0x10c   :  { %v79_v31 = vmul.f32 0.5, %v78_v30 }
 0x10e   :  { %v80_v32 = vsub.f32 1.5, %v79_v31 }
 0x10f   :  { %v135_v33 = vpop.eup %134 }
 0x110   :  { %v81_v34 = vmul.f32 %v133_v27, %v80_v32  ;;  %v87_v35 = vmul.f32 %v135_v33, %v75_v28  ;;  %vm93_vm5 = vweird.f32 %v135_v33 }
 0x111   :  { %vm94_vm8 = vmor %vm92_vm7, %vm93_vm5 }
 0x112   :  { %v85_v37 = vsel %vm84_vm4, %v133_v27, %v81_v34  ;;  %v88_v38 = vmul.f32 %v135_v33, %v87_v35 }
 0x113   :  { %v96_v40 = vmul.f32 %v85_v37, %v62_v14 }
 0x114   :  { %v89_v41 = vmul.f32 0.5, %v88_v38 }
 0x115   :  { %v102_v42 = vmul.f32 %v128_v36, %v96_v40 }
 0x116   :  { %v90_v43 = vsub.f32 1.5, %v89_v41 }
 0x117   :  { %v108_v44 = vadd.f32 %v129_v39, %v102_v42 }
 0x118   :  { %v91_v45 = vmul.f32 %v135_v33, %v90_v43 }
 0x119   :  { %v110_v46 = vpack.c.bf16 %v108_v44, %v108_v44 }
 0x11a   :  { %v95_v47 = vsel %vm94_vm8, %v135_v33, %v91_v45 }
 0x11b   :  { %113 = vst.msk [vmem:[%s233_s3] sm:$0xf] %vm112_vm6, %v110_v46  ;;  %v97_v48 = vmul.f32 %v95_v47, %v63_v19 }
 0x11d   :  { %v103_v49 = vmul.f32 %v128_v36, %v97_v48 }
 0x11f   :  { %v109_v50 = vadd.f32 %v129_v39, %v103_v49 }
 0x121   :  { %v111_v51 = vpack.c.bf16 %v109_v50, %v109_v50 }
 0x123   :  { %114 = vst.msk [vmem:[%s233_s3 + $0x4] sm:$0xf] %vm112_vm6, %v111_v51 }
 0x124   :  { %119 = vsyncpa [#allocation3], 1 }
 0x125   :  { %120 = vsyncpa [#allocation5], 1 }

// kernel: bart_decoder_forward.48
= control target key start
LH: loop header
LB: loop body
LE: loop exit
PB: predicated region body
PF: predicated region fallthrough
CT: control target
= control target key end

     0   :  { %9 = vsyncpa [#allocation4], 0  ;;  %s162_s18 = smov [#allocation3]   ;;  %s215_s0 = inlined_call_operand.vmem [shape: bf16[16,32], index: 0, kind: input, shape index: {}]   ;;  %s216_s1 = inlined_call_operand.vmem [shape: bf16[32,32], index: 1, kind: input, shape index: {}]   ;;  %s217_s2 = inlined_call_operand.hbm [shape: f32[1,32], index: 2, kind: input, shape index: {}]   ;;  %s218_s3 = inlined_call_operand.vmem [shape: bf16[16,32], index: 3, kind: input, shape index: {}]   ;;  %s219_s4 = inlined_call_operand.vmem [shape: bf16[16,32], index: 4, kind: output, shape index: {}]  }
   0x1   :  { %s19_s17 = sshll.u32 %s217_s2, 4  ;;  %s21_s19 = sshll.u32 %s162_s18, 4  ;;  %s20_s17 = int_to_ptr.hbm [resolvable:$true] %s19_s17  ;;  %s22_s19 = int_to_ptr.vmem [resolvable:$true] %s21_s19 }
   0x2   :  { %24 = dma.hbm_to_vmem [thread:$0]  %s20_s17, 16, %s22_s19, [#allocation4]  }
   0x3   :  { %160 = dma.done.wait [#allocation4], 16  }
   0x4   :  { %161 = vsyncadd [#allocation4], 4294967280  ;;  %vm36_vm0 = vcmask 261120   ;;  %v163_v0 = vmov 0.0   ;;  %v128_v1 = vld [vmem:[%s216_s1 + $0x8] sm:$0xff]  ;;  %v127_v2 = vld [vmem:[%s216_s1] sm:$0xff] }
   0x5   :  { %37 = vst.msk [vmem:[#allocation2] sm:$0xff] %vm36_vm0, %v163_v0  ;;  %74 = vmatpush.bf16.msra.mxu0 %v128_v1  ;;  %v126_v3 = vld [vmem:[%s215_s0] sm:$0xff]  ;;  %v135_v9 = vld [vmem:[#allocation3] ss:$0 sm:$0xff]  ;;  %vm105_vm1 = vcmask 257024  }
   0x6   :  { %38 = vst.msk [vmem:[#allocation2 + $0x8] sm:$0xff] %vm36_vm0, %v163_v0  ;;  %v130_v7 = vld [vmem:[%s218_s3] sm:$0xff]  }
   0x7   :  { %v131_v11 = vunpack.c.l.bf16 %v130_v7  ;;  %v132_v17 = vunpack.c.h.bf16 %v130_v7 }
   0x9   :  { %75 = vmatpush.bf16.msra.mxu0 %v127_v2 }
   0xc   :  { %125 = vmatmul.msk.bf16.vlgmr.msra.gmra.mxu0 %vm36_vm0, %v126_v3  ;;  %v39_v4 = vld [vmem:[#allocation2] sm:$0xff] }
   0xd   :  { %v40_v8 = vld [vmem:[#allocation2 + $0x8] sm:$0xff] }
  0x89   :  { %v77_v5 = vpop.f32.mrf.mxu0 }
  0x8a   :  { %v82_v6 = vadd.f32 %v77_v5, %v39_v4 }
  0x8c   :  { %84 = vst.msk [vmem:[#allocation2] sm:$0xff] %vm36_vm0, %v82_v6 }
  0x91   :  { %v79_v10 = vpop.f32.mrf.mxu0 }
  0x92   :  { %v83_v12 = vadd.f32 %v79_v10, %v40_v8 }
  0x93   :  { %v89_v13 = vld [vmem:[#allocation2] sm:$0xff] }
  0x94   :  { %v95_v14 = vadd.f32 %v135_v9, %v89_v13  ;;  %85 = vst.msk [vmem:[#allocation2 + $0x8] sm:$0xff] %vm36_vm0, %v83_v12 }
  0x96   :  { %v101_v15 = vadd.f32 %v131_v11, %v95_v14 }
  0x98   :  { %v103_v16 = vpack.c.bf16 %v101_v15, %v101_v15 }
  0x9a   :  { %106 = vst.msk [vmem:[%s219_s4] sm:$0xf] %vm105_vm1, %v103_v16 }
  0x9b   :  { %v90_v18 = vld [vmem:[#allocation2 + $0x8] sm:$0xff] }
  0x9c   :  { %v96_v19 = vadd.f32 %v135_v9, %v90_v18 }
  0x9e   :  { %v102_v20 = vadd.f32 %v132_v17, %v96_v19 }
  0xa0   :  { %v104_v21 = vpack.c.bf16 %v102_v20, %v102_v20 }
  0xa2   :  { %107 = vst.msk [vmem:[%s219_s4 + $0x4] sm:$0xf] %vm105_vm1, %v104_v21 }
  0xa3   :  { %112 = vsyncpa [#allocation4], 1 }

// kernel: bart_decoder_forward.50
= control target key start
LH: loop header
LB: loop body
LE: loop exit
PB: predicated region body
PF: predicated region fallthrough
CT: control target
= control target key end

     0   :  { %8 = vsyncpa [#allocation4], 0  ;;  %s242_s15 = smov [#allocation3]   ;;  %s302_s0 = inlined_call_operand.vmem [shape: bf16[16,32], index: 0, kind: input, shape index: {}]   ;;  %s303_s1 = inlined_call_operand.vmem [shape: bf16[32,64], index: 1, kind: input, shape index: {}]   ;;  %s304_s2 = inlined_call_operand.hbm [shape: f32[1,64], index: 2, kind: input, shape index: {}]   ;;  %s305_s3 = inlined_call_operand.vmem [shape: bf16[16,64], index: 3, kind: output, shape index: {}]  }
   0x1   :  { %s18_s14 = sshll.u32 %s304_s2, 4  ;;  %s20_s16 = sshll.u32 %s242_s15, 4  ;;  %s19_s14 = int_to_ptr.hbm [resolvable:$true] %s18_s14  ;;  %s21_s16 = int_to_ptr.vmem [resolvable:$true] %s20_s16 }
   0x2   :  { %23 = dma.hbm_to_vmem [thread:$0]  %s19_s14, 16, %s21_s16, [#allocation4]  }
   0x3   :  { %240 = dma.done.wait [#allocation4], 16  }
   0x4   :  { %241 = vsyncadd [#allocation4], 4294967280  ;;  %vm33_vm0 = vcmask 523264   ;;  %v243_v0 = vmov 0.0   ;;  %v204_v1 = vld [vmem:[%s303_s1 + $0x8] sm:$0xff]  ;;  %v203_v2 = vld [vmem:[%s303_s1] sm:$0xff] }
   0x5   :  { %34 = vst.msk [vmem:[#allocation2] sm:$0xff] %vm33_vm0, %v243_v0  ;;  %71 = vmatpush.bf16.msra.mxu0 %v204_v1  ;;  %v202_v3 = vld [vmem:[%s302_s0] sm:$0xff]  ;;  %vm61_vm1 = vcmask 261120   ;;  %v207_v8 = vld [vmem:[#allocation3] ss:$0 sm:$0xff]  ;;  %vm177_vm11 = vcmask 519168  }
   0x6   :  { %35 = vst.msk [vmem:[#allocation2 + $0x8] sm:$0xff] %vm33_vm0, %v243_v0 }
   0x9   :  { %72 = vmatpush.bf16.msra.mxu0 %v203_v2 }
   0xc   :  { %197 = vmatmul.msk.bf16.vlgmr.msra.gmra.mxu0 %vm61_vm1, %v202_v3  ;;  %v36_v4 = vld [vmem:[#allocation2] sm:$0xff] }
   0xd   :  { %v37_v7 = vld [vmem:[#allocation2 + $0x8] sm:$0xff] }
  0x89   :  { %v74_v5 = vpop.f32.mrf.mxu0 }
  0x8a   :  { %v79_v6 = vadd.f32 %v74_v5, %v36_v4 }
  0x8c   :  { %82 = vst.msk [vmem:[#allocation2] sm:$0xff] %vm33_vm0, %v79_v6 }
  0x91   :  { %v76_v9 = vpop.f32.mrf.mxu0 }
  0x92   :  { %v80_v10 = vadd.f32 %v76_v9, %v37_v7 }
  0x93   :  { %v87_v11 = vld [vmem:[#allocation2] sm:$0xff] }
  0x94   :  { %v279_v12 = vadd.f32 %v207_v8, %v87_v11  ;;  %83 = vst.msk [vmem:[#allocation2 + $0x8] sm:$0xff] %vm33_vm0, %v80_v10 }
  0x96   :  { %v283_v13 = vmul.f32 0.70710677, %v279_v12  ;;  %v95_v7 = vmul.f32 0.5, %v279_v12 }
  0x98   :  { %v99_v14 = vand.u32 2147483647, %v283_v13  ;;  %vm165_vm10 = vcmp.ge.f32.partialorder %v283_v13, 0.0 }
  0x9a   :  { %v101_v15 = vmul.f32 0.3275911, %v99_v14  ;;  %v153_v34 = vsub.f32 0.0, %v99_v14 }
  0x9b   :  { %v88_v16 = vld [vmem:[#allocation2 + $0x8] sm:$0xff] }
  0x9c   :  { %v103_v17 = vadd.f32 1.0, %v101_v15  ;;  %v286_v18 = vadd.f32 %v207_v8, %v88_v16  ;;  %v155_v40 = vmul.f32 %v153_v34, %v99_v14 }
  0x9e   :  { %208 = vrcp.f32 %v103_v17  ;;  %v289_v19 = vmul.f32 0.70710677, %v286_v18  ;;  %v116_v26 = vand.u32 2147483648, %v103_v17  ;;  %v114_v28 = vand.u32 2147483647, %v103_v17 }
  0x9f   :  { %vm110_vm3 = vweird.f32 %v103_v17  ;;  %v157_v47 = vmul.f32 1.442695, %v155_v40 }
  0xa0   :  { %v100_v20 = vand.u32 2147483647, %v289_v19  ;;  %v117_v30 = vor.u32 1.1754944e-38, %v116_v26  ;;  %vm115_vm5 = vcmp.eq.f32.partialorder %v114_v28, 8.507059e+37  ;;  %vm166_vm12 = vcmp.ge.f32.partialorder %v289_v19, 0.0 }
  0xa2   :  { %v102_v21 = vmul.f32 0.3275911, %v100_v20  ;;  %v154_v51 = vsub.f32 0.0, %v100_v20 }
  0xa4   :  { %v209_v22 = vpop.eup %208  ;;  %v104_v24 = vadd.f32 1.0, %v102_v21  ;;  %v156_v56 = vmul.f32 %v154_v51, %v100_v20  ;;  %v96_v20 = vmul.f32 0.5, %v286_v18 }
  0xa5   :  { %v106_v23 = vmul.f32 %v209_v22, %v103_v17  ;;  %vm111_vm2 = vweird.f32 %v209_v22 }
  0xa6   :  { %210 = vrcp.f32 %v104_v24  ;;  %vm112_vm4 = vmor %vm110_vm3, %vm111_vm2  ;;  %v131_v39 = vand.u32 2147483648, %v104_v24  ;;  %v129_v42 = vand.u32 2147483647, %v104_v24  ;;  %vm125_vm7 = vweird.f32 %v104_v24 }
  0xa7   :  { %v107_v25 = vsub.f32 1.0, %v106_v23  ;;  %212 = vpow2.f32 %v157_v47  ;;  %v159_v61 = vmul.f32 1.442695, %v156_v56 }
  0xa8   :  { %v132_v46 = vor.u32 1.1754944e-38, %v131_v39  ;;  %vm130_vm9 = vcmp.eq.f32.partialorder %v129_v42, 8.507059e+37 }
  0xa9   :  { %v108_v27 = vmul.f32 %v209_v22, %v107_v25  ;;  %214 = vpow2.f32 %v159_v61 }
  0xab   :  { %v109_v29 = vadd.f32 %v209_v22, %v108_v27 }
  0xac   :  { %v211_v31 = vpop.eup %210 }
  0xad   :  { %v113_v32 = vsel %vm112_vm4, %v209_v22, %v109_v29  ;;  %v121_v35 = vmul.f32 %v211_v31, %v104_v24  ;;  %vm126_vm6 = vweird.f32 %v211_v31  ;;  %v213_v62 = vpop.eup %212 }
  0xae   :  { %v118_v33 = vsel %vm115_vm5, %v117_v30, %v113_v32  ;;  %vm127_vm8 = vmor %vm125_vm7, %vm126_vm6 }
  0xaf   :  { %v135_v36 = vmul.f32 1.0614054, %v118_v33  ;;  %v122_v37 = vsub.f32 1.0, %v121_v35  ;;  %v215_v10 = vpop.eup %214 }
  0xb1   :  { %v198_v38 = vadd.f32 -1.4531521, %v135_v36  ;;  %v123_v41 = vmul.f32 %v211_v31, %v122_v37 }
  0xb3   :  { %v139_v43 = vmul.f32 %v198_v38, %v118_v33  ;;  %v124_v44 = vadd.f32 %v211_v31, %v123_v41 }
  0xb5   :  { %v141_v45 = vadd.f32 1.4214138, %v139_v43  ;;  %v128_v48 = vsel %vm127_vm8, %v211_v31, %v124_v44 }
  0xb6   :  { %v133_v50 = vsel %vm130_vm9, %v132_v46, %v128_v48 }
  0xb7   :  { %v143_v49 = vmul.f32 %v141_v45, %v118_v33  ;;  %v136_v52 = vmul.f32 1.0614054, %v133_v50 }
  0xb9   :  { %v200_v53 = vadd.f32 -0.28449672, %v143_v49  ;;  %v199_v54 = vadd.f32 -1.4531521, %v136_v52 }
  0xbb   :  { %v147_v55 = vmul.f32 %v200_v53, %v118_v33  ;;  %v140_v57 = vmul.f32 %v199_v54, %v133_v50 }
  0xbd   :  { %v149_v58 = vadd.f32 0.2548296, %v147_v55  ;;  %v142_v59 = vadd.f32 1.4214138, %v140_v57 }
  0xbf   :  { %v151_v60 = vmul.f32 %v149_v58, %v118_v33  ;;  %v144_v63 = vmul.f32 %v142_v59, %v133_v50 }
  0xc1   :  { %v161_v0 = vmul.f32 %v213_v62, %v151_v60  ;;  %v201_v1 = vadd.f32 -0.28449672, %v144_v63 }
  0xc3   :  { %v163_v2 = vsub.f32 1.0, %v161_v0  ;;  %v148_v3 = vmul.f32 %v201_v1, %v133_v50 }
  0xc5   :  { %v167_v4 = vsub.f32 0.0, %v163_v2  ;;  %v150_v5 = vadd.f32 0.2548296, %v148_v3 }
  0xc7   :  { %v169_v6 = vsel %vm165_vm10, %v163_v2, %v167_v4  ;;  %v152_v9 = vmul.f32 %v150_v5, %v133_v50 }
  0xc8   :  { %v171_v8 = vadd.f32 1.0, %v169_v6 }
  0xc9   :  { %v162_v14 = vmul.f32 %v215_v10, %v152_v9 }
  0xca   :  { %v173_v11 = vmul.f32 %v171_v8, %v95_v7 }
  0xcb   :  { %v164_v16 = vsub.f32 1.0, %v162_v14 }
  0xcc   :  { %v175_v15 = vpack.c.bf16 %v173_v11, %v173_v11 }
  0xcd   :  { %v168_v17 = vsub.f32 0.0, %v164_v16 }
  0xce   :  { %178 = vst.msk [vmem:[%s305_s3] sm:$0xf] %vm177_vm11, %v175_v15 }
  0xcf   :  { %v170_v13 = vsel %vm166_vm12, %v164_v16, %v168_v17 }
  0xd0   :  { %v172_v21 = vadd.f32 1.0, %v170_v13 }
  0xd2   :  { %v174_v12 = vmul.f32 %v172_v21, %v96_v20 }
  0xd4   :  { %v176_v22 = vpack.c.bf16 %v174_v12, %v174_v12 }
  0xd6   :  { %179 = vst.msk [vmem:[%s305_s3 + $0x4] sm:$0xf] %vm177_vm11, %v176_v22 }
  0xd7   :  { %184 = vsyncpa [#allocation4], 1 }

// kernel: bart_decoder_forward.53
= control target key start
LH: loop header
LB: loop body
LE: loop exit
PB: predicated region body
PF: predicated region fallthrough
CT: control target
= control target key end

     0   :  { %vm87_vm0 = vcmask 261120   ;;  %s325_s1 = inlined_call_operand.vmem [shape: bf16[32,512], index: 1, kind: input, shape index: {}]   ;;  %s326_s0 = inlined_call_operand.vmem [shape: bf16[16,32], index: 0, kind: input, shape index: {}]   ;;  %s327_s2 = inlined_call_operand.vmem [shape: f32[16,512], index: 2, kind: output, shape index: {}]  }
   0x1   :  { %v208_v0 = vld [vmem:[%s325_s1 + $0x20] sm:$0xf]  ;;  %v233_v1 = vld [vmem:[%s325_s1 + $0x2c] sm:$0xf0]  ;;  %v231_v2 = vld [vmem:[%s325_s1 + $0x24] sm:$0xf] }
   0x2   :  { %v209_v3 = vor.u32 %v233_v1, %v208_v0  ;;  %v210_v4 = vld [vmem:[%s325_s1 + $0x30] sm:$0xf0]  ;;  %v216_v5 = vld [vmem:[%s325_s1 + $0x28] sm:$0xf]  ;;  %v234_v6 = vld [vmem:[%s325_s1 + $0x34] sm:$0xf0] }
   0x3   :  { %v213_v7 = vor.u32 %v231_v2, %v210_v4  ;;  %v217_v8 = vor.u32 %v234_v6, %v216_v5  ;;  %v232_v9 = vld [vmem:[%s325_s1 + $0x2c] sm:$0xf]  ;;  %v218_v10 = vld [vmem:[%s325_s1 + $0x38] sm:$0xf0]  ;;  %v192_v11 = vld [vmem:[%s325_s1] sm:$0xf] }
   0x4   :  { %97 = vmatpush.bf16.msra.mxu0 %v209_v3  ;;  %v221_v12 = vor.u32 %v232_v9, %v218_v10  ;;  %v229_v13 = vld [vmem:[%s325_s1 + $0xc] sm:$0xf0]  ;;  %v227_v14 = vld [vmem:[%s325_s1 + $0x4] sm:$0xf]  ;;  %v194_v15 = vld [vmem:[%s325_s1 + $0x10] sm:$0xf0] }
   0x5   :  { %111 = vmatpush.bf16.msra.mxu1 %v213_v7  ;;  %125 = vmatpush.bf16.msra.mxu2 %v217_v8  ;;  %v193_v16 = vor.u32 %v229_v13, %v192_v11  ;;  %v197_v17 = vor.u32 %v227_v14, %v194_v15  ;;  %v200_v18 = vld [vmem:[%s325_s1 + $0x8] sm:$0xf]  ;;  %v230_v19 = vld [vmem:[%s325_s1 + $0x14] sm:$0xf0]  ;;  %v228_v20 = vld [vmem:[%s325_s1 + $0xc] sm:$0xf] }
   0x6   :  { %139 = vmatpush.bf16.msra.mxu3 %v221_v12  ;;  %v201_v21 = vor.u32 %v230_v19, %v200_v18  ;;  %v202_v22 = vld [vmem:[%s325_s1 + $0x18] sm:$0xf0]  ;;  %v226_v24 = vld [vmem:[%s326_s0] sm:$0xff] }
   0x7   :  { %v205_v23 = vor.u32 %v228_v20, %v202_v22 }
   0x8   :  { %98 = vmatpush.bf16.msra.mxu0 %v193_v16 }
   0x9   :  { %112 = vmatpush.bf16.msra.mxu1 %v197_v17  ;;  %126 = vmatpush.bf16.msra.mxu2 %v201_v21 }
   0xa   :  { %140 = vmatpush.bf16.msra.mxu3 %v205_v23 }
   0xb   :  { %222 = vmatmul.msk.bf16.vlgmr.msra.gmra.mxu0 %vm87_vm0, %v226_v24 }
   0xc   :  { %223 = vmatmul.msk.bf16.vlgmr.msra.gmra.mxu1 %vm87_vm0, %v226_v24  ;;  %224 = vmatmul.msk.bf16.vlgmr.msra.gmra.mxu2 %vm87_vm0, %v226_v24 }
   0xd   :  { %225 = vmatmul.msk.bf16.vlgmr.msra.gmra.mxu3 %vm87_vm0, %v226_v24 }
  0x88   :  { %v100_v25 = vpop.f32.mrf.mxu0 }
  0x89   :  { %174 = vst [vmem:[%s327_s2] sm:$0xff] %v100_v25  ;;  %v114_v26 = vpop.f32.mrf.mxu1 }
  0x8a   :  { %175 = vst [vmem:[%s327_s2 + $0x8] sm:$0xff] %v114_v26 }
  0x8f   :  { %v128_v27 = vpop.f32.mrf.mxu2 }
  0x90   :  { %176 = vst [vmem:[%s327_s2 + $0x10] sm:$0xff] %v128_v27  ;;  %v142_v28 = vpop.f32.mrf.mxu3  ;;  %v102_v29 = vpop.f32.mrf.mxu0 }
  0x91   :  { %177 = vst [vmem:[%s327_s2 + $0x18] sm:$0xff] %v142_v28  ;;  %v116_v30 = vpop.f32.mrf.mxu1 }
  0x92   :  { %178 = vst [vmem:[%s327_s2 + $0x20] sm:$0xff] %v102_v29 }
  0x93   :  { %179 = vst [vmem:[%s327_s2 + $0x28] sm:$0xff] %v116_v30 }
  0x97   :  { %v130_v31 = vpop.f32.mrf.mxu2 }
  0x98   :  { %180 = vst [vmem:[%s327_s2 + $0x30] sm:$0xff] %v130_v31  ;;  %v144_v32 = vpop.f32.mrf.mxu3 }
  0x99   :  { %181 = vst [vmem:[%s327_s2 + $0x38] sm:$0xff] %v144_v32 }

</bundles_post_ra>
